<compile_context>
chip_gen: v7x
topology: tpu7x:2x2x1
jax: 0.10.0
libtpu: 0.0.40
codegen_flags: <defaults>
</compile_context>

<pallas_src>
import functools

import jax
import jax.numpy as jnp
import numpy as np
from jax.experimental import pallas as pl
from jax.experimental.pallas import tpu as pltpu


# ----------------------------- sinusoid table ------------------------------ #
def get_sinusoid_encoding(n_position, d_hid):
    def get_position_angle_vec(position):
        return [position / np.power(10000, 2 * (hid_j // 2) / d_hid)
                for hid_j in range(d_hid)]
    table = np.array([get_position_angle_vec(p) for p in range(n_position)])
    table[:, 0::2] = np.sin(table[:, 0::2])
    table[:, 1::2] = np.cos(table[:, 1::2])
    return jnp.asarray(table[None, ...], dtype=jnp.float32)  # (1, n_position, d_hid)


# -------------------------------- kernel ----------------------------------- #
def _layer_norm(x, gamma, beta, eps=1e-5):
    mu = jnp.mean(x, axis=-1, keepdims=True)
    var = jnp.mean((x - mu) ** 2, axis=-1, keepdims=True)
    return (x - mu) * jax.lax.rsqrt(var + eps) * gamma + beta


def cpa43_kernel(f3_ref, f4_ref, bq_ref, bkv_ref, blk_ref,
                 g1_ref, be1_ref, g2_ref, be2_ref, g3_ref, be3_ref,
                 wq_ref, wkv_ref, wr_ref, br_ref,
                 w1_ref, b1_ref, w2_ref, b2_ref,
                 out_ref):
    f3 = f3_ref[0]                     # (TQ, D) f32 tile of f3
    f4 = f4_ref[0]                     # (N4, D) f32 (full f4)
    blk = blk_ref[...]                 # (D, D)  bf16 block-diag head mask / ones
    D = f3.shape[-1]

    n1 = _layer_norm(f3, g1_ref[...], be1_ref[...])
    n2 = _layer_norm(f4, g2_ref[...], be2_ref[...])

    # ---- projections (bf16 operands, f32 accumulation); pos folded into biases
    q = jnp.dot(n1.astype(jnp.bfloat16), wq_ref[...],
                preferred_element_type=jnp.float32) + bq_ref[...]          # (TQ, D)
    kv = jnp.dot(n2.astype(jnp.bfloat16), wkv_ref[...],
                 preferred_element_type=jnp.float32) + bkv_ref[...]        # (N4, 2D)
    k = kv[:, :D]
    v = kv[:, D:]

    # ---- K: softmax over the sequence axis (column-wise -> head-agnostic),
    #      computed at full (N4, D) width.
    k_max = jnp.max(k, axis=0, keepdims=True)
    k_exp = jnp.exp(k - k_max)
    k_soft = k_exp * pl.reciprocal(jnp.sum(k_exp, axis=0, keepdims=True),
                                   approx=True)

    # ---- Q: per-head channel softmax. Single row-wide max (exact shift, since
    #      the global max >= each head max), per-head denominators via ONE MXU
    #      matmul against the block-diagonal ones matrix (result already has
    #      each head's sum broadcast across that head's lanes).
    q_max = jnp.max(q, axis=-1, keepdims=True)
    q_exp = jnp.exp(q - q_max)
    q_den = jnp.dot(q_exp.astype(jnp.bfloat16), blk,
                    preferred_element_type=jnp.float32)                    # (TQ, D)
    q_soft = q_exp * pl.reciprocal(q_den, approx=True)

    # ---- context: ctx = k_soft^T @ v via contraction on axis 0 (transpose is
    #      folded into the MXU feed, no explicit XLU transpose), then zero the
    #      off-diagonal head blocks with the precomputed mask (one multiply).
    ctx = jax.lax.dot_general(
        k_soft.astype(jnp.bfloat16), v.astype(jnp.bfloat16),
        dimension_numbers=(((0,), (0,)), ((), ())),
        preferred_element_type=jnp.float32)                                # (D, D)
    ctx = ctx * blk

    # ---- fuse reprojection into the context: attn = q_soft @ (ctx @ Wr) + br
    ctxw = jnp.dot(ctx.astype(jnp.bfloat16), wr_ref[...],
                   preferred_element_type=jnp.float32)                     # (D, D)
    attn = jnp.dot(q_soft.astype(jnp.bfloat16), ctxw.astype(jnp.bfloat16),
                   preferred_element_type=jnp.float32) + br_ref[...]       # (TQ, D)

    # ---- residual + LN3 + MLP (exact erf GELU, matching nn.GELU())
    f3a = f3 + attn
    n3 = _layer_norm(f3a, g3_ref[...], be3_ref[...])
    h1 = jnp.dot(n3.astype(jnp.bfloat16), w1_ref[...],
                 preferred_element_type=jnp.float32) + b1_ref[...]         # (TQ, M)
    g = 0.5 * h1 * (1.0 + jax.lax.erf(h1 * jnp.float32(0.7071067811865476)))
    ff = jnp.dot(g.astype(jnp.bfloat16), w2_ref[...],
                 preferred_element_type=jnp.float32) + b2_ref[...]         # (TQ, D)

    out_ref[0] = (f3a + ff).astype(out_ref.dtype)


# --------------------------- one-time param prep ---------------------------- #
def prepare_params(params, heads):
    """Fold positional encodings into biases, fuse K|V, cast weights to bf16,
    and build the block-diagonal head mask.  Call ONCE; the per-call wrapper
    then only launches the pallas_call (the kernel is ~10 us / latency bound)."""
    D = params["wq"].shape[0]
    N4 = params["pos4"].shape[1]
    pos3 = params["pos3"][0]                                   # (N3, D)
    pos4 = params["pos4"][0]                                   # (N4, D)

    bias_q = pos3 @ params["wq"] + params["bq"]                # (N3, D)
    bias_kv = jnp.concatenate(
        [pos4 @ params["wk"] + params["bk"],
         jnp.broadcast_to(params["bv"], (N4, D))], axis=1)     # (N4, 2D)

    C = D // heads
    head = jnp.arange(D, dtype=jnp.int32) // C
    blkdiag = (head[:, None] == head[None, :]).astype(jnp.bfloat16)   # (D, D)

    return {
        "bias_q": bias_q,
        "bias_kv": bias_kv,
        "blkdiag": blkdiag,
        "g1": params["g1"], "be1": params["be1"],
        "g2": params["g2"], "be2": params["be2"],
        "g3": params["g3"], "be3": params["be3"],
        "wq": params["wq"].astype(jnp.bfloat16),
        "wkv": jnp.concatenate([params["wk"], params["wv"]],
                               axis=1).astype(jnp.bfloat16),   # (D, 2D)
        "wr": params["wr"].astype(jnp.bfloat16), "br": params["br"],
        "w1": params["w1"].astype(jnp.bfloat16), "b1": params["b1"],
        "w2": params["w2"].astype(jnp.bfloat16), "b2": params["b2"],
    }


# ------------------------------- wrapper ------------------------------------ #
@functools.partial(jax.jit, static_argnames=("tq",))
def cpa43_forward(f3, f4, prep, tq=128):
    B, N3, D = f3.shape
    _, N4, _ = f4.shape
    M = prep["w1"].shape[1]
    assert N3 % tq == 0
    nqt = N3 // tq

    def rep(shape):
        # TODO(synk): once pipeline_mode=pl.Buffered(1) is universally supported,
        # mark these constant-index weight inputs single-buffered (VMEM hygiene
        # for v7x's 64 MiB if shapes are scaled up; irrelevant at current sizes).
        return pl.BlockSpec(shape, lambda b, t: (0,) * len(shape))

    in_specs = [
        pl.BlockSpec((1, tq, D), lambda b, t: (b, t, 0)),    # f3 tile
        pl.BlockSpec((1, N4, D), lambda b, t: (b, 0, 0)),    # f4 (full)
        pl.BlockSpec((tq, D), lambda b, t: (t, 0)),          # bias_q tile
        rep((N4, 2 * D)),                                    # bias_kv
        rep((D, D)),                                         # block-diag mask (bf16)
        rep((1, D)), rep((1, D)),                            # norm1 gamma/beta
        rep((1, D)), rep((1, D)),                            # norm2 gamma/beta
        rep((1, D)), rep((1, D)),                            # norm3 gamma/beta
        rep((D, D)),                                         # Wq (bf16)
        rep((D, 2 * D)),                                     # Wk|Wv (bf16, 256-wide RHS)
        rep((D, D)), rep((1, D)),                            # Wr (bf16), br
        rep((D, M)), rep((1, M)),                            # W1 (bf16), b1
        rep((M, D)), rep((1, D)),                            # W2 (bf16), b2
    ]

    return pl.pallas_call(
        cpa43_kernel,
        out_shape=jax.ShapeDtypeStruct((B, N3, D), f3.dtype),
        grid=(B, nqt),
        in_specs=in_specs,
        out_specs=pl.BlockSpec((1, tq, D), lambda b, t: (b, t, 0)),
        compiler_params=pltpu.CompilerParams(
            dimension_semantics=("parallel", "parallel")),
    )(
        f3, f4, prep["bias_q"], prep["bias_kv"], prep["blkdiag"],
        prep["g1"], prep["be1"], prep["g2"], prep["be2"],
        prep["g3"], prep["be3"],
        prep["wq"], prep["wkv"], prep["wr"], prep["br"],
        prep["w1"], prep["b1"], prep["w2"], prep["b2"],
    )


# --------------------------- pure-JAX reference ----------------------------- #
# Exact f32 mirror of the PyTorch module (per-head loop, unfused, no bf16).
def cpa43_reference(f3, f4, p, heads):
    def ln(x, g, b):
        mu = x.mean(-1, keepdims=True)
        var = ((x - mu) ** 2).mean(-1, keepdims=True)
        return (x - mu) / jnp.sqrt(var + 1e-5) * g + b

    n1 = ln(f3, p["g1"], p["be1"])
    n2 = ln(f4, p["g2"], p["be2"])
    q = (n1 + p["pos3"]) @ p["wq"] + p["bq"]
    k = (n2 + p["pos4"]) @ p["wk"] + p["bk"]
    v = n2 @ p["wv"] + p["bv"]
    D = q.shape[-1]
    C = D // heads
    outs = []
    for i in range(heads):
        q_h = jax.nn.softmax(q[..., i * C:(i + 1) * C], axis=-1)
        k_h = jax.nn.softmax(k[..., i * C:(i + 1) * C], axis=1)
        v_h = v[..., i * C:(i + 1) * C]
        context = jnp.einsum("bnc,bnd->bcd", k_h, v_h)
        outs.append(jnp.einsum("bnc,bcd->bnd", q_h, context))
    agg = jnp.concatenate(outs, axis=-1)
    attn = agg @ p["wr"] + p["br"]
    f3a = f3 + attn
    n3 = ln(f3a, p["g3"], p["be3"])
    h = n3 @ p["w1"] + p["b1"]
    h = 0.5 * h * (1.0 + jax.lax.erf(h / jnp.sqrt(2.0)))
    return f3a + h @ p["w2"] + p["b2"]


# ---------------------------------- main ------------------------------------ #
if __name__ == "__main__":
    B, D, HEADS, MLP = 2, 128, 2, 512
    N3, N4 = 256, 64  # fixed by the module's positional-encoding tables

    key = jax.random.PRNGKey(0)
    ks = jax.random.split(key, 16)

    def w(k, shape, scale=0.02):
        return (scale * jax.random.normal(k, shape)).astype(jnp.float32)

    params = {
        "pos3": get_sinusoid_encoding(N3, D),
        "pos4": get_sinusoid_encoding(N4, D),
        # LayerNorm params (PyTorch default init: ones / zeros)
        "g1": jnp.ones((1, D), jnp.float32), "be1": jnp.zeros((1, D), jnp.float32),
        "g2": jnp.ones((1, D), jnp.float32), "be2": jnp.zeros((1, D), jnp.float32),
        "g3": jnp.ones((1, D), jnp.float32), "be3": jnp.zeros((1, D), jnp.float32),
        # attention projections (stored as (in, out); applied as x @ W + b)
        "wq": w(ks[0], (D, D)), "bq": w(ks[1], (1, D)),
        "wk": w(ks[2], (D, D)), "bk": w(ks[3], (1, D)),
        "wv": w(ks[4], (D, D)), "bv": w(ks[5], (1, D)),
        "wr": w(ks[6], (D, D)), "br": w(ks[7], (1, D)),
        # feedforward
        "w1": w(ks[8], (D, MLP)), "b1": w(ks[9], (1, MLP)),
        "w2": w(ks[10], (MLP, D)), "b2": w(ks[11], (1, D)),
    }

    f3 = jax.random.normal(ks[12], (B, N3, D), dtype=jnp.float32)
    f4 = jax.random.normal(ks[13], (B, N4, D), dtype=jnp.float32)

    # One-time parameter prep (kept out of the per-call latency path).
    prep = jax.tree_util.tree_map(jax.block_until_ready,
                                  prepare_params(params, HEADS))

    out = cpa43_forward(f3, f4, prep)
    out = jax.block_until_ready(out)

    ref = cpa43_reference(f3, f4, params, HEADS)
    ref = jax.block_until_ready(ref)

    assert out.shape == (B, N3, D)
    # Tolerance budget: bf16 matmul operands with f32 accumulation (including
    # the bf16 block-diag denominator matmul) plus approx reciprocals give a
    # max abs deviation of ~1e-3 vs the exact-f32 reference at these scales.
    np_err = float(jnp.max(jnp.abs(out - ref)))
    assert np_err < 1e-2, f"mismatch vs reference: {np_err}"

    print("KERNEL_OK")
</pallas_src>

<mosaic_0001>
module attributes {stable_mosaic.version = 11 : i64} {
  func.func @cpa43_kernel(%arg0: i32, %arg1: i32, %arg2: memref<1x128x128xf32, #tpu.memory_space<vmem>>, %arg3: memref<1x64x128xf32, #tpu.memory_space<vmem>>, %arg4: memref<128x128xf32, #tpu.memory_space<vmem>>, %arg5: memref<64x256xf32, #tpu.memory_space<vmem>>, %arg6: memref<128x128xbf16, #tpu.memory_space<vmem>>, %arg7: memref<1x128xf32, #tpu.memory_space<vmem>>, %arg8: memref<1x128xf32, #tpu.memory_space<vmem>>, %arg9: memref<1x128xf32, #tpu.memory_space<vmem>>, %arg10: memref<1x128xf32, #tpu.memory_space<vmem>>, %arg11: memref<1x128xf32, #tpu.memory_space<vmem>>, %arg12: memref<1x128xf32, #tpu.memory_space<vmem>>, %arg13: memref<128x128xbf16, #tpu.memory_space<vmem>>, %arg14: memref<128x256xbf16, #tpu.memory_space<vmem>>, %arg15: memref<128x128xbf16, #tpu.memory_space<vmem>>, %arg16: memref<1x128xf32, #tpu.memory_space<vmem>>, %arg17: memref<128x512xbf16, #tpu.memory_space<vmem>>, %arg18: memref<1x512xf32, #tpu.memory_space<vmem>>, %arg19: memref<512x128xbf16, #tpu.memory_space<vmem>>, %arg20: memref<1x128xf32, #tpu.memory_space<vmem>>, %arg21: memref<1x128x128xf32, #tpu.memory_space<vmem>>) attributes {dimension_semantics = [#tpu.dimension_semantics<parallel>, #tpu.dimension_semantics<parallel>], iteration_bounds = array<i64: 2, 2>, scalar_prefetch = 0 : i64, scratch_operands = 0 : i64, tpu.core_type = #tpu.core_type<tc>, window_params = [{transform_indices = @transform_0, window_bounds = array<i64: 1, 128, 128>}, {transform_indices = @transform_1, window_bounds = array<i64: 1, 64, 128>}, {transform_indices = @transform_2, window_bounds = array<i64: 128, 128>}, {pipeline_mode = #tpu.pipeline_mode<synchronous>, transform_indices = @transform_3, window_bounds = array<i64: 64, 256>}, {pipeline_mode = #tpu.pipeline_mode<synchronous>, transform_indices = @transform_4, window_bounds = array<i64: 128, 128>}, {pipeline_mode = #tpu.pipeline_mode<synchronous>, transform_indices = @transform_5, window_bounds = array<i64: 1, 128>}, {pipeline_mode = #tpu.pipeline_mode<synchronous>, transform_indices = @transform_6, window_bounds = array<i64: 1, 128>}, {pipeline_mode = #tpu.pipeline_mode<synchronous>, transform_indices = @transform_7, window_bounds = array<i64: 1, 128>}, {pipeline_mode = #tpu.pipeline_mode<synchronous>, transform_indices = @transform_8, window_bounds = array<i64: 1, 128>}, {pipeline_mode = #tpu.pipeline_mode<synchronous>, transform_indices = @transform_9, window_bounds = array<i64: 1, 128>}, {pipeline_mode = #tpu.pipeline_mode<synchronous>, transform_indices = @transform_10, window_bounds = array<i64: 1, 128>}, {pipeline_mode = #tpu.pipeline_mode<synchronous>, transform_indices = @transform_11, window_bounds = array<i64: 128, 128>}, {pipeline_mode = #tpu.pipeline_mode<synchronous>, transform_indices = @transform_12, window_bounds = array<i64: 128, 256>}, {pipeline_mode = #tpu.pipeline_mode<synchronous>, transform_indices = @transform_13, window_bounds = array<i64: 128, 128>}, {pipeline_mode = #tpu.pipeline_mode<synchronous>, transform_indices = @transform_14, window_bounds = array<i64: 1, 128>}, {pipeline_mode = #tpu.pipeline_mode<synchronous>, transform_indices = @transform_15, window_bounds = array<i64: 128, 512>}, {pipeline_mode = #tpu.pipeline_mode<synchronous>, transform_indices = @transform_16, window_bounds = array<i64: 1, 512>}, {pipeline_mode = #tpu.pipeline_mode<synchronous>, transform_indices = @transform_17, window_bounds = array<i64: 512, 128>}, {pipeline_mode = #tpu.pipeline_mode<synchronous>, transform_indices = @transform_18, window_bounds = array<i64: 1, 128>}, {transform_indices = @transform_19, window_bounds = array<i64: 1, 128, 128>}]} {
    %c0 = arith.constant 0 : index
    %c0_0 = arith.constant 0 : index
    %c0_1 = arith.constant 0 : index
    %0 = vector.load %arg2[%c0, %c0_0, %c0_1] : memref<1x128x128xf32, #tpu.memory_space<vmem>>, vector<1x128x128xf32>
    %1 = vector.shape_cast %0 : vector<1x128x128xf32> to vector<128x128xf32>
    %c0_2 = arith.constant 0 : index
    %c0_3 = arith.constant 0 : index
    %c0_4 = arith.constant 0 : index
    %2 = vector.load %arg3[%c0_2, %c0_3, %c0_4] : memref<1x64x128xf32, #tpu.memory_space<vmem>>, vector<1x64x128xf32>
    %3 = vector.shape_cast %2 : vector<1x64x128xf32> to vector<64x128xf32>
    %c0_5 = arith.constant 0 : index
    %c0_6 = arith.constant 0 : index
    %4 = vector.load %arg6[%c0_5, %c0_6] : memref<128x128xbf16, #tpu.memory_space<vmem>>, vector<128x128xbf16>
    %c0_7 = arith.constant 0 : index
    %c0_8 = arith.constant 0 : index
    %5 = vector.load %arg7[%c0_7, %c0_8] : memref<1x128xf32, #tpu.memory_space<vmem>>, vector<1x128xf32>
    %c0_9 = arith.constant 0 : index
    %c0_10 = arith.constant 0 : index
    %6 = vector.load %arg8[%c0_9, %c0_10] : memref<1x128xf32, #tpu.memory_space<vmem>>, vector<1x128xf32>
    %cst = arith.constant dense<0.000000e+00> : vector<128xf32>
    %7 = vector.multi_reduction <add>, %1, %cst [1] : vector<128x128xf32> to vector<128xf32>
    %8 = vector.shape_cast %7 : vector<128xf32> to vector<128x1xf32>
    %cst_11 = arith.constant 1.280000e+02 : f32
    %9 = vector.broadcast %cst_11 : f32 to vector<128x1xf32>
    %10 = arith.divf %8, %9 : vector<128x1xf32>
    %11 = vector.broadcast %10 : vector<128x1xf32> to vector<128x128xf32>
    %12 = arith.subf %1, %11 : vector<128x128xf32>
    %13 = arith.mulf %12, %12 : vector<128x128xf32>
    %cst_12 = arith.constant dense<0.000000e+00> : vector<128xf32>
    %14 = vector.multi_reduction <add>, %13, %cst_12 [1] : vector<128x128xf32> to vector<128xf32>
    %15 = vector.shape_cast %14 : vector<128xf32> to vector<128x1xf32>
    %cst_13 = arith.constant 1.280000e+02 : f32
    %16 = vector.broadcast %cst_13 : f32 to vector<128x1xf32>
    %17 = arith.divf %15, %16 : vector<128x1xf32>
    %18 = vector.broadcast %10 : vector<128x1xf32> to vector<128x128xf32>
    %19 = arith.subf %1, %18 : vector<128x128xf32>
    %cst_14 = arith.constant 9.99999974E-6 : f32
    %20 = vector.broadcast %cst_14 : f32 to vector<128x1xf32>
    %21 = arith.addf %17, %20 : vector<128x1xf32>
    %22 = math.rsqrt %21 : vector<128x1xf32>
    %23 = vector.broadcast %22 : vector<128x1xf32> to vector<128x128xf32>
    %24 = arith.mulf %19, %23 : vector<128x128xf32>
    %25 = vector.broadcast %5 : vector<1x128xf32> to vector<128x128xf32>
    %26 = arith.mulf %24, %25 : vector<128x128xf32>
    %27 = vector.broadcast %6 : vector<1x128xf32> to vector<128x128xf32>
    %28 = arith.addf %26, %27 : vector<128x128xf32>
    %c0_15 = arith.constant 0 : index
    %c0_16 = arith.constant 0 : index
    %29 = vector.load %arg9[%c0_15, %c0_16] : memref<1x128xf32, #tpu.memory_space<vmem>>, vector<1x128xf32>
    %c0_17 = arith.constant 0 : index
    %c0_18 = arith.constant 0 : index
    %30 = vector.load %arg10[%c0_17, %c0_18] : memref<1x128xf32, #tpu.memory_space<vmem>>, vector<1x128xf32>
    %cst_19 = arith.constant dense<0.000000e+00> : vector<64xf32>
    %31 = vector.multi_reduction <add>, %3, %cst_19 [1] : vector<64x128xf32> to vector<64xf32>
    %32 = vector.shape_cast %31 : vector<64xf32> to vector<64x1xf32>
    %cst_20 = arith.constant 1.280000e+02 : f32
    %33 = vector.broadcast %cst_20 : f32 to vector<64x1xf32>
    %34 = arith.divf %32, %33 : vector<64x1xf32>
    %35 = vector.broadcast %34 : vector<64x1xf32> to vector<64x128xf32>
    %36 = arith.subf %3, %35 : vector<64x128xf32>
    %37 = arith.mulf %36, %36 : vector<64x128xf32>
    %cst_21 = arith.constant dense<0.000000e+00> : vector<64xf32>
    %38 = vector.multi_reduction <add>, %37, %cst_21 [1] : vector<64x128xf32> to vector<64xf32>
    %39 = vector.shape_cast %38 : vector<64xf32> to vector<64x1xf32>
    %cst_22 = arith.constant 1.280000e+02 : f32
    %40 = vector.broadcast %cst_22 : f32 to vector<64x1xf32>
    %41 = arith.divf %39, %40 : vector<64x1xf32>
    %42 = vector.broadcast %34 : vector<64x1xf32> to vector<64x128xf32>
    %43 = arith.subf %3, %42 : vector<64x128xf32>
    %cst_23 = arith.constant 9.99999974E-6 : f32
    %44 = vector.broadcast %cst_23 : f32 to vector<64x1xf32>
    %45 = arith.addf %41, %44 : vector<64x1xf32>
    %46 = math.rsqrt %45 : vector<64x1xf32>
    %47 = vector.broadcast %46 : vector<64x1xf32> to vector<64x128xf32>
    %48 = arith.mulf %43, %47 : vector<64x128xf32>
    %49 = vector.broadcast %29 : vector<1x128xf32> to vector<64x128xf32>
    %50 = arith.mulf %48, %49 : vector<64x128xf32>
    %51 = vector.broadcast %30 : vector<1x128xf32> to vector<64x128xf32>
    %52 = arith.addf %50, %51 : vector<64x128xf32>
    %53 = arith.truncf %28 : vector<128x128xf32> to vector<128x128xbf16>
    %c0_24 = arith.constant 0 : index
    %c0_25 = arith.constant 0 : index
    %54 = vector.load %arg13[%c0_24, %c0_25] : memref<128x128xbf16, #tpu.memory_space<vmem>>, vector<128x128xbf16>
    %cst_26 = arith.constant dense<0.000000e+00> : vector<128x128xf32>
    %55 = tpu.matmul %53, %54, %cst_26 {dimension_numbers = #tpu.dot_dimension_numbers<[1], [0], [0], [1], [0, 0, 1, 1], [], []>} : vector<128x128xbf16>, vector<128x128xbf16>, vector<128x128xf32> -> vector<128x128xf32>
    %c0_27 = arith.constant 0 : index
    %c0_28 = arith.constant 0 : index
    %56 = vector.load %arg4[%c0_27, %c0_28] : memref<128x128xf32, #tpu.memory_space<vmem>>, vector<128x128xf32>
    %57 = arith.addf %55, %56 : vector<128x128xf32>
    %58 = arith.truncf %52 : vector<64x128xf32> to vector<64x128xbf16>
    %c0_29 = arith.constant 0 : index
    %c0_30 = arith.constant 0 : index
    %59 = vector.load %arg14[%c0_29, %c0_30] : memref<128x256xbf16, #tpu.memory_space<vmem>>, vector<128x256xbf16>
    %cst_31 = arith.constant dense<0.000000e+00> : vector<64x256xf32>
    %60 = tpu.matmul %58, %59, %cst_31 {dimension_numbers = #tpu.dot_dimension_numbers<[1], [0], [0], [1], [0, 0, 1, 1], [], []>} : vector<64x128xbf16>, vector<128x256xbf16>, vector<64x256xf32> -> vector<64x256xf32>
    %c0_32 = arith.constant 0 : index
    %c0_33 = arith.constant 0 : index
    %61 = vector.load %arg5[%c0_32, %c0_33] : memref<64x256xf32, #tpu.memory_space<vmem>>, vector<64x256xf32>
    %62 = arith.addf %60, %61 : vector<64x256xf32>
    %63 = vector.extract_strided_slice %62 {offsets = [0, 0], sizes = [64, 128], strides = [1, 1]} : vector<64x256xf32> to vector<64x128xf32>
    %64 = vector.extract_strided_slice %62 {offsets = [0, 128], sizes = [64, 128], strides = [1, 1]} : vector<64x256xf32> to vector<64x128xf32>
    %cst_34 = arith.constant dense<0xFF800000> : vector<128xf32>
    %65 = vector.multi_reduction <maximumf>, %63, %cst_34 [0] : vector<64x128xf32> to vector<128xf32>
    %66 = vector.shape_cast %65 : vector<128xf32> to vector<1x128xf32>
    %67 = vector.broadcast %66 : vector<1x128xf32> to vector<64x128xf32>
    %68 = arith.subf %63, %67 : vector<64x128xf32>
    %69 = math.exp %68 : vector<64x128xf32>
    %cst_35 = arith.constant dense<0.000000e+00> : vector<128xf32>
    %70 = vector.multi_reduction <add>, %69, %cst_35 [0] : vector<64x128xf32> to vector<128xf32>
    %71 = vector.shape_cast %70 : vector<128xf32> to vector<1x128xf32>
    %72 = tpu.reciprocal %71 {approx = true} : vector<1x128xf32> -> vector<1x128xf32>
    %73 = vector.broadcast %72 : vector<1x128xf32> to vector<64x128xf32>
    %74 = arith.mulf %69, %73 : vector<64x128xf32>
    %cst_36 = arith.constant dense<0xFF800000> : vector<128xf32>
    %75 = vector.multi_reduction <maximumf>, %57, %cst_36 [1] : vector<128x128xf32> to vector<128xf32>
    %76 = vector.shape_cast %75 : vector<128xf32> to vector<128x1xf32>
    %77 = vector.broadcast %76 : vector<128x1xf32> to vector<128x128xf32>
    %78 = arith.subf %57, %77 : vector<128x128xf32>
    %79 = math.exp %78 : vector<128x128xf32>
    %80 = arith.truncf %79 : vector<128x128xf32> to vector<128x128xbf16>
    %cst_37 = arith.constant dense<0.000000e+00> : vector<128x128xf32>
    %81 = tpu.matmul %80, %4, %cst_37 {dimension_numbers = #tpu.dot_dimension_numbers<[1], [0], [0], [1], [0, 0, 1, 1], [], []>} : vector<128x128xbf16>, vector<128x128xbf16>, vector<128x128xf32> -> vector<128x128xf32>
    %82 = tpu.reciprocal %81 {approx = true} : vector<128x128xf32> -> vector<128x128xf32>
    %83 = arith.mulf %79, %82 : vector<128x128xf32>
    %84 = arith.truncf %74 : vector<64x128xf32> to vector<64x128xbf16>
    %85 = arith.truncf %64 : vector<64x128xf32> to vector<64x128xbf16>
    %cst_38 = arith.constant dense<0.000000e+00> : vector<128x128xf32>
    %86 = tpu.matmul %84, %85, %cst_38 {dimension_numbers = #tpu.dot_dimension_numbers<[0], [0], [1], [1], [0, 1, 1, 1], [], []>} : vector<64x128xbf16>, vector<64x128xbf16>, vector<128x128xf32> -> vector<128x128xf32>
    %87 = arith.extf %4 : vector<128x128xbf16> to vector<128x128xf32>
    %88 = arith.mulf %86, %87 : vector<128x128xf32>
    %89 = arith.truncf %88 : vector<128x128xf32> to vector<128x128xbf16>
    %c0_39 = arith.constant 0 : index
    %c0_40 = arith.constant 0 : index
    %90 = vector.load %arg15[%c0_39, %c0_40] : memref<128x128xbf16, #tpu.memory_space<vmem>>, vector<128x128xbf16>
    %cst_41 = arith.constant dense<0.000000e+00> : vector<128x128xf32>
    %91 = tpu.matmul %89, %90, %cst_41 {dimension_numbers = #tpu.dot_dimension_numbers<[1], [0], [0], [1], [0, 0, 1, 1], [], []>} : vector<128x128xbf16>, vector<128x128xbf16>, vector<128x128xf32> -> vector<128x128xf32>
    %92 = arith.truncf %83 : vector<128x128xf32> to vector<128x128xbf16>
    %93 = arith.truncf %91 : vector<128x128xf32> to vector<128x128xbf16>
    %cst_42 = arith.constant dense<0.000000e+00> : vector<128x128xf32>
    %94 = tpu.matmul %92, %93, %cst_42 {dimension_numbers = #tpu.dot_dimension_numbers<[1], [0], [0], [1], [0, 0, 1, 1], [], []>} : vector<128x128xbf16>, vector<128x128xbf16>, vector<128x128xf32> -> vector<128x128xf32>
    %c0_43 = arith.constant 0 : index
    %c0_44 = arith.constant 0 : index
    %95 = vector.load %arg16[%c0_43, %c0_44] : memref<1x128xf32, #tpu.memory_space<vmem>>, vector<1x128xf32>
    %96 = vector.broadcast %95 : vector<1x128xf32> to vector<128x128xf32>
    %97 = arith.addf %94, %96 : vector<128x128xf32>
    %98 = arith.addf %1, %97 : vector<128x128xf32>
    %c0_45 = arith.constant 0 : index
    %c0_46 = arith.constant 0 : index
    %99 = vector.load %arg11[%c0_45, %c0_46] : memref<1x128xf32, #tpu.memory_space<vmem>>, vector<1x128xf32>
    %c0_47 = arith.constant 0 : index
    %c0_48 = arith.constant 0 : index
    %100 = vector.load %arg12[%c0_47, %c0_48] : memref<1x128xf32, #tpu.memory_space<vmem>>, vector<1x128xf32>
    %cst_49 = arith.constant dense<0.000000e+00> : vector<128xf32>
    %101 = vector.multi_reduction <add>, %98, %cst_49 [1] : vector<128x128xf32> to vector<128xf32>
    %102 = vector.shape_cast %101 : vector<128xf32> to vector<128x1xf32>
    %cst_50 = arith.constant 1.280000e+02 : f32
    %103 = vector.broadcast %cst_50 : f32 to vector<128x1xf32>
    %104 = arith.divf %102, %103 : vector<128x1xf32>
    %105 = vector.broadcast %104 : vector<128x1xf32> to vector<128x128xf32>
    %106 = arith.subf %98, %105 : vector<128x128xf32>
    %107 = arith.mulf %106, %106 : vector<128x128xf32>
    %cst_51 = arith.constant dense<0.000000e+00> : vector<128xf32>
    %108 = vector.multi_reduction <add>, %107, %cst_51 [1] : vector<128x128xf32> to vector<128xf32>
    %109 = vector.shape_cast %108 : vector<128xf32> to vector<128x1xf32>
    %cst_52 = arith.constant 1.280000e+02 : f32
    %110 = vector.broadcast %cst_52 : f32 to vector<128x1xf32>
    %111 = arith.divf %109, %110 : vector<128x1xf32>
    %112 = vector.broadcast %104 : vector<128x1xf32> to vector<128x128xf32>
    %113 = arith.subf %98, %112 : vector<128x128xf32>
    %cst_53 = arith.constant 9.99999974E-6 : f32
    %114 = vector.broadcast %cst_53 : f32 to vector<128x1xf32>
    %115 = arith.addf %111, %114 : vector<128x1xf32>
    %116 = math.rsqrt %115 : vector<128x1xf32>
    %117 = vector.broadcast %116 : vector<128x1xf32> to vector<128x128xf32>
    %118 = arith.mulf %113, %117 : vector<128x128xf32>
    %119 = vector.broadcast %99 : vector<1x128xf32> to vector<128x128xf32>
    %120 = arith.mulf %118, %119 : vector<128x128xf32>
    %121 = vector.broadcast %100 : vector<1x128xf32> to vector<128x128xf32>
    %122 = arith.addf %120, %121 : vector<128x128xf32>
    %123 = arith.truncf %122 : vector<128x128xf32> to vector<128x128xbf16>
    %c0_54 = arith.constant 0 : index
    %c0_55 = arith.constant 0 : index
    %124 = vector.load %arg17[%c0_54, %c0_55] : memref<128x512xbf16, #tpu.memory_space<vmem>>, vector<128x512xbf16>
    %cst_56 = arith.constant dense<0.000000e+00> : vector<128x512xf32>
    %125 = tpu.matmul %123, %124, %cst_56 {dimension_numbers = #tpu.dot_dimension_numbers<[1], [0], [0], [1], [0, 0, 1, 1], [], []>} : vector<128x128xbf16>, vector<128x512xbf16>, vector<128x512xf32> -> vector<128x512xf32>
    %c0_57 = arith.constant 0 : index
    %c0_58 = arith.constant 0 : index
    %126 = vector.load %arg18[%c0_57, %c0_58] : memref<1x512xf32, #tpu.memory_space<vmem>>, vector<1x512xf32>
    %127 = vector.broadcast %126 : vector<1x512xf32> to vector<128x512xf32>
    %128 = arith.addf %125, %127 : vector<128x512xf32>
    %cst_59 = arith.constant 5.000000e-01 : f32
    %129 = vector.broadcast %cst_59 : f32 to vector<128x512xf32>
    %130 = arith.mulf %129, %128 : vector<128x512xf32>
    %cst_60 = arith.constant 0.707106769 : f32
    %131 = vector.broadcast %cst_60 : f32 to vector<128x512xf32>
    %132 = arith.mulf %128, %131 : vector<128x512xf32>
    %133 = math.erf %132 : vector<128x512xf32>
    %cst_61 = arith.constant 1.000000e+00 : f32
    %134 = vector.broadcast %cst_61 : f32 to vector<128x512xf32>
    %135 = arith.addf %134, %133 : vector<128x512xf32>
    %136 = arith.mulf %130, %135 : vector<128x512xf32>
    %137 = arith.truncf %136 : vector<128x512xf32> to vector<128x512xbf16>
    %c0_62 = arith.constant 0 : index
    %c0_63 = arith.constant 0 : index
    %138 = vector.load %arg19[%c0_62, %c0_63] : memref<512x128xbf16, #tpu.memory_space<vmem>>, vector<512x128xbf16>
    %cst_64 = arith.constant dense<0.000000e+00> : vector<128x128xf32>
    %139 = tpu.matmul %137, %138, %cst_64 {dimension_numbers = #tpu.dot_dimension_numbers<[1], [0], [0], [1], [0, 0, 1, 1], [], []>} : vector<128x512xbf16>, vector<512x128xbf16>, vector<128x128xf32> -> vector<128x128xf32>
    %c0_65 = arith.constant 0 : index
    %c0_66 = arith.constant 0 : index
    %140 = vector.load %arg20[%c0_65, %c0_66] : memref<1x128xf32, #tpu.memory_space<vmem>>, vector<1x128xf32>
    %141 = vector.broadcast %140 : vector<1x128xf32> to vector<128x128xf32>
    %142 = arith.addf %139, %141 : vector<128x128xf32>
    %143 = arith.addf %98, %142 : vector<128x128xf32>
    %c0_67 = arith.constant 0 : index
    %c0_68 = arith.constant 0 : index
    %c0_69 = arith.constant 0 : index
    %144 = vector.load %arg21[%c0_67, %c0_68, %c0_69] : memref<1x128x128xf32, #tpu.memory_space<vmem>>, vector<1x128x128xf32>
    %145 = vector.shape_cast %144 : vector<1x128x128xf32> to vector<128x128xf32>
    %146 = vector.shape_cast %143 : vector<128x128xf32> to vector<1x128x128xf32>
    tpu.vector_store %arg21[%c0_67, %c0_68, %c0_69], %146 {strides = array<i32>} : memref<1x128x128xf32, #tpu.memory_space<vmem>>, vector<1x128x128xf32>,
    return
  }
  func.func @transform_0(%arg0: i32, %arg1: i32) -> (i32, i32, i32) {
    %c0_i32 = arith.constant 0 : i32
    %c0_i32_0 = arith.constant 0 : i32
    return %arg0, %arg1, %c0_i32 : i32, i32, i32
  }
  func.func @transform_1(%arg0: i32, %arg1: i32) -> (i32, i32, i32) {
    %c0_i32 = arith.constant 0 : i32
    %c0_i32_0 = arith.constant 0 : i32
    %c0_i32_1 = arith.constant 0 : i32
    return %arg0, %c0_i32, %c0_i32_0 : i32, i32, i32
  }
  func.func @transform_2(%arg0: i32, %arg1: i32) -> (i32, i32) {
    %c0_i32 = arith.constant 0 : i32
    %c0_i32_0 = arith.constant 0 : i32
    return %arg1, %c0_i32 : i32, i32
  }
  func.func @transform_3(%arg0: i32, %arg1: i32) -> (i32, i32) {
    %c0_i32 = arith.constant 0 : i32
    %c0_i32_0 = arith.constant 0 : i32
    %c0_i32_1 = arith.constant 0 : i32
    return %c0_i32, %c0_i32_0 : i32, i32
  }
  func.func @transform_4(%arg0: i32, %arg1: i32) -> (i32, i32) {
    %c0_i32 = arith.constant 0 : i32
    %c0_i32_0 = arith.constant 0 : i32
    %c0_i32_1 = arith.constant 0 : i32
    return %c0_i32, %c0_i32_0 : i32, i32
  }
  func.func @transform_5(%arg0: i32, %arg1: i32) -> (i32, i32) {
    %c0_i32 = arith.constant 0 : i32
    %c0_i32_0 = arith.constant 0 : i32
    %c0_i32_1 = arith.constant 0 : i32
    return %c0_i32, %c0_i32_0 : i32, i32
  }
  func.func @transform_6(%arg0: i32, %arg1: i32) -> (i32, i32) {
    %c0_i32 = arith.constant 0 : i32
    %c0_i32_0 = arith.constant 0 : i32
    %c0_i32_1 = arith.constant 0 : i32
    return %c0_i32, %c0_i32_0 : i32, i32
  }
  func.func @transform_7(%arg0: i32, %arg1: i32) -> (i32, i32) {
    %c0_i32 = arith.constant 0 : i32
    %c0_i32_0 = arith.constant 0 : i32
    %c0_i32_1 = arith.constant 0 : i32
    return %c0_i32, %c0_i32_0 : i32, i32
  }
  func.func @transform_8(%arg0: i32, %arg1: i32) -> (i32, i32) {
    %c0_i32 = arith.constant 0 : i32
    %c0_i32_0 = arith.constant 0 : i32
    %c0_i32_1 = arith.constant 0 : i32
    return %c0_i32, %c0_i32_0 : i32, i32
  }
  func.func @transform_9(%arg0: i32, %arg1: i32) -> (i32, i32) {
    %c0_i32 = arith.constant 0 : i32
    %c0_i32_0 = arith.constant 0 : i32
    %c0_i32_1 = arith.constant 0 : i32
    return %c0_i32, %c0_i32_0 : i32, i32
  }
  func.func @transform_10(%arg0: i32, %arg1: i32) -> (i32, i32) {
    %c0_i32 = arith.constant 0 : i32
    %c0_i32_0 = arith.constant 0 : i32
    %c0_i32_1 = arith.constant 0 : i32
    return %c0_i32, %c0_i32_0 : i32, i32
  }
  func.func @transform_11(%arg0: i32, %arg1: i32) -> (i32, i32) {
    %c0_i32 = arith.constant 0 : i32
    %c0_i32_0 = arith.constant 0 : i32
    %c0_i32_1 = arith.constant 0 : i32
    return %c0_i32, %c0_i32_0 : i32, i32
  }
  func.func @transform_12(%arg0: i32, %arg1: i32) -> (i32, i32) {
    %c0_i32 = arith.constant 0 : i32
    %c0_i32_0 = arith.constant 0 : i32
    %c0_i32_1 = arith.constant 0 : i32
    return %c0_i32, %c0_i32_0 : i32, i32
  }
  func.func @transform_13(%arg0: i32, %arg1: i32) -> (i32, i32) {
    %c0_i32 = arith.constant 0 : i32
    %c0_i32_0 = arith.constant 0 : i32
    %c0_i32_1 = arith.constant 0 : i32
    return %c0_i32, %c0_i32_0 : i32, i32
  }
  func.func @transform_14(%arg0: i32, %arg1: i32) -> (i32, i32) {
    %c0_i32 = arith.constant 0 : i32
    %c0_i32_0 = arith.constant 0 : i32
    %c0_i32_1 = arith.constant 0 : i32
    return %c0_i32, %c0_i32_0 : i32, i32
  }
  func.func @transform_15(%arg0: i32, %arg1: i32) -> (i32, i32) {
    %c0_i32 = arith.constant 0 : i32
    %c0_i32_0 = arith.constant 0 : i32
    %c0_i32_1 = arith.constant 0 : i32
    return %c0_i32, %c0_i32_0 : i32, i32
  }
  func.func @transform_16(%arg0: i32, %arg1: i32) -> (i32, i32) {
    %c0_i32 = arith.constant 0 : i32
    %c0_i32_0 = arith.constant 0 : i32
    %c0_i32_1 = arith.constant 0 : i32
    return %c0_i32, %c0_i32_0 : i32, i32
  }
  func.func @transform_17(%arg0: i32, %arg1: i32) -> (i32, i32) {
    %c0_i32 = arith.constant 0 : i32
    %c0_i32_0 = arith.constant 0 : i32
    %c0_i32_1 = arith.constant 0 : i32
    return %c0_i32, %c0_i32_0 : i32, i32
  }
  func.func @transform_18(%arg0: i32, %arg1: i32) -> (i32, i32) {
    %c0_i32 = arith.constant 0 : i32
    %c0_i32_0 = arith.constant 0 : i32
    %c0_i32_1 = arith.constant 0 : i32
    return %c0_i32, %c0_i32_0 : i32, i32
  }
  func.func @transform_19(%arg0: i32, %arg1: i32) -> (i32, i32, i32) {
    %c0_i32 = arith.constant 0 : i32
    %c0_i32_0 = arith.constant 0 : i32
    return %arg0, %arg1, %c0_i32 : i32, i32, i32
  }
}

</mosaic_0001>

<bundles_post_ra>
// kernel: cpa43_forward.1
= control target key start
LH: loop header
LB: loop body
LE: loop exit
PB: predicated region body
PF: predicated region fallthrough
CT: control target
= control target key end

     0   :  { %s8464_s0 = inlined_call_operand.hbm [shape: f32[2,256,128], index: 0, kind: input, shape index: {}]   ;;  %s8465_s1 = inlined_call_operand.hbm [shape: f32[2,64,128], index: 1, kind: input, shape index: {}]   ;;  %s8466_s2 = inlined_call_operand.hbm [shape: f32[256,128], index: 2, kind: input, shape index: {}]   ;;  %s8467_s3 = inlined_call_operand.hbm [shape: f32[64,256], index: 3, kind: input, shape index: {}]   ;;  %s8468_s4 = inlined_call_operand.hbm [shape: bf16[128,128], index: 4, kind: input, shape index: {}]   ;;  %s8469_s5 = inlined_call_operand.hbm [shape: f32[1,128], index: 5, kind: input, shape index: {}]   ;;  %s8470_s6 = inlined_call_operand.hbm [shape: f32[1,128], index: 6, kind: input, shape index: {}]   ;;  %s8471_s7 = inlined_call_operand.hbm [shape: f32[1,128], index: 7, kind: input, shape index: {}]   ;;  %s8472_s8 = inlined_call_operand.hbm [shape: f32[1,128], index: 8, kind: input, shape index: {}]   ;;  %s8473_s9 = inlined_call_operand.hbm [shape: f32[1,128], index: 9, kind: input, shape index: {}]   ;;  %s8474_s10 = inlined_call_operand.hbm [shape: f32[1,128], index: 10, kind: input, shape index: {}]   ;;  %s8475_s11 = inlined_call_operand.vmem [shape: bf16[128,128], index: 11, kind: input, shape index: {}]   ;;  %s8476_s12 = inlined_call_operand.hbm [shape: bf16[128,256], index: 12, kind: input, shape index: {}]   ;;  %s8477_s13 = inlined_call_operand.hbm [shape: bf16[128,128], index: 13, kind: input, shape index: {}]   ;;  %s8478_s14 = inlined_call_operand.hbm [shape: f32[1,128], index: 14, kind: input, shape index: {}]   ;;  %s8479_s15 = inlined_call_operand.hbm [shape: bf16[128,512], index: 15, kind: input, shape index: {}]   ;;  %s8480_s16 = inlined_call_operand.hbm [shape: f32[1,512], index: 16, kind: input, shape index: {}]   ;;  %s8481_s17 = inlined_call_operand.hbm [shape: bf16[512,128], index: 17, kind: input, shape index: {}]   ;;  %s8482_s18 = inlined_call_operand.hbm [shape: f32[1,128], index: 18, kind: input, shape index: {}]   ;;  %s8483_s19 = inlined_call_operand.hbm [shape: f32[2,256,128], index: 19, kind: output, shape index: {}]  }
   0x1   :  { %8548 = sst [smem:[#allocation77_spill]] %s8464_s0 }
   0x2   :  { %8549 = sst [smem:[#allocation78_spill]] %s8465_s1 }
   0x3   :  { %8550 = sst [smem:[#allocation79_spill]] %s8466_s2 }
   0x4   :  { %8551 = sst [smem:[#allocation80_spill]] %s8467_s3 }
   0x5   :  { %8552 = sst [smem:[#allocation81_spill]] %s8468_s4 }
   0x6   :  { %8553 = sst [smem:[#allocation82_spill]] %s8469_s5 }
   0x7   :  { %8554 = sst [smem:[#allocation83_spill]] %s8470_s6 }
   0x8   :  { %8555 = sst [smem:[#allocation84_spill]] %s8471_s7 }
   0x9   :  { %8556 = sst [smem:[#allocation85_spill]] %s8472_s8 }
   0xa   :  { %8557 = sst [smem:[#allocation86_spill]] %s8473_s9 }
   0xb   :  { %8558 = sst [smem:[#allocation87_spill]] %s8474_s10 }
   0xc   :  { %8559 = sst [smem:[#allocation88_spill]] %s8475_s11 }
   0xd   :  { %8560 = sst [smem:[#allocation89_spill]] %s8476_s12 }
   0xe   :  { %8561 = sst [smem:[#allocation90_spill]] %s8477_s13 }
   0xf   :  { %8562 = sst [smem:[#allocation91_spill]] %s8478_s14 }
  0x10   :  { %8563 = sst [smem:[#allocation92_spill]] %s8479_s15 }
  0x11   :  { %8564 = sst [smem:[#allocation93_spill]] %s8480_s16 }
  0x12   :  { %8565 = sst [smem:[#allocation94_spill]] %s8481_s17 }
  0x13   :  { %8566 = sst [smem:[#allocation95_spill]] %s8482_s18 }
  0x14   :  { %8567 = sst [smem:[#allocation96_spill]] %s8483_s19 }
  0x15   :  { %24 = vsyncpa [#allocation3], 0 }
  0x16   :  { %26 = vsyncpa [#allocation3 + $0x1], 0 }
  0x17   :  { %27 = vsyncpa [#allocation6], 0 }
  0x18   :  { %29 = vsyncpa [#allocation6 + $0x1], 0 }
  0x19   :  { %30 = vsyncpa [#allocation9], 0 }
  0x1a   :  { %31 = vsyncpa [#allocation12], 0 }
  0x1b   :  { %32 = vsyncpa [#allocation15], 0 }
  0x1c   :  { %33 = vsyncpa [#allocation18], 0 }
  0x1d   :  { %34 = vsyncpa [#allocation21], 0 }
  0x1e   :  { %35 = vsyncpa [#allocation24], 0 }
  0x1f   :  { %36 = vsyncpa [#allocation27], 0 }
  0x20   :  { %37 = vsyncpa [#allocation30], 0 }
  0x21   :  { %38 = vsyncpa [#allocation4], 0 }
  0x22   :  { %40 = vsyncpa [#allocation4 + $0x1], 0  ;;  %s6382_s0 = smov 0   ;;  %s6384_s30 = smov 0  }
  0x23   :  { %s6386_s20 = smov 0   ;;  %s6388_s21 = smov 0  }
  0x24   :  { %s6390_s1 = smov 0   ;;  %s6392_s22 = smov 0  }
  0x25   :  { %s6394_s2 = smov 0   ;;  %s6396_s23 = smov 0  }
  0x26   :  { %s6398_s24 = smov 0   ;;  %s6400_s25 = smov 0  }
  0x27   :  { %s6402_s3 = smov 0   ;;  %s6404_s26 = smov 0  }
  0x28   :  { %s6406_s27 = smov 0   ;;  %s6408_s28 = smov 0  }
  0x29 LB: > { %8568 = sst [smem:[#allocation44_spill]] %s6200_s0  ;;  %s6453_s29 = sadd.s32 4294967295, %s6252_s28   ;;  %s6252_s28 = sphi %s6408_s28, %s46_s28   ;;  %s6248_s27 = sphi %s6406_s27, %s8729_s27   ;;  %s6244_s26 = sphi %s6404_s26, %s8721_s26   ;;  %s6240_s3 = sphi %s6402_s3, %s8728_s3   ;;  %s6236_s25 = sphi %s6400_s25, %s8720_s25   ;;  %s6232_s24 = sphi %s6398_s24, %s8727_s24   ;;  %s6228_s23 = sphi %s6396_s23, %s8719_s23   ;;  %s6224_s2 = sphi %s6394_s2, %s8718_s2   ;;  %s6220_s22 = sphi %s6392_s22, %s8726_s22   ;;  %s6216_s1 = sphi %s6390_s1, %s8725_s1   ;;  %s6212_s21 = sphi %s6388_s21, %s8724_s21   ;;  %s6208_s20 = sphi %s6386_s20, %s8723_s20   ;;  %s6204_s30 = sphi %s6384_s30, %s8717_s30   ;;  %s6200_s0 = sphi %s6382_s0, %s8716_s0  }
  0x2a   : > { %8569 = sst [smem:[#allocation45_spill]] %s6204_s30  ;;  %p4287_p0 = scmp.ge.s32.totalorder %s6252_s28, 1 }
  0x2b   : > { %8570 = sst [smem:[#allocation46_spill]] %s6208_s20  ;;  %p8503_p1 = scmp.eq.s32.totalorder %s6453_s29, 0 }
  0x2c   : > { %8571 = sst [smem:[#allocation47_spill]] %s6224_s2  ;;  %p507_p2 = scmp.lt.s32.totalorder %s6252_s28, 5 }
  0x2d   : > { %8572 = sst [smem:[#allocation48_spill]] %s6228_s23  ;;  %s6255_s0 = smov [#allocation11]  }
  0x2e   : > { %8573 = sst [smem:[#allocation49_spill]] %s6232_s24  ;;  %p6458_p3 = pnand %p4287_p0, %p507_p2 }
  0x2f   : > { %8574 = sst [smem:[#allocation50_spill]] %s6236_s25  ;;  %s546_s30 = sshll.u32 %s6255_s0, 4  ;;  %s6472_s30 = int_to_ptr.vmem [resolvable:$true] %s546_s30 }
  0x30   : > { %8575 = sst [smem:[#allocation51_spill]] %s6240_s3  ;;  %s6254_s3 = smov [#allocation8]  }
  0x31   : > { %8576 = sst [smem:[#allocation52_spill]] %s6244_s26  ;;  %s519_s25 = sshll.u32 %s6254_s3, 4  ;;  %s6462_s25 = int_to_ptr.vmem [resolvable:$true] %s519_s25 }
  0x32   : > { %s8577_s19 = scalar_select %p6458_p3, 1, 0 }
  0x33   : > { %p4886_p4 = pneg %p6458_p3  ;;  %s6256_s20 = smov [#allocation14]  }
  0x34   : > { %8578 = sst [smem:[#allocation53_spill]] %s8577_s19  ;;  %s6474_s2 = sshll.u32 %s6256_s20, 4  ;;  %s569_s2 = int_to_ptr.vmem [resolvable:$true] %s6474_s2 }
  0x35   : > { %p6468_p5 = pnand %p4886_p4, %p8503_p1  ;;  %s8580_s3 = sld [smem:[#allocation80_spill]] }
  0x37   : > { %s8579_s11 = scalar_select %p6468_p5, 1, 0 }
  0x38   : > { %p6484_p7 = pneg %p6468_p5 }
  0x3b   : > { %s8581_s18 = smov %s8580_s3  ;;  %s5556_s26 = scalar_lea.hbm %s8580_s3, 2048 }
  0x3c   : > { %p5557_p6 = scmp.ne.s32.totalorder %s8581_s18, %s5556_s26  ;;  %p5563_p10 = scmp.lt.u32.totalorder %s5556_s26, %s8581_s18 }
  0x3e   : > { %p5559_p8 = pnand %p6484_p7, %p5557_p6 }
  0x40   : > { %p5560_p9 = pneg %p5559_p8 }
  0x42   : > { %p5565_p11 = pnand %p5563_p10, %p5560_p9 }
  0x44   : > { %5568 = shalt.err (!%p5565_p11)
}
  0x45   : > { %s5569_s17 = scalar_lea.vmem %s6462_s25, 2048  ;;  %p5577_p2 = scmp.lt.s32.totalorder %s6462_s25, %s6462_s25 }
  0x46   : > { %p5570_p12 = scmp.ne.s32.totalorder %s6462_s25, %s5569_s17  ;;  %p5578_p4 = scmp.lt.s32.totalorder %s5569_s17, %s5569_s17 }
  0x48   : > { %p5572_p13 = pnand %p5570_p12, %p6484_p7  ;;  %p5579_p6 = por %p5578_p4, %p5577_p2 }
  0x4a   : > { %p5573_p0 = pneg %p5572_p13 }
  0x4c   : > { %p5580_p8 = pnand %p5579_p6, %p5573_p0 }
  0x4e   : > { %5583 = shalt.err (!%p5580_p8)
}
  0x4f   : > { %s8505_s19 = smov 256   ;;  %s8506_s23 = smov 16  }
  0x50   : > { %4889 = dma.hbm_to_vmem [thread:$0]  (!%p6468_p5), %s8581_s18, 2048, %s6462_s25, [#allocation9], %s8505_s19, %s8505_s19, %s8506_s23  }
  0x51   : > { %s8583_s5 = sld [smem:[#allocation82_spill]] }
  0x57   : > { %s5584_s20 = scalar_lea.hbm %s8583_s5, 16 }
  0x58   : > { %p5585_p9 = scmp.ne.s32.totalorder %s8583_s5, %s5584_s20  ;;  %p5591_p12 = scmp.lt.u32.totalorder %s5584_s20, %s8583_s5 }
  0x5a   : > { %p5587_p10 = pnand %p5585_p9, %p6484_p7 }
  0x5c   : > { %p5588_p11 = pneg %p5587_p10 }
  0x5e   : > { %p5593_p13 = pnand %p5591_p12, %p5588_p11 }
  0x60   : > { %5596 = shalt.err (!%p5593_p13)
}
  0x61   : > { %s5597_s25 = scalar_lea.vmem %s6472_s30, 16  ;;  %s5604_s13 = scalar_lea.vmem %s6472_s30, 32 }
  0x62   : > { %p5598_p0 = scmp.ne.s32.totalorder %s6472_s30, %s5597_s25  ;;  %p5605_p6 = scmp.lt.s32.totalorder %s6472_s30, %s6472_s30 }
  0x63   : > { %p5606_p8 = scmp.lt.s32.totalorder %s5604_s13, %s5597_s25 }
  0x64   : > { %p5600_p2 = pnand %p5598_p0, %p6484_p7 }
  0x65   : > { %p5607_p9 = por %p5606_p8, %p5605_p6 }
  0x66   : > { %p5601_p4 = pneg %p5600_p2 }
  0x68   : > { %p5608_p10 = pnand %p5607_p9, %p5601_p4 }
  0x6a   : > { %5611 = shalt.err (!%p5608_p10)
}
  0x6b   : > { %4895 = dma.hbm_to_vmem [thread:$0]  (!%p6468_p5), %s8583_s5, 16, %s6472_s30, [#allocation12]  }
  0x6c   : > { %s8584_s7 = sld [smem:[#allocation84_spill]] }
  0x72   : > { %s5612_s3 = scalar_lea.hbm %s8584_s7, 16 }
  0x73   : > { %p5613_p11 = scmp.ne.s32.totalorder %s8584_s7, %s5612_s3  ;;  %p5619_p0 = scmp.lt.u32.totalorder %s5612_s3, %s8584_s7 }
  0x75   : > { %p5615_p12 = pnand %p5613_p11, %p6484_p7 }
  0x77   : > { %p5616_p13 = pneg %p5615_p12 }
  0x79   : > { %p5621_p2 = pnand %p5619_p0, %p5616_p13 }
  0x7b   : > { %5624 = shalt.err (!%p5621_p2)
}
  0x7c   : > { %s5625_s13 = scalar_lea.vmem %s569_s2, 16  ;;  %s5632_s30 = scalar_lea.vmem %s569_s2, 32 }
  0x7d   : > { %p5626_p4 = scmp.ne.s32.totalorder %s569_s2, %s5625_s13  ;;  %p5633_p9 = scmp.lt.s32.totalorder %s569_s2, %s569_s2 }
  0x7e   : > { %p5634_p10 = scmp.lt.s32.totalorder %s5632_s30, %s5625_s13 }
  0x7f   : > { %p5628_p6 = pnand %p5626_p4, %p6484_p7 }
  0x80   : > { %p5635_p1 = por %p5634_p10, %p5633_p9 }
  0x81   : > { %p5629_p8 = pneg %p5628_p6 }
  0x83   : > { %p5636_p3 = pnand %p5635_p1, %p5629_p8 }
  0x85   : > { %5639 = shalt.err (!%p5636_p3)
}
  0x86   : > { %4901 = dma.hbm_to_vmem [thread:$0]  (!%p6468_p5), %s8584_s7, 16, %s569_s2, [#allocation15]  }
  0x87   : > { %s6259_s24 = smov [#allocation17]   ;;  %s6260_s3 = smov [#allocation20]  }
  0x88   : > { %s590_s26 = sshll.u32 %s6259_s24, 4  ;;  %s614_s0 = sshll.u32 %s6260_s3, 4  ;;  %s591_s26 = int_to_ptr.vmem [resolvable:$true] %s590_s26  ;;  %s615_s0 = int_to_ptr.vmem [resolvable:$true] %s614_s0 }
  0x89   : > { %s8585_s9 = sld [smem:[#allocation86_spill]] }
  0x8f   : > { %s5640_s25 = scalar_lea.hbm %s8585_s9, 16 }
  0x90   : > { %p5641_p1 = scmp.ne.s32.totalorder %s8585_s9, %s5640_s25  ;;  %p5647_p12 = scmp.lt.u32.totalorder %s5640_s25, %s8585_s9 }
  0x92   : > { %p5643_p3 = pnand %p5641_p1, %p6484_p7 }
  0x94   : > { %p5644_p11 = pneg %p5643_p3 }
  0x96   : > { %p5649_p13 = pnand %p5647_p12, %p5644_p11 }
  0x98   : > { %5652 = shalt.err (!%p5649_p13)
}
  0x99   : > { %s5653_s2 = scalar_lea.vmem %s591_s26, 16  ;;  %s5660_s10 = scalar_lea.vmem %s591_s26, 32 }
  0x9a   : > { %p5654_p0 = scmp.ne.s32.totalorder %s591_s26, %s5653_s2  ;;  %p5661_p6 = scmp.lt.s32.totalorder %s591_s26, %s591_s26 }
  0x9b   : > { %p5662_p8 = scmp.lt.s32.totalorder %s5660_s10, %s5653_s2 }
  0x9c   : > { %p5656_p2 = pnand %p5654_p0, %p6484_p7 }
  0x9d   : > { %p5663_p9 = por %p5662_p8, %p5661_p6 }
  0x9e   : > { %p5657_p4 = pneg %p5656_p2 }
  0xa0   : > { %p5664_p10 = pnand %p5663_p9, %p5657_p4 }
  0xa2   : > { %5667 = shalt.err (!%p5664_p10)
}
  0xa3   : > { %4907 = dma.hbm_to_vmem [thread:$0]  (!%p6468_p5), %s8585_s9, 16, %s591_s26, [#allocation18]  }
  0xa4   : > { %s8586_s12 = sld [smem:[#allocation89_spill]] }
  0xaa   : > { %s5668_s17 = scalar_lea.hbm %s8586_s12, 2048 }
  0xab   : > { %p5669_p1 = scmp.ne.s32.totalorder %s8586_s12, %s5668_s17  ;;  %p5675_p12 = scmp.lt.u32.totalorder %s5668_s17, %s8586_s12 }
  0xad   : > { %p5671_p3 = pnand %p5669_p1, %p6484_p7 }
  0xaf   : > { %p5672_p11 = pneg %p5671_p3 }
  0xb1   : > { %p5677_p13 = pnand %p5675_p12, %p5672_p11 }
  0xb3   : > { %5680 = shalt.err (!%p5677_p13)
}
  0xb4   : > { %s5681_s2 = scalar_lea.vmem %s615_s0, 2048  ;;  %p5689_p6 = scmp.lt.s32.totalorder %s615_s0, %s615_s0 }
  0xb5   : > { %p5682_p0 = scmp.ne.s32.totalorder %s615_s0, %s5681_s2  ;;  %p5690_p8 = scmp.lt.s32.totalorder %s5681_s2, %s5681_s2 }
  0xb7   : > { %p5684_p2 = pnand %p5682_p0, %p6484_p7  ;;  %p5691_p9 = por %p5690_p8, %p5689_p6 }
  0xb9   : > { %p5685_p4 = pneg %p5684_p2 }
  0xbb   : > { %p5692_p10 = pnand %p5691_p9, %p5685_p4 }
  0xbd   : > { %5695 = shalt.err (!%p5692_p10)
}
  0xbe   : > { %s8512_s26 = smov 128   ;;  %s8514_s10 = smov 8  }
  0xbf   : > { %4913 = dma.hbm_to_vmem [thread:$0]  (!%p6468_p5), %s8586_s12, 2048, %s615_s0, [#allocation21], %s8512_s26, %s8512_s26, %s8514_s10  }
  0xc0   : > { %s6263_s19 = smov [#allocation23]   ;;  %s6264_s17 = smov [#allocation26]  }
  0xc1   : > { %s641_s20 = sshll.u32 %s6263_s19, 4  ;;  %s665_s25 = sshll.u32 %s6264_s17, 4  ;;  %s642_s20 = int_to_ptr.vmem [resolvable:$true] %s641_s20  ;;  %s666_s25 = int_to_ptr.vmem [resolvable:$true] %s665_s25 }
  0xc2   : > { %s8587_s14 = sld [smem:[#allocation91_spill]] }
  0xc8   : > { %s5696_s8 = scalar_lea.hbm %s8587_s14, 16 }
  0xc9   : > { %p5697_p1 = scmp.ne.s32.totalorder %s8587_s14, %s5696_s8  ;;  %p5703_p12 = scmp.lt.u32.totalorder %s5696_s8, %s8587_s14 }
  0xcb   : > { %p5699_p3 = pnand %p5697_p1, %p6484_p7 }
  0xcd   : > { %p5700_p11 = pneg %p5699_p3 }
  0xcf   : > { %p5705_p13 = pnand %p5703_p12, %p5700_p11 }
  0xd1   : > { %5708 = shalt.err (!%p5705_p13)
}
  0xd2   : > { %s5709_s0 = scalar_lea.vmem %s642_s20, 16  ;;  %s5716_s24 = scalar_lea.vmem %s642_s20, 32 }
  0xd3   : > { %p5710_p0 = scmp.ne.s32.totalorder %s642_s20, %s5709_s0  ;;  %p5717_p6 = scmp.lt.s32.totalorder %s642_s20, %s642_s20 }
  0xd4   : > { %p5718_p8 = scmp.lt.s32.totalorder %s5716_s24, %s5709_s0 }
  0xd5   : > { %p5712_p2 = pnand %p5710_p0, %p6484_p7 }
  0xd6   : > { %p5719_p9 = por %p5718_p8, %p5717_p6 }
  0xd7   : > { %p5713_p4 = pneg %p5712_p2 }
  0xd9   : > { %p5720_p10 = pnand %p5719_p9, %p5713_p4 }
  0xdb   : > { %5723 = shalt.err (!%p5720_p10)
}
  0xdc   : > { %4919 = dma.hbm_to_vmem [thread:$0]  (!%p6468_p5), %s8587_s14, 16, %s642_s20, [#allocation24]  }
  0xdd   : > { %s8588_s16 = sld [smem:[#allocation93_spill]] }
  0xe3   : > { %s5724_s19 = scalar_lea.hbm %s8588_s16, 64 }
  0xe4   : > { %p5725_p1 = scmp.ne.s32.totalorder %s8588_s16, %s5724_s19  ;;  %p5731_p12 = scmp.lt.u32.totalorder %s5724_s19, %s8588_s16 }
  0xe6   : > { %p5727_p3 = pnand %p5725_p1, %p6484_p7 }
  0xe8   : > { %p5728_p11 = pneg %p5727_p3 }
  0xea   : > { %p5733_p13 = pnand %p5731_p12, %p5728_p11 }
  0xec   : > { %5736 = shalt.err (!%p5733_p13)
}
  0xed   : > { %s5737_s2 = scalar_lea.vmem %s666_s25, 64  ;;  %p5745_p6 = scmp.lt.s32.totalorder %s666_s25, %s666_s25 }
  0xee   : > { %p5738_p0 = scmp.ne.s32.totalorder %s666_s25, %s5737_s2  ;;  %p5746_p8 = scmp.lt.s32.totalorder %s5737_s2, %s5737_s2 }
  0xf0   : > { %p5740_p2 = pnand %p5738_p0, %p6484_p7  ;;  %p5747_p9 = por %p5746_p8, %p5745_p6 }
  0xf2   : > { %p5741_p4 = pneg %p5740_p2 }
  0xf4   : > { %p5748_p10 = pnand %p5747_p9, %p5741_p4 }
  0xf6   : > { %5751 = shalt.err (!%p5748_p10)
}
  0xf7   : > { %4925 = dma.hbm_to_vmem [thread:$0]  (!%p6468_p5), %s8588_s16, 64, %s666_s25, [#allocation27]  }
  0xf8   : > { %p8508_p1 = scmp.eq.s32.totalorder %s6252_s28, 0  ;;  %p100_p3 = scmp.ne.s32.totalorder %s6220_s22, %s6216_s1 }
  0xf9   : > { %p106_p11 = scmp.ne.s32.totalorder %s6216_s1, %s6212_s21  ;;  %p8507_p12 = scmp.lt.s32.totalorder %s6252_s28, 4 }
  0xfa   : > { %s723_s3 = sand.u32 1, %s6252_s28   ;;  %p102_p13 = por %p100_p3, %p8508_p1 }
  0xfb   : > { %p8589_p0 = scmp.eq.s32.totalorder %s6453_s29, 0  ;;  %s725_s7 = sand.u32 1, %s6220_s22  }
  0xfc   : > { %s4308_s19 = sshll.u32 %s725_s7, 6  ;;  %s4460_s17 = sshll.u32 %s6248_s27, 10 }
  0xfd   : > { %p6639_p2 = por %p106_p11, %p8589_p0  ;;  %s8591_s30 = sld [smem:[#allocation78_spill]] }
  0xfe   : > { %s727_s21 = scalar_lea.vmem [#allocation5], %s4308_s19  ;;  %p6652_p4 = pnand %p8507_p12, %p102_p13 }
  0xff   : > { %s8590_s5 = scalar_select %p6639_p2, 1, 0 }
 0x100   : > { %s734_s20 = sshll.u32 %s727_s21, 4  ;;  %s6265_s7 = smov [#allocation10]   ;;  %s6656_s20 = int_to_ptr.vmem [resolvable:$true] %s734_s20 }
 0x101   : > { %s6658_s23 = sshll.u32 %s6265_s7, 4  ;;  %p5754_p8 = pneg %p6652_p4  ;;  %s533_s23 = int_to_ptr.vmem [resolvable:$true] %s6658_s23 }
 0x103   : > { %s8592_s8 = smov %s8591_s30  ;;  %s6648_s2 = scalar_lea.hbm %s8591_s30, %s4460_s17 }
 0x104   : > { %s6660_s17 = scalar_lea.sflag [#allocation6], %s723_s3  ;;  %s5752_s13 = scalar_lea.hbm %s6648_s2, 1024 }
 0x105   : > { %p5753_p6 = scmp.ne.s32.totalorder %s6648_s2, %s5752_s13  ;;  %s5757_s30 = scalar_lea.hbm %s8592_s8, 2048 }
 0x106   : > { %p5758_p3 = scmp.lt.u32.totalorder %s6648_s2, %s8592_s8  ;;  %p5759_p11 = scmp.lt.u32.totalorder %s5757_s30, %s5752_s13 }
 0x107   : > { %p5755_p9 = pnand %p5754_p8, %p5753_p6  ;;  %p5761_p0 = scmp.lt.u32.totalorder %s5752_s13, %s6648_s2 }
 0x108   : > { %p5760_p13 = por %p5759_p11, %p5758_p3 }
 0x109   : > { %p5756_p10 = pneg %p5755_p9 }
 0x10a   : > { %p5762_p12 = por %p5761_p0, %p5760_p13 }
 0x10c   : > { %p5763_p1 = pnand %p5762_p12, %p5756_p10 }
 0x10e   : > { %5766 = shalt.err (!%p5763_p1)
}
 0x10f   : > { %s5767_s3 = scalar_lea.vmem %s6656_s20, 1024  ;;  %s6266_s7 = smov [#allocation5]  }
 0x110   : > { %p5768_p6 = scmp.ne.s32.totalorder %s6656_s20, %s5767_s3  ;;  %s5772_s19 = sshll.u32 %s6266_s7, 4  ;;  %s5773_s19 = int_to_ptr.vmem [resolvable:$false] %s5772_s19 }
 0x111   : > { %s5774_s24 = scalar_lea.vmem %s5773_s19, 2048  ;;  %p5775_p5 = scmp.lt.s32.totalorder %s6656_s20, %s5773_s19 }
 0x112   : > { %p5770_p9 = pnand %p5768_p6, %p5754_p8  ;;  %p5776_p3 = scmp.lt.s32.totalorder %s5774_s24, %s5767_s3 }
 0x114   : > { %p5771_p2 = pneg %p5770_p9  ;;  %p5777_p11 = por %p5776_p3, %p5775_p5 }
 0x116   : > { %p5778_p13 = pnand %p5777_p11, %p5771_p2 }
 0x118   : > { %5781 = shalt.err (!%p5778_p13)
}
 0x119   : > { %4938 = dma.hbm_to_vmem [thread:$0]  (!%p6652_p4), %s6648_s2, 1024, %s6656_s20, %s6660_s17, %s8512_s26, %s8512_s26, %s8514_s10  }
 0x11a   : > { %s8594_s4 = sld [smem:[#allocation81_spill]] }
 0x120   : > { %s5782_s30 = scalar_lea.hbm %s8594_s4, 1024 }
 0x121   : > { %p5783_p5 = scmp.ne.s32.totalorder %s8594_s4, %s5782_s30  ;;  %p5789_p2 = scmp.lt.u32.totalorder %s5782_s30, %s8594_s4 }
 0x123   : > { %p5785_p1 = pnand %p5783_p5, %p6484_p7 }
 0x125   : > { %p5786_p12 = pneg %p5785_p1 }
 0x127   : > { %p5791_p8 = pnand %p5789_p2, %p5786_p12 }
 0x129   : > { %5794 = shalt.err (!%p5791_p8)
}
 0x12a   : > { %s5795_s19 = scalar_lea.vmem %s533_s23, 1024  ;;  %p5803_p6 = scmp.lt.s32.totalorder %s533_s23, %s533_s23 }
 0x12b   : > { %p5796_p4 = scmp.ne.s32.totalorder %s533_s23, %s5795_s19  ;;  %p5804_p9 = scmp.lt.s32.totalorder %s5795_s19, %s5795_s19 }
 0x12d   : > { %p5798_p10 = pnand %p5796_p4, %p6484_p7  ;;  %p5805_p3 = por %p5804_p9, %p5803_p6 }
 0x12f   : > { %p5799_p0 = pneg %p5798_p10 }
 0x131   : > { %p5806_p11 = pnand %p5805_p3, %p5799_p0 }
 0x133   : > { %5809 = shalt.err (!%p5806_p11)
}
 0x134   : > { %s8517_s2 = smov 64   ;;  %s8520_s20 = smov 4  }
 0x135   : > { %p8595_p13 = scmp.ne.s32.totalorder %s8579_s11, 0  ;;  %s6269_s25 = smov [#allocation13]  }
 0x136   : > { %s557_s30 = sshll.u32 %s6269_s25, 4  ;;  %s6270_s21 = smov [#allocation16]   ;;  %s558_s30 = int_to_ptr.vmem [resolvable:$true] %s557_s30 }
 0x137   : > { %4892 = dma.hbm_to_vmem [thread:$0]  (!%p8595_p13), %s8594_s4, 1024, %s533_s23, [#allocation9], %s8517_s2, %s8517_s2, %s8520_s20  }
 0x138   : > { %s579_s3 = sshll.u32 %s6270_s21, 4  ;;  %s8596_s6 = sld [smem:[#allocation83_spill]]  ;;  %s580_s3 = int_to_ptr.vmem [resolvable:$true] %s579_s3 }
 0x13e   : > { %s5810_s19 = scalar_lea.hbm %s8596_s6, 16 }
 0x13f   : > { %p5811_p5 = scmp.ne.s32.totalorder %s8596_s6, %s5810_s19  ;;  %p5817_p2 = scmp.lt.u32.totalorder %s5810_s19, %s8596_s6 }
 0x141   : > { %p5813_p1 = pnand %p5811_p5, %p6484_p7 }
 0x143   : > { %p5814_p12 = pneg %p5813_p1 }
 0x145   : > { %p5819_p8 = pnand %p5817_p2, %p5814_p12 }
 0x147   : > { %5822 = shalt.err (!%p5819_p8)
}
 0x148   : > { %s5823_s23 = scalar_lea.vmem %s558_s30, 16  ;;  %s5830_s24 = scalar_lea.vmem %s558_s30, 32 }
 0x149   : > { %p5824_p4 = scmp.ne.s32.totalorder %s558_s30, %s5823_s23  ;;  %p5831_p6 = scmp.lt.s32.totalorder %s558_s30, %s558_s30 }
 0x14a   : > { %p5832_p9 = scmp.lt.s32.totalorder %s5830_s24, %s5823_s23 }
 0x14b   : > { %p5826_p10 = pnand %p5824_p4, %p6484_p7 }
 0x14c   : > { %p5833_p3 = por %p5832_p9, %p5831_p6 }
 0x14d   : > { %p5827_p0 = pneg %p5826_p10 }
 0x14f   : > { %p5834_p11 = pnand %p5833_p3, %p5827_p0 }
 0x151   : > { %5837 = shalt.err (!%p5834_p11)
}
 0x152   : > { %4898 = dma.hbm_to_vmem [thread:$0]  (!%p8595_p13), %s8596_s6, 16, %s558_s30, [#allocation12]  }
 0x153   : > { %s8597_s13 = sld [smem:[#allocation85_spill]] }
 0x159   : > { %s5838_s25 = scalar_lea.hbm %s8597_s13, 16 }
 0x15a   : > { %p5839_p5 = scmp.ne.s32.totalorder %s8597_s13, %s5838_s25  ;;  %p5845_p2 = scmp.lt.u32.totalorder %s5838_s25, %s8597_s13 }
 0x15c   : > { %p5841_p1 = pnand %p5839_p5, %p6484_p7 }
 0x15e   : > { %p5842_p12 = pneg %p5841_p1 }
 0x160   : > { %p5847_p8 = pnand %p5845_p2, %p5842_p12 }
 0x162   : > { %5850 = shalt.err (!%p5847_p8)
}
 0x163   : > { %s5851_s23 = scalar_lea.vmem %s580_s3, 16  ;;  %s5858_s30 = scalar_lea.vmem %s580_s3, 32 }
 0x164   : > { %p5852_p4 = scmp.ne.s32.totalorder %s580_s3, %s5851_s23  ;;  %p5859_p6 = scmp.lt.s32.totalorder %s580_s3, %s580_s3 }
 0x165   : > { %p5860_p9 = scmp.lt.s32.totalorder %s5858_s30, %s5851_s23 }
 0x166   : > { %p5854_p10 = pnand %p5852_p4, %p6484_p7 }
 0x167   : > { %p5861_p3 = por %p5860_p9, %p5859_p6 }
 0x168   : > { %p5855_p0 = pneg %p5854_p10 }
 0x16a   : > { %p5862_p11 = pnand %p5861_p3, %p5855_p0 }
 0x16c   : > { %5865 = shalt.err (!%p5862_p11)
}
 0x16d   : > { %4904 = dma.hbm_to_vmem [thread:$0]  (!%p8595_p13), %s8597_s13, 16, %s580_s3, [#allocation15]  }
 0x16e   : > { %s6271_s10 = smov [#allocation19]   ;;  %s6272_s8 = smov [#allocation22]  }
 0x16f   : > { %s601_s9 = sshll.u32 %s6271_s10, 4  ;;  %s627_s25 = sshll.u32 %s6272_s8, 4  ;;  %s602_s9 = int_to_ptr.vmem [resolvable:$true] %s601_s9  ;;  %s628_s25 = int_to_ptr.vmem [resolvable:$true] %s627_s25 }
 0x170   : > { %s8598_s7 = sld [smem:[#allocation87_spill]] }
 0x176   : > { %s5866_s19 = scalar_lea.hbm %s8598_s7, 16 }
 0x177   : > { %p5867_p5 = scmp.ne.s32.totalorder %s8598_s7, %s5866_s19  ;;  %p5873_p2 = scmp.lt.u32.totalorder %s5866_s19, %s8598_s7 }
 0x179   : > { %p5869_p1 = pnand %p5867_p5, %p6484_p7 }
 0x17b   : > { %p5870_p12 = pneg %p5869_p1 }
 0x17d   : > { %p5875_p8 = pnand %p5873_p2, %p5870_p12 }
 0x17f   : > { %5878 = shalt.err (!%p5875_p8)
}
 0x180   : > { %s5879_s3 = scalar_lea.vmem %s602_s9, 16  ;;  %s5886_s26 = scalar_lea.vmem %s602_s9, 32 }
 0x181   : > { %p5880_p4 = scmp.ne.s32.totalorder %s602_s9, %s5879_s3  ;;  %p5887_p6 = scmp.lt.s32.totalorder %s602_s9, %s602_s9 }
 0x182   : > { %p5888_p9 = scmp.lt.s32.totalorder %s5886_s26, %s5879_s3 }
 0x183   : > { %p5882_p10 = pnand %p5880_p4, %p6484_p7 }
 0x184   : > { %p5889_p3 = por %p5888_p9, %p5887_p6 }
 0x185   : > { %p5883_p0 = pneg %p5882_p10 }
 0x187   : > { %p5890_p11 = pnand %p5889_p3, %p5883_p0 }
 0x189   : > { %5893 = shalt.err (!%p5890_p11)
}
 0x18a   : > { %4910 = dma.hbm_to_vmem [thread:$0]  (!%p8595_p13), %s8598_s7, 16, %s602_s9, [#allocation18]  }
 0x18b   : > { %s8599_s0 = sld [smem:[#allocation90_spill]] }
 0x191   : > { %s8600_s19 = smov %s8599_s0  ;;  %s5894_s23 = scalar_lea.hbm %s8599_s0, 1024 }
 0x192   : > { %p5895_p5 = scmp.ne.s32.totalorder %s8600_s19, %s5894_s23  ;;  %p5901_p2 = scmp.lt.u32.totalorder %s5894_s23, %s8600_s19 }
 0x194   : > { %p5897_p1 = pnand %p5895_p5, %p6484_p7 }
 0x196   : > { %p5898_p12 = pneg %p5897_p1 }
 0x198   : > { %p5903_p8 = pnand %p5901_p2, %p5898_p12 }
 0x19a   : > { %5906 = shalt.err (!%p5903_p8)
}
 0x19b   : > { %s5907_s10 = scalar_lea.vmem %s628_s25, 1024  ;;  %p5915_p6 = scmp.lt.s32.totalorder %s628_s25, %s628_s25 }
 0x19c   : > { %p5908_p4 = scmp.ne.s32.totalorder %s628_s25, %s5907_s10  ;;  %p5916_p9 = scmp.lt.s32.totalorder %s5907_s10, %s5907_s10 }
 0x19e   : > { %p5910_p10 = pnand %p5908_p4, %p6484_p7  ;;  %p5917_p3 = por %p5916_p9, %p5915_p6 }
 0x1a0   : > { %p5911_p0 = pneg %p5910_p10 }
 0x1a2   : > { %p5918_p11 = pnand %p5917_p3, %p5911_p0 }
 0x1a4   : > { %5921 = shalt.err (!%p5918_p11)
}
 0x1a5   : > { %s8601_s9 = smov 64   ;;  %s6273_s21 = smov [#allocation25]  }
 0x1a6   : > { %4916 = dma.hbm_to_vmem [thread:$0]  (!%p8595_p13), %s8600_s19, 1024, %s628_s25, [#allocation21], %s8601_s9, %s8601_s9, %s8520_s20  }
 0x1a7   : > { %s651_s0 = sshll.u32 %s6273_s21, 4  ;;  %s6274_s23 = smov [#allocation28]   ;;  %s652_s0 = int_to_ptr.vmem [resolvable:$true] %s651_s0 }
 0x1a8   : > { %s675_s30 = sshll.u32 %s6274_s23, 4  ;;  %s8602_s26 = sld [smem:[#allocation92_spill]]  ;;  %s676_s30 = int_to_ptr.vmem [resolvable:$true] %s675_s30 }
 0x1ae   : > { %s8603_s10 = smov %s8602_s26  ;;  %s5922_s4 = scalar_lea.hbm %s8602_s26, 4096 }
 0x1af   : > { %p5923_p5 = scmp.ne.s32.totalorder %s8603_s10, %s5922_s4  ;;  %p5929_p2 = scmp.lt.u32.totalorder %s5922_s4, %s8603_s10 }
 0x1b1   : > { %p5925_p1 = pnand %p5923_p5, %p6484_p7 }
 0x1b3   : > { %p5926_p12 = pneg %p5925_p1 }
 0x1b5   : > { %p5931_p8 = pnand %p5929_p2, %p5926_p12 }
 0x1b7   : > { %5934 = shalt.err (!%p5931_p8)
}
 0x1b8   : > { %s5935_s25 = scalar_lea.vmem %s652_s0, 4096  ;;  %p5943_p6 = scmp.lt.s32.totalorder %s652_s0, %s652_s0 }
 0x1b9   : > { %p5936_p4 = scmp.ne.s32.totalorder %s652_s0, %s5935_s25  ;;  %p5944_p9 = scmp.lt.s32.totalorder %s5935_s25, %s5935_s25 }
 0x1bb   : > { %p5938_p10 = pnand %p5936_p4, %p6484_p7  ;;  %p5945_p3 = por %p5944_p9, %p5943_p6 }
 0x1bd   : > { %p5939_p0 = pneg %p5938_p10 }
 0x1bf   : > { %p5946_p11 = pnand %p5945_p3, %p5939_p0 }
 0x1c1   : > { %5949 = shalt.err (!%p5946_p11)
}
 0x1c2   : > { %s8604_s6 = smov 16   ;;  %s8605_s7 = smov 256  }
 0x1c3   : > { %4922 = dma.hbm_to_vmem [thread:$0]  (!%p8595_p13), %s8603_s10, 4096, %s652_s0, [#allocation24], %s8605_s7, %s8605_s7, %s8604_s6  }
 0x1c4   : > { %s8606_s23 = sld [smem:[#allocation94_spill]] }
 0x1ca   : > { %s8607_s8 = smov %s8606_s23  ;;  %s5950_s24 = scalar_lea.hbm %s8606_s23, 4096 }
 0x1cb   : > { %p5951_p5 = scmp.ne.s32.totalorder %s8607_s8, %s5950_s24  ;;  %p5957_p2 = scmp.lt.u32.totalorder %s5950_s24, %s8607_s8 }
 0x1cd   : > { %p5953_p1 = pnand %p5951_p5, %p6484_p7 }
 0x1cf   : > { %p5954_p12 = pneg %p5953_p1 }
 0x1d1   : > { %p5959_p8 = pnand %p5957_p2, %p5954_p12 }
 0x1d3   : > { %5962 = shalt.err (!%p5959_p8)
}
 0x1d4   : > { %s5963_s12 = scalar_lea.vmem %s676_s30, 4096  ;;  %p5971_p6 = scmp.lt.s32.totalorder %s676_s30, %s676_s30 }
 0x1d5   : > { %p5964_p4 = scmp.ne.s32.totalorder %s676_s30, %s5963_s12  ;;  %p5972_p9 = scmp.lt.s32.totalorder %s5963_s12, %s5963_s12 }
 0x1d7   : > { %p5966_p10 = pnand %p5964_p4, %p6484_p7  ;;  %p5973_p3 = por %p5972_p9, %p5971_p6 }
 0x1d9   : > { %p5967_p0 = pneg %p5966_p10 }
 0x1db   : > { %p5974_p11 = pnand %p5973_p3, %p5967_p0 }
 0x1dd   : > { %5977 = shalt.err (!%p5974_p11)
}
 0x1de   : > { %s8608_s0 = smov 4   ;;  %s6275_s7 = smov [#allocation29]  }
 0x1df   : > { %4928 = dma.hbm_to_vmem [thread:$0]  (!%p8595_p13), %s8607_s8, 4096, %s676_s30, [#allocation27], %s8601_s9, %s8601_s9, %s8608_s0  }
 0x1e0   : > { %s689_s4 = sshll.u32 %s6275_s7, 4  ;;  %s8609_s23 = sld [smem:[#allocation95_spill]]  ;;  %s690_s4 = int_to_ptr.vmem [resolvable:$true] %s689_s4 }
 0x1e6   : > { %s8610_s10 = smov %s8609_s23  ;;  %s5978_s24 = scalar_lea.hbm %s8609_s23, 16 }
 0x1e7   : > { %p5979_p5 = scmp.ne.s32.totalorder %s8610_s10, %s5978_s24  ;;  %p5985_p2 = scmp.lt.u32.totalorder %s5978_s24, %s8610_s10 }
 0x1e9   : > { %p5981_p1 = pnand %p5979_p5, %p6484_p7 }
 0x1eb   : > { %p5982_p12 = pneg %p5981_p1 }
 0x1ed   : > { %p5987_p8 = pnand %p5985_p2, %p5982_p12 }
 0x1ef   : > { %5990 = shalt.err (!%p5987_p8)
}
 0x1f0   : > { %s5991_s9 = scalar_lea.vmem %s690_s4, 16  ;;  %s5998_s30 = scalar_lea.vmem %s690_s4, 32 }
 0x1f1   : > { %p5992_p4 = scmp.ne.s32.totalorder %s690_s4, %s5991_s9  ;;  %p5999_p6 = scmp.lt.s32.totalorder %s690_s4, %s690_s4 }
 0x1f2   : > { %p6000_p9 = scmp.lt.s32.totalorder %s5998_s30, %s5991_s9 }
 0x1f3   : > { %p5994_p10 = pnand %p5992_p4, %p6484_p7 }
 0x1f4   : > { %p6001_p3 = por %p6000_p9, %p5999_p6 }
 0x1f5   : > { %p5995_p0 = pneg %p5994_p10 }
 0x1f7   : > { %p6002_p11 = pnand %p6001_p3, %p5995_p0 }
 0x1f9   : > { %6005 = shalt.err (!%p6002_p11)
}
 0x1fa   : > { %s8611_s6 = sld [smem:[#allocation52_spill]]  ;;  %s8612_s7 = sld [smem:[#allocation49_spill]] }
 0x1fb   : > { %s8613_s2 = sld [smem:[#allocation48_spill]]  ;;  %s8614_s21 = sld [smem:[#allocation47_spill]] }
 0x1fc   : > { %4931 = dma.hbm_to_vmem [thread:$0]  (!%p8595_p13), %s8610_s10, 16, %s690_s4, [#allocation30]  }
 0x1fd   : > { %s4286_s11 = sadd.s32 4294967294, %s6252_s28   ;;  %s8616_s24 = sadd.s32 1, %s6248_s27 }
 0x1fe   : > { %p8617_p13 = scmp.eq.s32.totalorder %s6252_s28, 0  ;;  %p8619_p8 = scmp.eq.s32.totalorder %s6453_s29, 0 }
 0x1ff   : > { %p494_p0 = scmp.eq.s32.totalorder %s6453_s29, 3  ;;  %p500_p9 = scmp.eq.s32.totalorder %s4286_s11, 3 }
 0x200   : > { %s55_s15 = sadd.s32 1, %s8611_s6  ;;  %s67_s23 = sadd.s32 1, %s8612_s7 }
 0x201   : > { %p56_p7 = scmp.ge.s32.totalorder %s55_s15, 2  ;;  %p74_p5 = scmp.ne.s32.totalorder %s8612_s7, %s8613_s2 }
 0x202   : > { %p80_p1 = scmp.ne.s32.totalorder %s8613_s2, %s8614_s21  ;;  %s700_s9 = sand.u32 1, %s8612_s7  }
 0x203   : > { %s8731_s15 = smov (%p56_p7, %s55_s15), 0  ;;  %s8733_s24 = smov (!%p56_p7, %s8616_s24), %s6248_s27 }
 0x204   : > { %8615 = sst [smem:[#allocation54_spill]] %s8731_s15  ;;  %s6862_s3 = ssub.s32 %s8611_s6, %s8731_s15 }
 0x205   : > { %p6866_p12 = por %p8617_p13, %p74_p5  ;;  %p60_p2 = scmp.ge.s32.totalorder %s8733_s24, 2 }
 0x206   : > { %p6875_p4 = por %p8619_p8, %p80_p1  ;;  %p6883_p6 = por %p494_p0, %p74_p5 }
 0x207   : > { %s8735_s24 = smov (%p60_p2, %s8733_s24), 0  ;;  %p6894_p7 = por %p500_p9, %p80_p1 }
 0x208   : > { %8621 = sst [smem:[#allocation55_spill]] %s8735_s24  ;;  %s62_s12 = ssub.s32 %s6248_s27, %s8735_s24 }
 0x209   : > { %s8622_s25 = scalar_select %p6883_p6, 1, 0 }
 0x20a   : > { %s64_s30 = sor.u32 %s6862_s3, %s62_s12  ;;  %p91_p3 = scmp.eq.s32.totalorder %s62_s12, 0 }
 0x20b   : > { %p65_p11 = scmp.eq.s32.totalorder %s64_s30, 0  ;;  %s8624_s20 = sadd.s32 1, %s6220_s22 }
 0x20c   : > { %s8623_s0 = scalar_select %p6894_p7, 1, 0 }
 0x20d   : > { %s6901_s8 = scalar_select %p91_p3, %s6220_s22, %s8624_s20  }
 0x20e   : > { %s8737_s7 = smov (!%p65_p11, %s8612_s7), %s67_s23  ;;  %s4304_s10 = sshll.u32 %s700_s9, 7 }
 0x20f   : > { %s4305_s13 = sshll.u32 %s8611_s6, 4  ;;  %s4306_s11 = sshll.u32 %s6248_s27, 5 }
 0x210   : > { %s704_s14 = scalar_lea.vmem [#allocation2], %s4304_s10  ;;  %s710_s18 = sadd.s32 %s4306_s11, %s4305_s13 }
 0x211   : > { %s713_s16 = sshll.u32 %s704_s14, 4  ;;  %s4307_s12 = sshll.u32 %s710_s18, 7  ;;  %s6908_s16 = int_to_ptr.vmem [resolvable:$true] %s713_s16 }
 0x212   : > { %p8625_p5 = scmp.lt.s32.totalorder %s6252_s28, 4  ;;  %s8627_s20 = sld [smem:[#allocation77_spill]] }
 0x213   : > { %s6923_s14 = scalar_lea.sflag [#allocation3], %s700_s9 }
 0x214   : > { %p6914_p1 = pnand %p8625_p5, %p6866_p12 }
 0x216   : > { %p6008_p12 = pneg %p6914_p1 }
 0x218   : > { %s8628_s19 = smov %s8627_s20  ;;  %s6921_s23 = scalar_lea.hbm %s8627_s20, %s4307_s12 }
 0x219   : > { %s6006_s18 = scalar_lea.hbm %s6921_s23, 2048  ;;  %s6011_s4 = scalar_lea.hbm %s8628_s19, 8192 }
 0x21a   : > { %p6007_p13 = scmp.ne.s32.totalorder %s6921_s23, %s6006_s18  ;;  %p6012_p0 = scmp.lt.u32.totalorder %s6921_s23, %s8628_s19 }
 0x21b   : > { %p6013_p9 = scmp.lt.u32.totalorder %s6011_s4, %s6006_s18  ;;  %p6015_p11 = scmp.lt.u32.totalorder %s6006_s18, %s6921_s23 }
 0x21c   : > { %p6009_p2 = pnand %p6008_p12, %p6007_p13 }
 0x21d   : > { %p6014_p3 = por %p6013_p9, %p6012_p0 }
 0x21e   : > { %p6010_p8 = pneg %p6009_p2 }
 0x21f   : > { %p6016_p5 = por %p6015_p11, %p6014_p3 }
 0x221   : > { %p6017_p10 = pnand %p6016_p5, %p6010_p8 }
 0x223   : > { %6020 = shalt.err (!%p6017_p10)
}
 0x224   : > { %s6021_s9 = scalar_lea.vmem %s6908_s16, 2048  ;;  %s6276_s21 = smov [#allocation2]  }
 0x225   : > { %p6022_p13 = scmp.ne.s32.totalorder %s6908_s16, %s6021_s9  ;;  %s6026_s30 = sshll.u32 %s6276_s21, 4  ;;  %s6027_s30 = int_to_ptr.vmem [resolvable:$false] %s6026_s30 }
 0x226   : > { %s6028_s20 = scalar_lea.vmem %s6027_s30, 4096  ;;  %p6029_p6 = scmp.lt.s32.totalorder %s6908_s16, %s6027_s30 }
 0x227   : > { %p6024_p2 = pnand %p6022_p13, %p6008_p12  ;;  %p6030_p0 = scmp.lt.s32.totalorder %s6028_s20, %s6021_s9 }
 0x229   : > { %p6025_p7 = pneg %p6024_p2  ;;  %p6031_p9 = por %p6030_p0, %p6029_p6 }
 0x22b   : > { %p6032_p3 = pnand %p6031_p9, %p6025_p7 }
 0x22d   : > { %6035 = shalt.err (!%p6032_p3)
}
 0x22e   : > { %s8629_s18 = smov 8   ;;  %s8630_s13 = smov 128  }
 0x22f   : > { %s8631_s10 = sld [smem:[#allocation46_spill]]  ;;  %s8632_s4 = sld [smem:[#allocation45_spill]] }
 0x230   : > { %s8633_s11 = sld [smem:[#allocation44_spill]]  ;;  %p8634_p6 = scmp.eq.s32.totalorder %s6862_s3, 0 }
 0x231   : > { %4935 = dma.hbm_to_vmem [thread:$0]  (!%p6914_p1), %s6921_s23, 2048, %s6908_s16, %s6923_s14, %s8630_s13, %s8630_s13, %s8629_s18  }
 0x232   : > { %p8635_p7 = scmp.eq.s32.totalorder %s6252_s28, 0  ;;  %s4461_s21 = sshll.u32 %s8611_s6, 11 }
 0x233   : > { %p8636_p11 = scmp.eq.s32.totalorder %s6453_s29, 0  ;;  %s8638_s15 = sld [smem:[#allocation79_spill]] }
 0x234   : > { %p8639_p1 = scmp.lt.s32.totalorder %s6252_s28, 4 }
 0x235   : > { %s119_s2 = sadd.s32 1, %s8631_s10  ;;  %p126_p10 = scmp.ne.s32.totalorder %s8631_s10, %s8632_s4 }
 0x236   : > { %s6960_s12 = scalar_select %p8634_p6, %s8631_s10, %s119_s2  }
 0x237   : > { %p128_p12 = por %p126_p10, %p8635_p7  ;;  %p132_p8 = scmp.ne.s32.totalorder %s8632_s4, %s8633_s11 }
 0x238   : > { %s746_s9 = sand.u32 1, %s8631_s10  }
 0x239   : > { %p6970_p5 = por %p132_p8, %p8636_p11  ;;  %s4311_s20 = sshll.u32 %s746_s9, 7 }
 0x23a   : > { %s6977_s16 = scalar_lea.hbm %s8638_s15, %s4461_s21  ;;  %s748_s3 = scalar_lea.vmem [#allocation7], %s4311_s20 }
 0x23b   : > { %s8637_s30 = scalar_select %p6970_p5, 1, 0 }
 0x23c   : > { %s755_s23 = sshll.u32 %s748_s3, 4  ;;  %p6981_p13 = pnand %p8639_p1, %p128_p12  ;;  %s6985_s23 = int_to_ptr.vmem [resolvable:$true] %s755_s23 }
 0x23d   : > { %s6036_s14 = scalar_lea.hbm %s6977_s16, 2048  ;;  %s6041_s10 = scalar_lea.hbm %s8638_s15, 4096 }
 0x23e   : > { %p6037_p2 = scmp.ne.s32.totalorder %s6977_s16, %s6036_s14  ;;  %p6038_p0 = pneg %p6981_p13 }
 0x23f   : > { %p6042_p10 = scmp.lt.u32.totalorder %s6977_s16, %s8638_s15  ;;  %p6043_p6 = scmp.lt.u32.totalorder %s6041_s10, %s6036_s14 }
 0x240   : > { %p6039_p9 = pnand %p6038_p0, %p6037_p2  ;;  %p6045_p12 = scmp.lt.u32.totalorder %s6036_s14, %s6977_s16 }
 0x241   : > { %p6044_p7 = por %p6043_p6, %p6042_p10 }
 0x242   : > { %p6040_p3 = pneg %p6039_p9 }
 0x243   : > { %p6046_p8 = por %p6045_p12, %p6044_p7 }
 0x245   : > { %p6047_p11 = pnand %p6046_p8, %p6040_p3 }
 0x247   : > { %6050 = shalt.err (!%p6047_p11)
}
 0x248   : > { %s6051_s2 = scalar_lea.vmem %s6985_s23, 2048  ;;  %s6277_s9 = smov [#allocation7]  }
 0x249   : > { %p6052_p1 = scmp.ne.s32.totalorder %s6985_s23, %s6051_s2  ;;  %s6056_s21 = sshll.u32 %s6277_s9, 4  ;;  %s6057_s21 = int_to_ptr.vmem [resolvable:$false] %s6056_s21 }
 0x24a   : > { %s6058_s20 = scalar_lea.vmem %s6057_s21, 4096  ;;  %p6059_p5 = scmp.lt.s32.totalorder %s6985_s23, %s6057_s21 }
 0x24b   : > { %p6054_p2 = pnand %p6052_p1, %p6038_p0  ;;  %p6060_p10 = scmp.lt.s32.totalorder %s6058_s20, %s6051_s2 }
 0x24d   : > { %p6055_p9 = pneg %p6054_p2  ;;  %p6061_p6 = por %p6060_p10, %p6059_p5 }
 0x24f   : > { %p6062_p7 = pnand %p6061_p6, %p6055_p9 }
 0x251   : > { %6065 = shalt.err (!%p6062_p7)
}
 0x252   : > { %4941 = dma.hbm_to_vmem [thread:$0]  (!%p6981_p13), %s6977_s16, 2048, %s6985_s23, %s6660_s17, %s8630_s13, %s8630_s13, %s8629_s18  }
 0x253   : > { %s8641_s3 = sld [smem:[#allocation53_spill]] }
 0x259   : > { %p8642_p0 = scmp.ne.s32.totalorder %s8641_s3, 0 }
 0x25b   : > { %767 = sbr.rel (%p8642_p0) target bundleno = 2969 (0xb99), region = 96 }
 0x262   : > { %s8643_s14 = sld [smem:[#allocation48_spill]] }
 0x268   : > { %s7019_s19 = sand.u32 1, %s8643_s14  }
 0x269   : > { %s4315_s24 = sshll.u32 %s7019_s19, 7  ;;  %s770_s10 = scalar_lea.sflag [#allocation3], %s7019_s19 }
 0x26a   : > { %s7025_s6 = scalar_lea.vmem [#allocation2], %s4315_s24 }
 0x26b   : > { %6151 = dma.done.wait (%p6875_p4), %s770_s10, 2048  }
 0x26c   : > { %6153 = vsyncadd (%p6875_p4), %s770_s10, 4294965248  ;;  %s778_s17 = sand.u32 1, %s6453_s29   ;;  %s780_s18 = sand.u32 1, %s6216_s1  }
 0x26d   : > { %s4316_s13 = sshll.u32 %s780_s18, 6  ;;  %s779_s16 = scalar_lea.sflag [#allocation6], %s778_s17 }
 0x26e   : > { %s7033_s23 = scalar_lea.vmem [#allocation5], %s4316_s13  ;;  %p8644_p5 = scmp.ne.s32.totalorder %s8590_s5, 0 }
 0x270   : > { %6155 = dma.done.wait (%p8644_p5), %s779_s16, 1024  }
 0x271   : > { %6157 = vsyncadd (%p8644_p5), %s779_s16, 4294966272  ;;  %s8645_s4 = sld [smem:[#allocation45_spill]]  ;;  %p8646_p4 = scmp.ne.s32.totalorder %s8637_s30, 0 }
 0x277   : > { %s789_s11 = sand.u32 1, %s8645_s4  }
 0x278   : > { %s4317_s2 = sshll.u32 %s789_s11, 7 }
 0x279   : > { %s7040_s26 = scalar_lea.vmem [#allocation7], %s4317_s2 }
 0x27a   : > { %6159 = dma.done.wait (%p8646_p4), %s779_s16, 2048  }
 0x27b   : > { %6161 = vsyncadd (%p8646_p4), %s779_s16, 4294965248  ;;  %p8647_p13 = scmp.eq.s32.totalorder %s6453_s29, 0 }
 0x27d   : > { %6163 = dma.done.wait (%p8647_p13), [#allocation9], 3072   ;;  %p8648_p3 = pmov %p8647_p13 }
 0x27f   : > { %6165 = vsyncadd (%p8648_p3), [#allocation9], 4294964224  ;;  %p8649_p12 = pmov %p8648_p3 }
 0x280   : > { %p8650_p8 = pmov %p8648_p3 }
 0x281   : > { %6167 = dma.done.wait (%p8649_p12), [#allocation12], 32  }
 0x282   : > { %6169 = vsyncadd (%p8650_p8), [#allocation12], 4294967264  ;;  %p8651_p11 = pmov %p8648_p3 }
 0x283   : > { %p8652_p1 = pmov %p8648_p3 }
 0x284   : > { %6171 = dma.done.wait (%p8651_p11), [#allocation15], 32  }
 0x285   : > { %6173 = vsyncadd (%p8652_p1), [#allocation15], 4294967264  ;;  %p8653_p2 = pmov %p8652_p1 }
 0x286   : > { %p8654_p9 = pmov %p8652_p1 }
 0x287   : > { %6175 = dma.done.wait (%p8653_p2), [#allocation18], 32  }
 0x288   : > { %6177 = vsyncadd (%p8654_p9), [#allocation18], 4294967264  ;;  %p8655_p10 = pmov %p8652_p1 }
 0x289   : > { %p8656_p6 = pmov %p8652_p1 }
 0x28a   : > { %6179 = dma.done.wait (%p8655_p10), [#allocation21], 3072  }
 0x28b   : > { %6181 = vsyncadd (%p8656_p6), [#allocation21], 4294964224  ;;  %p8657_p7 = pmov %p8652_p1 }
 0x28c   : > { %p8658_p0 = pmov %p8652_p1 }
 0x28d   : > { %6183 = dma.done.wait (%p8657_p7), [#allocation24], 4112  }
 0x28e   : > { %6185 = vsyncadd (%p8658_p0), [#allocation24], 4294963184  ;;  %p8659_p5 = pmov %p8658_p0 }
 0x28f   : > { %p8660_p4 = pmov %p8658_p0 }
 0x290   : > { %6187 = dma.done.wait (%p8659_p5), [#allocation27], 4160  }
 0x291   : > { %6189 = vsyncadd (%p8660_p4), [#allocation27], 4294963136  ;;  %p8661_p13 = pmov %p8658_p0 }
 0x292   : > { %p8662_p3 = pmov %p8658_p0 }
 0x293   : > { %6191 = dma.done.wait (%p8661_p13), [#allocation30], 16  }
 0x294   : > { %6193 = vsyncadd (%p8662_p3), [#allocation30], 4294967280  ;;  %v936_v0 = vld [vmem:[%s7033_s23] sm:$0xff]  ;;  %v938_v1 = vld [vmem:[%s7033_s23 + $0x10] sm:$0xff]  ;;  %s8663_s30 = sld [smem:[#allocation88_spill]]  ;;  %vm2023_vm0 = vcmask 523264  }
 0x295   : > { %1185 = vadd.xlane.f32.xlu0 %v936_v0  ;;  %1189 = vadd.xlane.f32.xlu1 %v938_v1  ;;  %v937_v2 = vld [vmem:[%s7033_s23 + $0x8] sm:$0xff]  ;;  %v939_v3 = vld [vmem:[%s7033_s23 + $0x18] sm:$0xff]  ;;  %v940_v4 = vld [vmem:[%s7033_s23 + $0x20] sm:$0xff]  ;;  %s8711_s17 = sld [smem:[#allocation96_spill]]  ;;  %s3994_s13 = scalar_lea.sflag [#allocation4], %s7019_s19 }
 0x296   : > { %v941_v5 = vld [vmem:[%s7033_s23 + $0x28] sm:$0xff]  ;;  %v942_v6 = vld [vmem:[%s7033_s23 + $0x30] sm:$0xff]  ;;  %v943_v7 = vld [vmem:[%s7033_s23 + $0x38] sm:$0xff]  ;;  %p8712_p8 = scmp.ne.s32.totalorder %s8622_s25, 0  ;;  %s6279_s23 = smov [#allocation31]  }
 0x297   : > { %v5114_v8 = vld [vmem:[#allocation20 + $0x4] ss:$8 sps:$4 sm:$0xff]   ;;  %v5116_v9 = vld [vmem:[#allocation20] ss:$8 sps:$4 sm:$0xff]   ;;  %v5117_v10 = vld [vmem:[#allocation20 + $0x14] ss:$8 sps:$4 sm:$0xff]  }
 0x298   : > { %1602 = vmatprep.subr.bf16.mxu1 %v5114_v8  ;;  %v5119_v43 = vld [vmem:[#allocation20 + $0x10] ss:$8 sps:$4 sm:$0xff]   ;;  %v5120_v45 = vld [vmem:[#allocation20 + $0x24] ss:$8 sps:$4 sm:$0xff]   ;;  %v7123_v46 = vld [vmem:[%s7025_s6 + $0x8] sm:$0xff]  ;;  %s6070_s4 = sshll.u32 %s6279_s23, 4  ;;  %s6071_s4 = int_to_ptr.vmem [resolvable:$false] %s6070_s4 }
 0x299   : > { %1187 = vadd.xlane.f32.xlu0 %v937_v2  ;;  %1191 = vadd.xlane.f32.xlu1 %v939_v3  ;;  %v7119_v44 = vld [vmem:[%s7025_s6] sm:$0xff]  ;;  %v7126_v47 = vld [vmem:[%s7025_s6 + $0x10] sm:$0xff]  ;;  %v7131_v50 = vld [vmem:[%s7025_s6 + $0x18] sm:$0xff]  ;;  %s6072_s11 = scalar_lea.vmem %s6071_s4, 4096 }
 0x29a   : > { %1603 = vmatpush1.bf16.msra.mxu1 %v5116_v9  ;;  %v5122_v48 = vld [vmem:[#allocation20 + $0x20] ss:$8 sps:$4 sm:$0xff]   ;;  %v5123_v49 = vld [vmem:[#allocation20 + $0x34] ss:$8 sps:$4 sm:$0xff]   ;;  %v5125_v52 = vld [vmem:[#allocation20 + $0x30] ss:$8 sps:$4 sm:$0xff]   ;;  %s8664_s9 = smov %s8663_s30 }
 0x29b   : > { %1604 = vmatprep.subr.bf16.mxu1 %v5117_v10  ;;  %v7134_v51 = vld [vmem:[%s7025_s6 + $0x20] sm:$0xff]  ;;  %v5126_v53 = vld [vmem:[#allocation20 + $0x44] ss:$8 sps:$4 sm:$0xff]   ;;  %v7139_v54 = vld [vmem:[%s7025_s6 + $0x28] sm:$0xff] }
 0x29c   : > { %v7142_v55 = vld [vmem:[%s7025_s6 + $0x30] sm:$0xff]  ;;  %v5129_v57 = vld [vmem:[#allocation20 + $0x54] ss:$8 sps:$4 sm:$0xff]   ;;  %v7147_v58 = vld [vmem:[%s7025_s6 + $0x38] sm:$0xff] }
 0x29d   : > { %1193 = vadd.xlane.f32.xlu0 %v940_v4  ;;  %1195 = vadd.xlane.f32.xlu1 %v941_v5  ;;  %v5128_v56 = vld [vmem:[#allocation20 + $0x40] ss:$8 sps:$4 sm:$0xff]   ;;  %v7150_v59 = vld [vmem:[%s7025_s6 + $0x40] sm:$0xff]  ;;  %v5132_v61 = vld [vmem:[#allocation20 + $0x64] ss:$8 sps:$4 sm:$0xff]  }
 0x29e   : > { %1605 = vmatpush1.bf16.msra.mxu1 %v5119_v43  ;;  %v5131_v60 = vld [vmem:[#allocation20 + $0x50] ss:$8 sps:$4 sm:$0xff]   ;;  %v7155_v62 = vld [vmem:[%s7025_s6 + $0x48] sm:$0xff]  ;;  %v7158_v63 = vld [vmem:[%s7025_s6 + $0x50] sm:$0xff] }
 0x29f   : > { %1606 = vmatprep.subr.bf16.mxu1 %v5120_v45  ;;  %v7180_v8 = vld [vmem:[%s7025_s6 + $0x78] sm:$0xff]  ;;  %v5138_v9 = vld [vmem:[%s8663_s30] sm:$0xff]  }
 0x2a0   : > { %4666 = vmatprep.subr.bf16.mxu0 %v5138_v9 }
 0x2a1   : > { %1197 = vadd.xlane.f32.xlu0 %v942_v6  ;;  %1199 = vadd.xlane.f32.xlu1 %v943_v7 }
 0x2a2   : > { %1607 = vmatpush1.bf16.msra.mxu1 %v5122_v48  ;;  %4667 = vmatpush3.bf16.msra.mxu0 %v5138_v9 }
 0x2a3   : > { %1608 = vmatprep.subr.bf16.mxu1 %v5123_v49 }
 0x2a6   : > { %1609 = vmatpush1.bf16.msra.mxu1 %v5125_v52 }
 0x2a7   : > { %1610 = vmatprep.subr.bf16.mxu1 %v5126_v53 }
 0x2aa   : > { %1611 = vmatpush1.bf16.msra.mxu1 %v5128_v56 }
 0x2ab   : > { %1612 = vmatprep.subr.bf16.mxu1 %v5129_v57 }
 0x2ae   : > { %1613 = vmatpush1.bf16.msra.mxu1 %v5131_v60  ;;  %v7193_v60 = vld [vmem:[#allocation16] ss:$0 sm:$0xff] }
 0x2af   : > { %1614 = vmatprep.subr.bf16.mxu1 %v5132_v61 }
 0x322   : > { %v1186_v11 = vpop.xlane.xlu0 %1185  ;;  %v1190_v12 = vpop.xlane.xlu1 %1189 }
 0x323   : > { %v1201_v13 = vmul.f32 0.0078125, %v1186_v11  ;;  %v1203_v14 = vmul.f32 0.0078125, %v1190_v12 }
 0x325   : > { %v7086_v15 = vsub.f32 %v936_v0, %v1201_v13  ;;  %v7088_v16 = vsub.f32 %v938_v1, %v1203_v14  ;;  %v5134_v0 = vld [vmem:[#allocation20 + $0x60] ss:$8 sps:$4 sm:$0xff]   ;;  %v5135_v1 = vld [vmem:[#allocation20 + $0x74] ss:$8 sps:$4 sm:$0xff]  }
 0x326   : > { %v1188_v17 = vpop.xlane.xlu0 %1187  ;;  %v1192_v18 = vpop.xlane.xlu1 %1191  ;;  %1615 = vmatpush1.bf16.msra.mxu1 %v5134_v0 }
 0x327   : > { %v1202_v19 = vmul.f32 0.0078125, %v1188_v17  ;;  %v1217_v20 = vmul.f32 %v7086_v15, %v7086_v15  ;;  %v1204_v21 = vmul.f32 0.0078125, %v1192_v18  ;;  %v1219_v23 = vmul.f32 %v7088_v16, %v7088_v16  ;;  %1616 = vmatprep.subr.bf16.mxu1 %v5135_v1 }
 0x329   : > { %v7092_v22 = vsub.f32 %v937_v2, %v1202_v19  ;;  %1225 = vadd.xlane.f32.xlu0 %v1217_v20  ;;  %v7096_v24 = vsub.f32 %v939_v3, %v1204_v21  ;;  %v7163_v2 = vld [vmem:[%s7025_s6 + $0x58] sm:$0xff]  ;;  %v7166_v3 = vld [vmem:[%s7025_s6 + $0x60] sm:$0xff] }
 0x32a   : > { %v1194_v25 = vpop.xlane.xlu0 %1193  ;;  %v1196_v26 = vpop.xlane.xlu1 %1195 }
 0x32b   : > { %v1205_v27 = vmul.f32 0.0078125, %v1194_v25  ;;  %v1218_v28 = vmul.f32 %v7092_v22, %v7092_v22  ;;  %v1206_v29 = vmul.f32 0.0078125, %v1196_v26  ;;  %v1220_v31 = vmul.f32 %v7096_v24, %v7096_v24 }
 0x32d   : > { %v7100_v30 = vsub.f32 %v940_v4, %v1205_v27  ;;  %1229 = vadd.xlane.f32.xlu0 %v1219_v23  ;;  %1227 = vadd.xlane.f32.xlu1 %v1218_v28  ;;  %v7104_v32 = vsub.f32 %v941_v5, %v1206_v29  ;;  %v5137_v4 = vld [vmem:[#allocation20 + $0x70] ss:$8 sps:$4 sm:$0xff]   ;;  %v7171_v5 = vld [vmem:[%s7025_s6 + $0x68] sm:$0xff] }
 0x32e   : > { %v1198_v33 = vpop.xlane.xlu0 %1197  ;;  %v1200_v34 = vpop.xlane.xlu1 %1199  ;;  %1617 = vmatpush1.bf16.msra.mxu1 %v5137_v4 }
 0x32f   : > { %v1207_v35 = vmul.f32 0.0078125, %v1198_v33  ;;  %v1221_v36 = vmul.f32 %v7100_v30, %v7100_v30  ;;  %v1208_v37 = vmul.f32 0.0078125, %v1200_v34  ;;  %v1222_v39 = vmul.f32 %v7104_v32, %v7104_v32 }
 0x331   : > { %v7108_v38 = vsub.f32 %v942_v6, %v1207_v35  ;;  %1231 = vadd.xlane.f32.xlu1 %v1220_v31  ;;  %1233 = vadd.xlane.f32.xlu0 %v1221_v36  ;;  %v7112_v40 = vsub.f32 %v943_v7, %v1208_v37  ;;  %v7174_v6 = vld [vmem:[%s7025_s6 + $0x70] sm:$0xff]  ;;  %v6278_v7 = vmov 0  }
 0x332   : > { %1634 = vmatprep.mubr.bf16.mxu1 %v6278_v7 }
 0x333   : > { %v1223_v41 = vmul.f32 %v7108_v38, %v7108_v38  ;;  %v1224_v42 = vmul.f32 %v7112_v40, %v7112_v40 }
 0x335   : > { %1235 = vadd.xlane.f32.xlu1 %v1222_v39  ;;  %1237 = vadd.xlane.f32.xlu0 %v1223_v41  ;;  %v7186_v39 = vld [vmem:[#allocation14] ss:$0 sm:$0xff] }
 0x339   : > { %1239 = vadd.xlane.f32.xlu1 %v1224_v42  ;;  %962 = vadd.xlane.f32.xlu0 %v7119_v44 }
 0x33d   : > { %964 = vadd.xlane.f32.xlu1 %v7123_v46  ;;  %966 = vadd.xlane.f32.xlu0 %v7126_v47 }
 0x341   : > { %968 = vadd.xlane.f32.xlu1 %v7131_v50  ;;  %970 = vadd.xlane.f32.xlu0 %v7134_v51 }
 0x345   : > { %972 = vadd.xlane.f32.xlu1 %v7139_v54  ;;  %974 = vadd.xlane.f32.xlu0 %v7142_v55 }
 0x349   : > { %976 = vadd.xlane.f32.xlu1 %v7147_v58  ;;  %978 = vadd.xlane.f32.xlu0 %v7150_v59 }
 0x34d   : > { %980 = vadd.xlane.f32.xlu1 %v7155_v62  ;;  %982 = vadd.xlane.f32.xlu0 %v7158_v63 }
 0x351   : > { %984 = vadd.xlane.f32.xlu1 %v7163_v2  ;;  %986 = vadd.xlane.f32.xlu0 %v7166_v3 }
 0x355   : > { %988 = vadd.xlane.f32.xlu1 %v7171_v5  ;;  %990 = vadd.xlane.f32.xlu0 %v7174_v6 }
 0x359   : > { %992 = vadd.xlane.f32.xlu1 %v7180_v8 }
 0x3b6   : > { %v1226_v10 = vpop.xlane.xlu0 %1225 }
 0x3b7   : > { %v1241_v11 = vmul.f32 0.0078125, %v1226_v10 }
 0x3b9   : > { %v1249_v12 = vadd.f32 1e-05, %v1241_v11 }
 0x3ba   : > { %v1228_v13 = vpop.xlane.xlu1 %1227  ;;  %v1230_v14 = vpop.xlane.xlu0 %1229 }
 0x3bb   : > { %5250 = vrsqrt.f32 %v1249_v12  ;;  %v1242_v17 = vmul.f32 0.0078125, %v1228_v13  ;;  %v1243_v18 = vmul.f32 0.0078125, %v1230_v14 }
 0x3bd   : > { %v1250_v19 = vadd.f32 1e-05, %v1242_v17  ;;  %v1251_v20 = vadd.f32 1e-05, %v1243_v18 }
 0x3be   : > { %v1232_v21 = vpop.xlane.xlu1 %1231  ;;  %v1234_v23 = vpop.xlane.xlu0 %1233 }
 0x3bf   : > { %5252 = vrsqrt.f32 %v1250_v19  ;;  %v1244_v25 = vmul.f32 0.0078125, %v1232_v21  ;;  %v1245_v27 = vmul.f32 0.0078125, %v1234_v23 }
 0x3c0   : > { %5254 = vrsqrt.f32 %v1251_v20 }
 0x3c1   : > { %v1252_v26 = vadd.f32 1e-05, %v1244_v25  ;;  %v1253_v34 = vadd.f32 1e-05, %v1245_v27 }
 0x3c2   : > { %v1236_v28 = vpop.xlane.xlu1 %1235  ;;  %v1238_v29 = vpop.xlane.xlu0 %1237 }
 0x3c3   : > { %5256 = vrsqrt.f32 %v1252_v26  ;;  %v1246_v31 = vmul.f32 0.0078125, %v1236_v28  ;;  %v1247_v48 = vmul.f32 0.0078125, %v1238_v29 }
 0x3c5   : > { %v5251_v33 = vpop.eup %5250  ;;  %v1254_v35 = vadd.f32 1e-05, %v1246_v31 }
 0x3c6   : > { %v1240_v36 = vpop.xlane.xlu1 %1239  ;;  %v963_v37 = vpop.xlane.xlu0 %962  ;;  %v1265_v41 = vmul.f32 %v5251_v33, %v7086_v15 }
 0x3c7   : > { %5258 = vrsqrt.f32 %v1254_v35  ;;  %v1248_v42 = vmul.f32 0.0078125, %v1240_v36  ;;  %v995_v43 = vmul.f32 0.0078125, %v963_v37 }
 0x3c8   : > { %5260 = vrsqrt.f32 %v1253_v34  ;;  %v1279_v52 = vmul.f32 %v7186_v39, %v1265_v41 }
 0x3c9   : > { %v5253_v45 = vpop.eup %5252  ;;  %v7190_v49 = vsub.f32 %v7119_v44, %v995_v43  ;;  %v1256_v53 = vadd.f32 1e-05, %v1248_v42  ;;  %v1255_v44 = vadd.f32 1e-05, %v1247_v48 }
 0x3ca   : > { %v965_v56 = vpop.xlane.xlu1 %964  ;;  %v967_v57 = vpop.xlane.xlu0 %966  ;;  %v1266_v61 = vmul.f32 %v5253_v45, %v7092_v22  ;;  %v1293_v13 = vadd.f32 %v7193_v60, %v1279_v52 }
 0x3cb   : > { %v5255_v0 = vpop.eup %5254  ;;  %v996_v15 = vmul.f32 0.0078125, %v965_v56  ;;  %v997_v1 = vmul.f32 0.0078125, %v967_v57  ;;  %v1027_v4 = vmul.f32 %v7190_v49, %v7190_v49  ;;  %5262 = vrsqrt.f32 %v1256_v53 }
 0x3cc   : > { %v1280_v9 = vmul.f32 %v7186_v39, %v1266_v61  ;;  %v1267_v18 = vmul.f32 %v5255_v0, %v7088_v16  ;;  %5264 = vrsqrt.f32 %v1255_v44 }
 0x3cd   : > { %v5257_v10 = vpop.eup %5256  ;;  %v7200_v11 = vsub.f32 %v7126_v47, %v997_v1  ;;  %1043 = vadd.xlane.f32.xlu0 %v1027_v4  ;;  %v7203_v12 = vsub.f32 %v7123_v46, %v996_v15 }
 0x3ce   : > { %v969_v22 = vpop.xlane.xlu1 %968  ;;  %v971_v14 = vpop.xlane.xlu0 %970  ;;  %v1294_v17 = vadd.f32 %v7193_v60, %v1280_v9  ;;  %v1268_v19 = vmul.f32 %v5257_v10, %v7096_v24  ;;  %v1281_v29 = vmul.f32 %v7186_v39, %v1267_v18 }
 0x3cf   : > { %v998_v20 = vmul.f32 0.0078125, %v969_v22  ;;  %v999_v21 = vmul.f32 0.0078125, %v971_v14  ;;  %v1028_v47 = vmul.f32 %v7203_v12, %v7203_v12  ;;  %v1029_v46 = vmul.f32 %v7200_v11, %v7200_v11 }
 0x3d0   : > { %v1486_v23 = vpack.c.bf16 %v1294_v17, %v1293_v13  ;;  %v1282_v25 = vmul.f32 %v7186_v39, %v1268_v19  ;;  %v1295_v45 = vadd.f32 %v7193_v60, %v1281_v29  ;;  %v5140_v29 = vld [vmem:[%s8664_s9 + $0x10] sm:$0xff]  }
 0x3d1   : > { %v5259_v26 = vpop.eup %5258  ;;  %v7215_v27 = vsub.f32 %v7131_v50, %v998_v20  ;;  %v7218_v16 = vsub.f32 %v7134_v51, %v999_v21  ;;  %1045 = vadd.xlane.f32.xlu1 %v1028_v47  ;;  %1047 = vadd.xlane.f32.xlu0 %v1029_v46  ;;  %v5139_v21 = vld [vmem:[%s8664_s9 + $0x8] sm:$0xff]  }
 0x3d2   : > { %1635 = vmatmul.mubr.bf16.vlgmr.msra.gmra.mrb[0].mxu1 %v1486_v23  ;;  %v973_v24 = vpop.xlane.xlu1 %972  ;;  %v975_v28 = vpop.xlane.xlu0 %974  ;;  %v1296_v51 = vadd.f32 %v7193_v60, %v1282_v25  ;;  %v1270_v36 = vmul.f32 %v5259_v26, %v7104_v32  ;;  %4668 = vmatprep.subr.bf16.mxu0 %v5139_v21 }
 0x3d3   : > { %v5261_v31 = vpop.eup %5260  ;;  %v1000_v33 = vmul.f32 0.0078125, %v973_v24  ;;  %v1001_v34 = vmul.f32 0.0078125, %v975_v28  ;;  %v1030_v35 = vmul.f32 %v7215_v27, %v7215_v27  ;;  %v1031_v50 = vmul.f32 %v7218_v16, %v7218_v16  ;;  %1644 = vmatprep.mubr.bf16.mxu1 %v6278_v7  ;;  %4669 = vmatpush3.bf16.msra.mxu0 %v5139_v21 }
 0x3d4   : > { %v1269_v48 = vmul.f32 %v5261_v31, %v7100_v30  ;;  %v1487_v57 = vpack.c.bf16 %v1296_v51, %v1295_v45  ;;  %4670 = vmatprep.subr.bf16.mxu0 %v5140_v29 }
 0x3d5   : > { %v7229_v37 = vsub.f32 %v7139_v54, %v1000_v33  ;;  %v7232_v41 = vsub.f32 %v7142_v55, %v1001_v34  ;;  %1049 = vadd.xlane.f32.xlu1 %v1030_v35  ;;  %1051 = vadd.xlane.f32.xlu0 %v1031_v50  ;;  %v5263_v54 = vpop.eup %5262  ;;  %v1284_v55 = vmul.f32 %v7186_v39, %v1270_v36  ;;  %v5141_v36 = vld [vmem:[%s8664_s9 + $0x18] sm:$0xff]  }
 0x3d6   : > { %v977_v42 = vpop.xlane.xlu1 %976  ;;  %v979_v43 = vpop.xlane.xlu0 %978  ;;  %v1283_v1 = vmul.f32 %v7186_v39, %v1269_v48  ;;  %v1272_v13 = vmul.f32 %v5263_v54, %v7112_v40 }
 0x3d7   : > { %v1002_v52 = vmul.f32 0.0078125, %v977_v42  ;;  %v1003_v53 = vmul.f32 0.0078125, %v979_v43  ;;  %v1032_v56 = vmul.f32 %v7229_v37, %v7229_v37  ;;  %v1033_v32 = vmul.f32 %v7232_v41, %v7232_v41  ;;  %v5265_v4 = vpop.eup %5264  ;;  %4671 = vmatpush3.bf16.msra.mxu0 %v5140_v29 }
 0x3d8   : > { %v1297_v19 = vadd.f32 %v7193_v60, %v1283_v1  ;;  %v1271_v20 = vmul.f32 %v5265_v4, %v7108_v38  ;;  %v1286_v23 = vmul.f32 %v7186_v39, %v1272_v13  ;;  %4672 = vmatprep.subr.bf16.mxu0 %v5141_v36 }
 0x3d9   : > { %v7242_v61 = vsub.f32 %v7147_v58, %v1002_v52  ;;  %v7245_v0 = vsub.f32 %v7150_v59, %v1003_v53  ;;  %1053 = vadd.xlane.f32.xlu1 %v1032_v56  ;;  %1055 = vadd.xlane.f32.xlu0 %v1033_v32  ;;  %v1298_v59 = vadd.f32 %v7193_v60, %v1284_v55  ;;  %v5143_v52 = vld [vmem:[%s8664_s9 + $0x28] sm:$0xff]   ;;  %v5145_v53 = vld [vmem:[%s8664_s9 + $0x38] sm:$0xff]  }
 0x3da   : > { %1645 = vmatmul.mubr.bf16.gmra.mrb[4].mxu1 %v1487_v57  ;;  %v981_v30 = vpop.xlane.xlu1 %980  ;;  %v983_v15 = vpop.xlane.xlu0 %982  ;;  %v1285_v28 = vmul.f32 %v7186_v39, %v1271_v20  ;;  %v1300_v34 = vadd.f32 %v7193_v60, %v1286_v23 }
 0x3db   : > { %v1004_v9 = vmul.f32 0.0078125, %v981_v30  ;;  %v1005_v10 = vmul.f32 0.0078125, %v983_v15  ;;  %v1034_v44 = vmul.f32 %v7242_v61, %v7242_v61  ;;  %v1035_v58 = vmul.f32 %v7245_v0, %v7245_v0  ;;  %1654 = vmatprep.mubr.bf16.mxu1 %v6278_v7  ;;  %4673 = vmatpush3.bf16.msra.mxu0 %v5141_v36 }
 0x3dc   : > { %v1488_v46 = vpack.c.bf16 %v1298_v59, %v1297_v19  ;;  %v1299_v51 = vadd.f32 %v7193_v60, %v1285_v28  ;;  %v5142_v60 = vld [vmem:[%s8664_s9 + $0x20] sm:$0xff]  }
 0x3dd   : > { %v7256_v22 = vsub.f32 %v7155_v62, %v1004_v9  ;;  %v7259_v14 = vsub.f32 %v7158_v63, %v1005_v10  ;;  %1057 = vadd.xlane.f32.xlu1 %v1034_v44  ;;  %1059 = vadd.xlane.f32.xlu0 %v1035_v58 }
 0x3de   : > { %v985_v17 = vpop.xlane.xlu1 %984  ;;  %v987_v18 = vpop.xlane.xlu0 %986  ;;  %v1489_v45 = vpack.c.bf16 %v1300_v34, %v1299_v51  ;;  %4674 = vmatprep.subr.bf16.mxu0 %v5142_v60 }
 0x3df   : > { %v1006_v47 = vmul.f32 0.0078125, %v985_v17  ;;  %v1007_v40 = vmul.f32 0.0078125, %v987_v18  ;;  %v1036_v62 = vmul.f32 %v7256_v22, %v7256_v22  ;;  %v1037_v63 = vmul.f32 %v7259_v14, %v7259_v14  ;;  %4675 = vmatpush3.bf16.msra.mxu0 %v5142_v60 }
 0x3e0   : > { %4676 = vmatprep.subr.bf16.mxu0 %v5143_v52 }
 0x3e1   : > { %v7272_v25 = vsub.f32 %v7163_v2, %v1006_v47  ;;  %v7275_v38 = vsub.f32 %v7166_v3, %v1007_v40  ;;  %1061 = vadd.xlane.f32.xlu1 %v1036_v62  ;;  %1063 = vadd.xlane.f32.xlu0 %v1037_v63 }
 0x3e2   : > { %1655 = vmatmul.mubr.bf16.gmra.mrb[8].mxu1 %v1488_v46  ;;  %v989_v26 = vpop.xlane.xlu1 %988  ;;  %v991_v24 = vpop.xlane.xlu0 %990 }
 0x3e3   : > { %v1008_v31 = vmul.f32 0.0078125, %v989_v26  ;;  %v1009_v33 = vmul.f32 0.0078125, %v991_v24  ;;  %v1038_v2 = vmul.f32 %v7272_v25, %v7272_v25  ;;  %v1039_v3 = vmul.f32 %v7275_v38, %v7275_v38  ;;  %1664 = vmatprep.mubr.bf16.mxu1 %v6278_v7  ;;  %4677 = vmatpush3.bf16.msra.mxu0 %v5143_v52  ;;  %v7319_v24 = vld [vmem:[#allocation11] ss:$0 sm:$0xff] }
 0x3e5   : > { %v7288_v39 = vsub.f32 %v7171_v5, %v1008_v31  ;;  %v7291_v35 = vsub.f32 %v7174_v6, %v1009_v33  ;;  %1065 = vadd.xlane.f32.xlu1 %v1038_v2  ;;  %1067 = vadd.xlane.f32.xlu0 %v1039_v3 }
 0x3e6   : > { %v993_v50 = vpop.xlane.xlu1 %992 }
 0x3e7   : > { %v1010_v42 = vmul.f32 0.0078125, %v993_v50  ;;  %v1040_v43 = vmul.f32 %v7288_v39, %v7288_v39  ;;  %v1041_v5 = vmul.f32 %v7291_v35, %v7291_v35 }
 0x3e9   : > { %v7302_v6 = vsub.f32 %v7180_v8, %v1010_v42  ;;  %1069 = vadd.xlane.f32.xlu1 %v1040_v43  ;;  %1071 = vadd.xlane.f32.xlu0 %v1041_v5  ;;  %v5144_v8 = vld [vmem:[%s8664_s9 + $0x30] sm:$0xff]  }
 0x3ea   : > { %1665 = vmatmul.mubr.bf16.gmra.mrb[12].mxu1 %v1489_v45  ;;  %4678 = vmatprep.subr.bf16.mxu0 %v5144_v8 }
 0x3eb   : > { %v1042_v48 = vmul.f32 %v7302_v6, %v7302_v6  ;;  %4679 = vmatpush3.bf16.msra.mxu0 %v5144_v8 }
 0x3ec   : > { %4680 = vmatprep.subr.bf16.mxu0 %v5145_v53 }
 0x3ed   : > { %1073 = vadd.xlane.f32.xlu1 %v1042_v48 }
 0x3ef   : > { %4681 = vmatpush3.bf16.msra.mxu0 %v5145_v53 }
 0x45a   : > { %v1044_v56 = vpop.xlane.xlu0 %1043 }
 0x45b   : > { %v1075_v32 = vmul.f32 0.0078125, %v1044_v56 }
 0x45d   : > { %v1091_v54 = vadd.f32 1e-05, %v1075_v32 }
 0x45e   : > { %v1046_v57 = vpop.xlane.xlu1 %1045  ;;  %v1048_v55 = vpop.xlane.xlu0 %1047 }
 0x45f   : > { %5266 = vrsqrt.f32 %v1091_v54  ;;  %v1076_v30 = vmul.f32 0.0078125, %v1046_v57  ;;  %v1077_v15 = vmul.f32 0.0078125, %v1048_v55 }
 0x461   : > { %v1092_v1 = vadd.f32 1e-05, %v1076_v30  ;;  %v1093_v4 = vadd.f32 1e-05, %v1077_v15 }
 0x462   : > { %v1050_v9 = vpop.xlane.xlu1 %1049  ;;  %v1052_v10 = vpop.xlane.xlu0 %1051 }
 0x463   : > { %5268 = vrsqrt.f32 %v1092_v1  ;;  %v1078_v44 = vmul.f32 0.0078125, %v1050_v9  ;;  %v1079_v58 = vmul.f32 0.0078125, %v1052_v10 }
 0x464   : > { %5270 = vrsqrt.f32 %v1093_v4 }
 0x465   : > { %v1094_v59 = vadd.f32 1e-05, %v1078_v44  ;;  %v1095_v13 = vadd.f32 1e-05, %v1079_v58 }
 0x466   : > { %v1054_v17 = vpop.xlane.xlu1 %1053  ;;  %v1056_v18 = vpop.xlane.xlu0 %1055 }
 0x467   : > { %5272 = vrsqrt.f32 %v1094_v59  ;;  %v1080_v19 = vmul.f32 0.0078125, %v1054_v17  ;;  %v1081_v20 = vmul.f32 0.0078125, %v1056_v18 }
 0x468   : > { %5274 = vrsqrt.f32 %v1095_v13 }
 0x469   : > { %v5267_v21 = vpop.eup %5266  ;;  %v1096_v47 = vadd.f32 1e-05, %v1080_v19  ;;  %v1097_v40 = vadd.f32 1e-05, %v1081_v20 }
 0x46a   : > { %v1058_v62 = vpop.xlane.xlu1 %1057  ;;  %v1060_v63 = vpop.xlane.xlu0 %1059  ;;  %v1123_v46 = vmul.f32 %v5267_v21, %v7190_v49  ;;  %v7323_v49 = vld [vmem:[#allocation13] ss:$0 sm:$0xff] }
 0x46b   : > { %5276 = vrsqrt.f32 %v1096_v47  ;;  %v1082_v23 = vmul.f32 0.0078125, %v1058_v62  ;;  %v1083_v26 = vmul.f32 0.0078125, %v1060_v63 }
 0x46c   : > { %5278 = vrsqrt.f32 %v1097_v40  ;;  %v1145_v50 = vmul.f32 %v7319_v24, %v1123_v46 }
 0x46d   : > { %v5269_v28 = vpop.eup %5268  ;;  %v1098_v29 = vadd.f32 1e-05, %v1082_v23  ;;  %v1099_v31 = vadd.f32 1e-05, %v1083_v26 }
 0x46e   : > { %v5271_v33 = vpop.eup %5270  ;;  %v1062_v2 = vpop.xlane.xlu1 %1061  ;;  %v1124_v34 = vmul.f32 %v5269_v28, %v7203_v12  ;;  %v1167_v12 = vadd.f32 %v7323_v49, %v1145_v50 }
 0x46f   : > { %v1064_v3 = vpop.xlane.xlu0 %1063  ;;  %5280 = vrsqrt.f32 %v1098_v29  ;;  %v1084_v51 = vmul.f32 0.0078125, %v1062_v2  ;;  %v1125_v42 = vmul.f32 %v5271_v33, %v7200_v11 }
 0x470   : > { %v1085_v36 = vmul.f32 0.0078125, %v1064_v3  ;;  %5282 = vrsqrt.f32 %v1099_v31  ;;  %v1146_v43 = vmul.f32 %v7319_v24, %v1124_v34 }
 0x471   : > { %v5273_v5 = vpop.eup %5272  ;;  %v1100_v45 = vadd.f32 1e-05, %v1084_v51  ;;  %v1147_v32 = vmul.f32 %v7319_v24, %v1125_v42 }
 0x472   : > { %v1101_v60 = vadd.f32 1e-05, %v1085_v36  ;;  %v5275_v48 = vpop.eup %5274  ;;  %v1066_v52 = vpop.xlane.xlu1 %1065  ;;  %v1168_v53 = vadd.f32 %v7323_v49, %v1146_v43  ;;  %v1126_v56 = vmul.f32 %v5273_v5, %v7215_v27 }
 0x473   : > { %v1068_v8 = vpop.xlane.xlu0 %1067  ;;  %5284 = vrsqrt.f32 %v1100_v45  ;;  %v1086_v54 = vmul.f32 0.0078125, %v1066_v52  ;;  %v1127_v30 = vmul.f32 %v5275_v48, %v7218_v16  ;;  %v1169_v27 = vadd.f32 %v7323_v49, %v1147_v32 }
 0x474   : > { %v1087_v11 = vmul.f32 0.0078125, %v1068_v8  ;;  %5286 = vrsqrt.f32 %v1101_v60  ;;  %v1301_v57 = vpack.c.bf16 %v1168_v53, %v1167_v12  ;;  %v1148_v55 = vmul.f32 %v7319_v24, %v1126_v56 }
 0x475   : > { %v5277_v15 = vpop.eup %5276  ;;  %v1102_v1 = vadd.f32 1e-05, %v1086_v54  ;;  %v1149_v13 = vmul.f32 %v7319_v24, %v1127_v30 }
 0x476   : > { %v1103_v4 = vadd.f32 1e-05, %v1087_v11  ;;  %v5279_v9 = vpop.eup %5278  ;;  %v1070_v10 = vpop.xlane.xlu1 %1069  ;;  %4682 = vmatprep.mubr.bf16.mxu0 %v1301_v57  ;;  %v1170_v58 = vadd.f32 %v7323_v49, %v1148_v55  ;;  %v1128_v59 = vmul.f32 %v5277_v15, %v7229_v37 }
 0x477   : > { %v1072_v44 = vpop.xlane.xlu0 %1071  ;;  %5288 = vrsqrt.f32 %v1102_v1  ;;  %v1088_v17 = vmul.f32 0.0078125, %v1070_v10  ;;  %v1129_v16 = vmul.f32 %v5279_v9, %v7232_v41  ;;  %v1171_v46 = vadd.f32 %v7323_v49, %v1149_v13  ;;  %v1509_v13 = vld [vmem:[#allocation8 + $0x18] sm:$0xff] }
 0x478   : > { %v1089_v18 = vmul.f32 0.0078125, %v1072_v44  ;;  %5290 = vrsqrt.f32 %v1103_v4  ;;  %v1302_v19 = vpack.c.bf16 %v1170_v58, %v1169_v27  ;;  %v1150_v20 = vmul.f32 %v7319_v24, %v1128_v59  ;;  %v1507_v58 = vld [vmem:[#allocation8 + $0x8] sm:$0xff] }
 0x479   : > { %v5281_v21 = vpop.eup %5280  ;;  %v1104_v47 = vadd.f32 1e-05, %v1088_v17  ;;  %v1151_v26 = vmul.f32 %v7319_v24, %v1129_v16 }
 0x47a   : > { %v1105_v40 = vadd.f32 1e-05, %v1089_v18  ;;  %v5283_v62 = vpop.eup %5282  ;;  %v1074_v63 = vpop.xlane.xlu1 %1073  ;;  %4683 = vmatmul.mubr.bf16.vlgmr.msra.gmra.mrb[0].mxu0 %v1302_v19  ;;  %v1172_v37 = vadd.f32 %v7323_v49, %v1150_v20  ;;  %v1130_v23 = vmul.f32 %v5281_v21, %v7242_v61  ;;  %v1511_v21 = vld [vmem:[#allocation8 + $0x28] sm:$0xff] }
 0x47b   : > { %5292 = vrsqrt.f32 %v1104_v47  ;;  %v1090_v41 = vmul.f32 0.0078125, %v1074_v63  ;;  %v1131_v28 = vmul.f32 %v5283_v62, %v7245_v0  ;;  %v1173_v34 = vadd.f32 %v7323_v49, %v1151_v26  ;;  %v1513_v47 = vld [vmem:[#allocation8 + $0x38] sm:$0xff]  ;;  %v1508_v26 = vld [vmem:[#allocation8 + $0x10] sm:$0xff] }
 0x47c   : > { %5294 = vrsqrt.f32 %v1105_v40  ;;  %v1303_v29 = vpack.c.bf16 %v1172_v37, %v1171_v46  ;;  %v1152_v31 = vmul.f32 %v7319_v24, %v1130_v23  ;;  %v1506_v46 = vld [vmem:[#allocation8] sm:$0xff] }
 0x47d   : > { %v5285_v33 = vpop.eup %5284  ;;  %v1106_v2 = vadd.f32 1e-05, %v1090_v41  ;;  %v1153_v51 = vmul.f32 %v7319_v24, %v1131_v28  ;;  %v1514_v23 = vld [vmem:[#allocation8 + $0x40] sm:$0xff]  ;;  %v1516_v28 = vld [vmem:[#allocation8 + $0x50] sm:$0xff] }
 0x47e   : > { %v5287_v3 = vpop.eup %5286  ;;  %4686 = vmatprep.mubr.bf16.mxu0 %v1303_v29  ;;  %v1174_v50 = vadd.f32 %v7323_v49, %v1152_v31  ;;  %v1132_v61 = vmul.f32 %v5285_v33, %v7256_v22  ;;  %v1515_v33 = vld [vmem:[#allocation8 + $0x48] sm:$0xff] }
 0x47f   : > { %5296 = vrsqrt.f32 %v1106_v2  ;;  %v1133_v36 = vmul.f32 %v5287_v3, %v7259_v14  ;;  %v1175_v45 = vadd.f32 %v7323_v49, %v1153_v51  ;;  %v1517_v3 = vld [vmem:[#allocation8 + $0x58] sm:$0xff] }
 0x480   : > { %v1304_v0 = vpack.c.bf16 %v1174_v50, %v1173_v34  ;;  %v1154_v42 = vmul.f32 %v7319_v24, %v1132_v61 }
 0x481   : > { %v5289_v43 = vpop.eup %5288  ;;  %v1155_v52 = vmul.f32 %v7319_v24, %v1133_v36 }
 0x482   : > { %v5291_v5 = vpop.eup %5290  ;;  %4687 = vmatmul.mubr.bf16.gmra.mrb[4].mxu0 %v1304_v0  ;;  %v1176_v60 = vadd.f32 %v7323_v49, %v1154_v42  ;;  %v1134_v48 = vmul.f32 %v5289_v43, %v7272_v25 }
 0x483   : > { %v1135_v22 = vmul.f32 %v5291_v5, %v7275_v38  ;;  %v1177_v56 = vadd.f32 %v7323_v49, %v1155_v52  ;;  %v1510_v5 = vld [vmem:[#allocation8 + $0x20] sm:$0xff]  ;;  %v1512_v52 = vld [vmem:[#allocation8 + $0x30] sm:$0xff] }
 0x484   : > { %v1305_v8 = vpack.c.bf16 %v1176_v60, %v1175_v45  ;;  %v1156_v12 = vmul.f32 %v7319_v24, %v1134_v48  ;;  %v1518_v60 = vld [vmem:[#allocation8 + $0x60] sm:$0xff] }
 0x485   : > { %v5293_v14 = vpop.eup %5292  ;;  %v1157_v11 = vmul.f32 %v7319_v24, %v1135_v22 }
 0x486   : > { %v5295_v53 = vpop.eup %5294  ;;  %4690 = vmatprep.mubr.bf16.mxu0 %v1305_v8  ;;  %v1178_v32 = vadd.f32 %v7323_v49, %v1156_v12  ;;  %v1136_v54 = vmul.f32 %v5293_v14, %v7288_v39  ;;  %v1520_v8 = vld [vmem:[#allocation8 + $0x70] sm:$0xff] }
 0x487   : > { %v1137_v25 = vmul.f32 %v5295_v53, %v7291_v35  ;;  %v1179_v30 = vadd.f32 %v7323_v49, %v1157_v11  ;;  %v1519_v53 = vld [vmem:[#allocation8 + $0x68] sm:$0xff] }
 0x488   : > { %v1306_v57 = vpack.c.bf16 %v1178_v32, %v1177_v56  ;;  %v1158_v55 = vmul.f32 %v7319_v24, %v1136_v54  ;;  %v1521_v32 = vld [vmem:[#allocation8 + $0x78] sm:$0xff] }
 0x489   : > { %v5297_v38 = vpop.eup %5296  ;;  %v1159_v4 = vmul.f32 %v7319_v24, %v1137_v25 }
 0x48a   : > { %4691 = vmatmul.mubr.bf16.gmra.mrb[8].mxu0 %v1306_v57  ;;  %v1180_v15 = vadd.f32 %v7323_v49, %v1158_v55  ;;  %v1138_v1 = vmul.f32 %v5297_v38, %v7302_v6 }
 0x48b   : > { %v1181_v10 = vadd.f32 %v7323_v49, %v1159_v4 }
 0x48c   : > { %v1307_v9 = vpack.c.bf16 %v1180_v15, %v1179_v30  ;;  %v1160_v39 = vmul.f32 %v7319_v24, %v1138_v1 }
 0x48e   : > { %4694 = vmatprep.mubr.bf16.mxu0 %v1307_v9  ;;  %v1182_v35 = vadd.f32 %v7323_v49, %v1160_v39 }
 0x490   : > { %v1308_v44 = vpack.c.bf16 %v1182_v35, %v1181_v10 }
 0x492   : > { %4695 = vmatmul.mubr.bf16.gmra.mrb[12].mxu0 %v1308_v44 }
 0x4a5   : > { %v1636_v27 = vpop.f32.mrb[0].mxu1 }
 0x4a6   : > { %v1638_v59 = vpop.f32.mrb[1].mxu1  ;;  %v1637_v29 = vadd.f32 %v1636_v27, %v1506_v46 }
 0x4a7   : > { %v1640_v17 = vpop.f32.mrb[2].mxu1  ;;  %v1639_v16 = vadd.f32 %v1638_v59, %v1507_v58 }
 0x4a8   : > { %v1642_v18 = vpop.f32.mrb[3].mxu1  ;;  %v1641_v50 = vadd.f32 %v1640_v17, %v1508_v26 }
 0x4a9   : > { %v1643_v6 = vadd.f32 %v1642_v18, %v1509_v13 }
 0x4ab   : > { %v2003_v19 = vpack.c.bf16 %v1643_v6, %v1639_v16 }
 0x4ad   : > { %v1646_v20 = vpop.f32.mrb[4].mxu1  ;;  %4730 = vmatprep.subr.bf16.mxu1 %v2003_v19 }
 0x4ae   : > { %v1648_v24 = vpop.f32.mrb[5].mxu1  ;;  %4731 = vmatpush3.bf16.msra.mxu1 %v2003_v19  ;;  %v1647_v12 = vadd.f32 %v1646_v20, %v1510_v5 }
 0x4af   : > { %v1650_v40 = vpop.f32.mrb[6].mxu1  ;;  %v1649_v49 = vadd.f32 %v1648_v24, %v1511_v21 }
 0x4b0   : > { %v1652_v62 = vpop.f32.mrb[7].mxu1  ;;  %v1651_v11 = vadd.f32 %v1650_v40, %v1512_v52 }
 0x4b1   : > { %v1653_v63 = vadd.f32 %v1652_v62, %v1513_v47 }
 0x4b3   : > { %v2004_v37 = vpack.c.bf16 %v1653_v63, %v1649_v49 }
 0x4b5   : > { %v1656_v41 = vpop.f32.mrb[8].mxu1  ;;  %4732 = vmatprep.subr.bf16.mxu1 %v2004_v37 }
 0x4b6   : > { %v1657_v31 = vadd.f32 %v1656_v41, %v1514_v23  ;;  %v1658_v2 = vpop.f32.mrb[9].mxu1  ;;  %4733 = vmatpush3.bf16.msra.mxu1 %v2004_v37 }
 0x4b7   : > { %v1660_v34 = vpop.f32.mrb[10].mxu1  ;;  %v1659_v0 = vadd.f32 %v1658_v2, %v1515_v33 }
 0x4b8   : > { %v1675_v61 = vmax.f32 %v1637_v29, %v1657_v31  ;;  %v1661_v51 = vadd.f32 %v1660_v34, %v1516_v28  ;;  %v1662_v36 = vpop.f32.mrb[11].mxu1 }
 0x4b9   : > { %v1663_v42 = vadd.f32 %v1662_v36, %v1517_v3 }
 0x4ba   : > { %v1676_v43 = vmax.f32 %v1641_v50, %v1661_v51 }
 0x4bb   : > { %v2005_v45 = vpack.c.bf16 %v1663_v42, %v1659_v0 }
 0x4bc   : > { %v1679_v48 = vmax.f32 %v1675_v61, %v1676_v43 }
 0x4bd   : > { %v1666_v22 = vpop.f32.mrb[12].mxu1  ;;  %4734 = vmatprep.subr.bf16.mxu1 %v2005_v45 }
 0x4be   : > { %v1667_v14 = vadd.f32 %v1666_v22, %v1518_v60  ;;  %v1668_v56 = vpop.f32.mrb[13].mxu1  ;;  %4735 = vmatpush3.bf16.msra.mxu1 %v2005_v45 }
 0x4bf   : > { %v1670_v54 = vpop.f32.mrb[14].mxu1  ;;  %v1669_v38 = vadd.f32 %v1668_v56, %v1519_v53 }
 0x4c0   : > { %v1677_v25 = vmax.f32 %v1647_v12, %v1667_v14  ;;  %v1671_v57 = vadd.f32 %v1670_v54, %v1520_v8  ;;  %v1672_v55 = vpop.f32.mrb[15].mxu1 }
 0x4c1   : > { %v1673_v30 = vadd.f32 %v1672_v55, %v1521_v32  ;;  %v7370_v55 = vld [vmem:[#allocation10] sm:$0xff]  }
 0x4c2   : > { %v1678_v15 = vmax.f32 %v1651_v11, %v1671_v57  ;;  %4698 = vmatprep.subr.bf16.mxu0 %v7370_v55 }
 0x4c3   : > { %v2006_v1 = vpack.c.bf16 %v1673_v30, %v1669_v38  ;;  %4699 = vmatpush3.bf16.msra.mxu0 %v7370_v55  ;;  %v1325_v38 = vld [vmem:[%s7040_s26] sm:$0xff] }
 0x4c4   : > { %v1680_v4 = vmax.f32 %v1677_v25, %v1678_v15 }
 0x4c5   : > { %4736 = vmatprep.subr.bf16.mxu1 %v2006_v1 }
 0x4c6   : > { %v1681_v9 = vmax.f32 %v1679_v48, %v1680_v4  ;;  %4737 = vmatpush3.bf16.msra.mxu1 %v2006_v1 }
 0x4c8   : > { %v1682_v39 = vrot.slane %v1681_v9, 4 }
 0x4ca   : > { %v1683_v10 = vmax.f32 %v1681_v9, %v1682_v39  ;;  %v1326_v39 = vld [vmem:[%s7040_s26 + $0x8] sm:$0xff] }
 0x4cc   : > { %v1684_v35 = vrot.slane %v1683_v10, 2 }
 0x4ce   : > { %v1685_v44 = vmax.f32 %v1683_v10, %v1684_v35  ;;  %v1327_v35 = vld [vmem:[%s7040_s26 + $0x10] sm:$0xff] }
 0x4d0   : > { %v1686_v27 = vrot.slane %v1685_v44, 1 }
 0x4d2   : > { %v1687_v58 = vmax.f32 %v1685_v44, %v1686_v27 }
 0x4d4   : > { %v1688_v59 = vsub.f32 %v1637_v29, %v1687_v58  ;;  %v1689_v13 = vsub.f32 %v1641_v50, %v1687_v58  ;;  %v1690_v17 = vsub.f32 %v1647_v12, %v1687_v58  ;;  %v1691_v18 = vsub.f32 %v1651_v11, %v1687_v58 }
 0x4d5   : > { %v1692_v16 = vsub.f32 %v1657_v31, %v1687_v58  ;;  %v1693_v6 = vsub.f32 %v1661_v51, %v1687_v58  ;;  %v1694_v19 = vsub.f32 %v1667_v14, %v1687_v58  ;;  %v1695_v20 = vsub.f32 %v1671_v57, %v1687_v58 }
 0x4d6   : > { %v1696_v21 = vmul.f32 1.442695, %v1688_v59  ;;  %v1698_v24 = vmul.f32 1.442695, %v1689_v13  ;;  %v1700_v47 = vmul.f32 1.442695, %v1690_v17 }
 0x4d7   : > { %v1702_v40 = vmul.f32 1.442695, %v1691_v18  ;;  %v1704_v62 = vmul.f32 1.442695, %v1692_v16  ;;  %v1706_v49 = vmul.f32 1.442695, %v1693_v6 }
 0x4d8   : > { %5298 = vpow2.f32 %v1696_v21  ;;  %v1708_v63 = vmul.f32 1.442695, %v1694_v19  ;;  %v1710_v46 = vmul.f32 1.442695, %v1695_v20  ;;  %v1328_v13 = vld [vmem:[%s7040_s26 + $0x18] sm:$0xff]  ;;  %v1329_v16 = vld [vmem:[%s7040_s26 + $0x20] sm:$0xff] }
 0x4d9   : > { %5300 = vpow2.f32 %v1698_v24  ;;  %v1330_v24 = vld [vmem:[%s7040_s26 + $0x28] sm:$0xff] }
 0x4da   : > { %5302 = vpow2.f32 %v1700_v47 }
 0x4db   : > { %5304 = vpow2.f32 %v1702_v40 }
 0x4dc   : > { %5306 = vpow2.f32 %v1704_v62  ;;  %v7397_v62 = vld [vmem:[#allocation10 + $0x8] sm:$0xff]  }
 0x4dd   : > { %5308 = vpow2.f32 %v1706_v49  ;;  %v1331_v49 = vld [vmem:[%s7040_s26 + $0x30] sm:$0xff]  ;;  %4700 = vmatprep.subr.bf16.mxu0 %v7397_v62 }
 0x4de   : > { %5310 = vpow2.f32 %v1708_v63  ;;  %4701 = vmatpush3.bf16.msra.mxu0 %v7397_v62 }
 0x4df   : > { %5312 = vpow2.f32 %v1710_v46  ;;  %v1340_v46 = vld [vmem:[%s7040_s26 + $0x78] sm:$0xff] }
 0x4e2   : > { %v5299_v37 = vpop.eup %5298 }
 0x4e3   : > { %v5301_v23 = vpop.eup %5300 }
 0x4e4   : > { %v1712_v26 = vadd.f32 %v5301_v23, %v5299_v37  ;;  %v5303_v41 = vpop.eup %5302 }
 0x4e5   : > { %v5305_v29 = vpop.eup %5304 }
 0x4e6   : > { %v1713_v28 = vadd.f32 %v5303_v41, %v1712_v26  ;;  %v5307_v33 = vpop.eup %5306 }
 0x4e7   : > { %v5309_v3 = vpop.eup %5308 }
 0x4e8   : > { %v1714_v31 = vadd.f32 %v5305_v29, %v1713_v28  ;;  %v5311_v50 = vpop.eup %5310  ;;  %v1332_v28 = vld [vmem:[%s7040_s26 + $0x38] sm:$0xff] }
 0x4e9   : > { %v5313_v51 = vpop.eup %5312 }
 0x4ea   : > { %v1715_v2 = vadd.f32 %v5307_v33, %v1714_v31 }
 0x4ec   : > { %v1716_v34 = vadd.f32 %v5309_v3, %v1715_v2  ;;  %v7417_v2 = vld [vmem:[#allocation10 + $0x18] sm:$0xff]  }
 0x4ee   : > { %v1717_v61 = vadd.f32 %v5311_v50, %v1716_v34 }
 0x4f0   : > { %v1718_v36 = vadd.f32 %v5313_v51, %v1717_v61  ;;  %v1334_v61 = vld [vmem:[%s7040_s26 + $0x48] sm:$0xff] }
 0x4f2   : > { %v1719_v0 = vrot.slane %v1718_v36, 4 }
 0x4f4   : > { %v1720_v42 = vadd.f32 %v1719_v0, %v1718_v36  ;;  %v7433_v0 = vld [vmem:[#allocation10 + $0x28] sm:$0xff]  }
 0x4f6   : > { %v1721_v43 = vrot.slane %v1720_v42, 2 }
 0x4f8   : > { %v1722_v5 = vadd.f32 %v1721_v43, %v1720_v42  ;;  %v1335_v42 = vld [vmem:[%s7040_s26 + $0x50] sm:$0xff] }
 0x4fa   : > { %v1723_v45 = vrot.slane %v1722_v5, 1 }
 0x4fc   : > { %v1724_v60 = vadd.f32 %v1723_v45, %v1722_v5  ;;  %v7442_v45 = vld [vmem:[#allocation10 + $0x30] sm:$0xff]  }
 0x4fe   : > { %5314 = vrcp.f32 %v1724_v60  ;;  %v1336_v60 = vld [vmem:[%s7040_s26 + $0x58] sm:$0xff] }
 0x508   : > { %v5315_v48 = vpop.eup %5314 }
 0x509   : > { %v1726_v52 = vmul.f32 %v5315_v48, %v5299_v37  ;;  %v1727_v22 = vmul.f32 %v5315_v48, %v5301_v23  ;;  %v1728_v8 = vmul.f32 %v5315_v48, %v5303_v41  ;;  %v1729_v12 = vmul.f32 %v5315_v48, %v5305_v29  ;;  %v7406_v41 = vld [vmem:[#allocation10 + $0x10] sm:$0xff]  }
 0x50a   : > { %v1730_v14 = vmul.f32 %v5315_v48, %v5307_v33  ;;  %v1731_v53 = vmul.f32 %v5315_v48, %v5309_v3  ;;  %v1732_v56 = vmul.f32 %v5315_v48, %v5311_v50  ;;  %v1733_v32 = vmul.f32 %v5315_v48, %v5313_v51  ;;  %4702 = vmatprep.subr.bf16.mxu0 %v7406_v41  ;;  %v1333_v3 = vld [vmem:[%s7040_s26 + $0x40] sm:$0xff] }
 0x50b   : > { %v1999_v54 = vpack.c.bf16 %v1727_v22, %v1726_v52  ;;  %v2000_v11 = vpack.c.bf16 %v1729_v12, %v1728_v8  ;;  %4703 = vmatpush3.bf16.msra.mxu0 %v7406_v41  ;;  %v7425_v50 = vld [vmem:[#allocation10 + $0x20] sm:$0xff]   ;;  %v7453_v8 = vld [vmem:[#allocation10 + $0x38] sm:$0xff]  }
 0x50c   : > { %v2001_v25 = vpack.c.bf16 %v1731_v53, %v1730_v14  ;;  %v2002_v57 = vpack.c.bf16 %v1733_v32, %v1732_v56  ;;  %4704 = vmatprep.subr.bf16.mxu0 %v7417_v2  ;;  %v1337_v22 = vld [vmem:[%s7040_s26 + $0x60] sm:$0xff]  ;;  %v1338_v53 = vld [vmem:[%s7040_s26 + $0x68] sm:$0xff] }
 0x50d   : > { %2007 = vxpose.xlu0.c.b16.start [1/4] (short) %v1999_v54, 128  ;;  %v1339_v54 = vld [vmem:[%s7040_s26 + $0x70] sm:$0xff]  ;;  %s8706_s26 = sld [smem:[#allocation51_spill]] }
 0x50f   : > { %4705 = vmatpush3.bf16.msra.mxu0 %v7417_v2 }
 0x510   : > { %4706 = vmatprep.subr.bf16.mxu0 %v7425_v50 }
 0x511   : > { %2008 = vxpose.xlu0.c.b16.cont [2/4] (short) %v2000_v11, 128 }
 0x513   : > { %4707 = vmatpush3.bf16.msra.mxu0 %v7425_v50  ;;  %s4456_s30 = sshll.u32 %s8706_s26, 5 }
 0x514   : > { %4708 = vmatprep.subr.bf16.mxu0 %v7433_v0 }
 0x515   : > { %2009 = vxpose.xlu0.c.b16.cont [3/4] (short) %v2001_v25, 128 }
 0x517   : > { %4709 = vmatpush3.bf16.msra.mxu0 %v7433_v0 }
 0x518   : > { %4710 = vmatprep.subr.bf16.mxu0 %v7442_v45 }
 0x519   : > { %2010 = vxpose.xlu0.c.b16.end [4/4] (short) %v2002_v57, 128 }
 0x51b   : > { %4711 = vmatpush3.bf16.msra.mxu0 %v7442_v45 }
 0x51c   : > { %4712 = vmatprep.subr.bf16.mxu0 %v7453_v8 }
 0x51f   : > { %4713 = vmatpush3.bf16.msra.mxu0 %v7453_v8 }
 0x54d   : > { %v4684_v30 = vpop.f32.mrb[0].mxu0 }
 0x54e   : > { %v1423_v15 = vpop.f32.mrb[1].mxu0  ;;  %v7383_v58 = vadd.f32 %v4684_v30, %v1327_v35  ;;  %v5154_v30 = vld [vmem:[#allocation22] sm:$0xff]  }
 0x54f   : > { %v7375_v1 = vadd.f32 %v1423_v15, %v1325_v38  ;;  %v4685_v4 = vpop.f32.mrb[2].mxu0  ;;  %4754 = vmatprep.subr.bf16.mxu0 %v5154_v30 }
 0x550   : > { %v1426_v9 = vpop.f32.mrb[3].mxu0  ;;  %v7387_v18 = vadd.f32 %v4685_v4, %v1328_v13 }
 0x551   : > { %1734 = vmax.xlane.f32.xlu1 %v7375_v1  ;;  %v7379_v10 = vadd.f32 %v1426_v9, %v1326_v39 }
 0x555   : > { %1736 = vmax.xlane.f32.xlu1 %v7379_v10  ;;  %v4688_v44 = vpop.f32.mrb[4].mxu0 }
 0x556   : > { %v1439_v27 = vpop.f32.mrb[5].mxu0  ;;  %v7403_v23 = vadd.f32 %v4688_v44, %v1331_v49 }
 0x557   : > { %v4689_v59 = vpop.f32.mrb[6].mxu0  ;;  %v7391_v20 = vadd.f32 %v1439_v27, %v1329_v16 }
 0x558   : > { %v1442_v17 = vpop.f32.mrb[7].mxu0  ;;  %v7414_v33 = vadd.f32 %v4689_v59, %v1332_v28 }
 0x559   : > { %1738 = vmax.xlane.f32.xlu1 %v7383_v58  ;;  %v7395_v40 = vadd.f32 %v1442_v17, %v1330_v24 }
 0x55d   : > { %1740 = vmax.xlane.f32.xlu1 %v7387_v18  ;;  %v4692_v6 = vpop.f32.mrb[8].mxu0 }
 0x55e   : > { %v1455_v19 = vpop.f32.mrb[9].mxu0  ;;  %v7439_v43 = vadd.f32 %v4692_v6, %v1335_v42  ;;  %v5156_v42 = vld [vmem:[#allocation22 + $0x10] sm:$0xff]  }
 0x55f   : > { %v4693_v21 = vpop.f32.mrb[10].mxu0  ;;  %v7422_v34 = vadd.f32 %v1455_v19, %v1333_v3  ;;  %v5155_v3 = vld [vmem:[#allocation22 + $0x8] sm:$0xff]  }
 0x560   : > { %v1458_v47 = vpop.f32.mrb[11].mxu0  ;;  %v7448_v48 = vadd.f32 %v4693_v21, %v1336_v60 }
 0x561   : > { %1742 = vmax.xlane.f32.xlu1 %v7391_v20  ;;  %v7430_v51 = vadd.f32 %v1458_v47, %v1334_v61 }
 0x565   : > { %1744 = vmax.xlane.f32.xlu1 %v7395_v40  ;;  %v4696_v63 = vpop.f32.mrb[12].mxu0 }
 0x566   : > { %v1471_v37 = vpop.f32.mrb[13].mxu0  ;;  %v7468_v11 = vadd.f32 %v4696_v63, %v1339_v54 }
 0x567   : > { %v4697_v26 = vpop.f32.mrb[14].mxu0  ;;  %v7456_v12 = vadd.f32 %v1471_v37, %v1337_v22 }
 0x568   : > { %v7409_v29 = vadd.f32 %v4697_v26, %v1340_v46  ;;  %v1474_v31 = vpop.f32.mrb[15].mxu0 }
 0x569   : > { %1746 = vmax.xlane.f32.xlu1 %v7403_v23  ;;  %v7463_v56 = vadd.f32 %v1474_v31, %v1338_v53 }
 0x56a   : > { %1764 = vmax.xlane.f32.xlu0 %v7409_v29 }
 0x56d   : > { %1748 = vmax.xlane.f32.xlu1 %v7414_v33 }
 0x571   : > { %1750 = vmax.xlane.f32.xlu1 %v7422_v34 }
 0x573   : > { %v2015_v36 = vpop.trf.xlu0 }
 0x574   : > { %4738 = vmatprep.mubr.msk.bf16.mxu1 %vm2023_vm0, %v2015_v36 }
 0x575   : > { %1752 = vmax.xlane.f32.xlu1 %v7430_v51 }
 0x577   : > { %v2016_v5 = vpop.trf.xlu0 }
 0x578   : > { %4739 = vmatmul.mubr.msk.bf16.vlgmr.msra.gmra.mrb[16].mxu1 %vm2023_vm0, %v2016_v5 }
 0x579   : > { %1754 = vmax.xlane.f32.xlu1 %v7439_v43 }
 0x57b   : > { %v2017_v52 = vpop.trf.xlu0 }
 0x57c   : > { %4742 = vmatprep.mubr.msk.bf16.mxu1 %vm2023_vm0, %v2017_v52 }
 0x57d   : > { %1756 = vmax.xlane.f32.xlu1 %v7448_v48 }
 0x57f   : > { %v2018_v14 = vpop.trf.xlu0 }
 0x580   : > { %4743 = vmatmul.mubr.msk.bf16.gmra.mrb[20].mxu1 %vm2023_vm0, %v2018_v14  ;;  %v5157_v14 = vld [vmem:[#allocation22 + $0x18] sm:$0xff]  }
 0x581   : > { %1758 = vmax.xlane.f32.xlu1 %v7456_v12 }
 0x583   : > { %v2019_v32 = vpop.trf.xlu0 }
 0x584   : > { %4746 = vmatprep.mubr.msk.bf16.mxu1 %vm2023_vm0, %v2019_v32 }
 0x585   : > { %1760 = vmax.xlane.f32.xlu1 %v7463_v56 }
 0x587   : > { %v2020_v25 = vpop.trf.xlu0 }
 0x588   : > { %4747 = vmatmul.mubr.msk.bf16.gmra.mrb[24].mxu1 %vm2023_vm0, %v2020_v25 }
 0x589   : > { %1762 = vmax.xlane.f32.xlu1 %v7468_v11 }
 0x58b   : > { %v2021_v57 = vpop.trf.xlu0 }
 0x58c   : > { %4750 = vmatprep.mubr.msk.bf16.mxu1 %vm2023_vm0, %v2021_v57 }
 0x58f   : > { %v2022_v38 = vpop.trf.xlu0 }
 0x590   : > { %4751 = vmatmul.mubr.msk.bf16.gmra.mrb[28].mxu1 %vm2023_vm0, %v2022_v38 }
 0x5de   : > { %v1735_v15 = vpop.xlane.xlu1 %1734 }
 0x5df   : > { %v1766_v4 = vsub.f32 %v7375_v1, %v1735_v15 }
 0x5e1   : > { %v1782_v9 = vmul.f32 1.442695, %v1766_v4  ;;  %v5159_v4 = vld [vmem:[#allocation22 + $0x28] sm:$0xff]  }
 0x5e2   : > { %v1737_v39 = vpop.xlane.xlu1 %1736 }
 0x5e3   : > { %v1767_v35 = vsub.f32 %v7379_v10, %v1737_v39  ;;  %5316 = vpow2.f32 %v1782_v9 }
 0x5e5   : > { %v1784_v44 = vmul.f32 1.442695, %v1767_v35 }
 0x5e6   : > { %v1739_v27 = vpop.xlane.xlu1 %1738 }
 0x5e7   : > { %5318 = vpow2.f32 %v1784_v44  ;;  %v1768_v59 = vsub.f32 %v7383_v58, %v1739_v27 }
 0x5e9   : > { %v1786_v13 = vmul.f32 1.442695, %v1768_v59 }
 0x5ea   : > { %v1741_v17 = vpop.xlane.xlu1 %1740 }
 0x5eb   : > { %v1769_v16 = vsub.f32 %v7387_v18, %v1741_v17  ;;  %5320 = vpow2.f32 %v1786_v13 }
 0x5ed   : > { %v1788_v6 = vmul.f32 1.442695, %v1769_v16  ;;  %v7479_v21 = vpop.eup %5316 }
 0x5ee   : > { %v1743_v19 = vpop.xlane.xlu1 %1742 }
 0x5ef   : > { %5322 = vpow2.f32 %v1788_v6  ;;  %v1770_v1 = vsub.f32 %v7391_v20, %v1743_v19  ;;  %v5161_v19 = vld [vmem:[#allocation22 + $0x38] sm:$0xff]  }
 0x5f1   : > { %v7481_v24 = vpop.eup %5318  ;;  %v1790_v10 = vmul.f32 1.442695, %v1770_v1 }
 0x5f2   : > { %v1745_v47 = vpop.xlane.xlu1 %1744  ;;  %v1814_v49 = vpack.c.bf16 %v7481_v24, %v7479_v21 }
 0x5f3   : > { %v1771_v58 = vsub.f32 %v7395_v40, %v1745_v47  ;;  %5324 = vpow2.f32 %v1790_v10 }
 0x5f4   : > { %4714 = vmatprep.mubr.bf16.mxu0 %v1814_v49 }
 0x5f5   : > { %v1792_v63 = vmul.f32 1.442695, %v1771_v58  ;;  %v7487_v37 = vpop.eup %5320 }
 0x5f6   : > { %v1747_v18 = vpop.xlane.xlu1 %1746 }
 0x5f7   : > { %5326 = vpow2.f32 %v1792_v63  ;;  %v1772_v46 = vsub.f32 %v7403_v23, %v1747_v18  ;;  %v1765_v44 = vpop.xlane.xlu0 %1764 }
 0x5f8   : > { %v1781_v17 = vsub.f32 %v7409_v29, %v1765_v44 }
 0x5f9   : > { %v7489_v20 = vpop.eup %5322  ;;  %v1794_v26 = vmul.f32 1.442695, %v1772_v46 }
 0x5fa   : > { %v1749_v28 = vpop.xlane.xlu1 %1748  ;;  %v1815_v31 = vpack.c.bf16 %v7489_v20, %v7487_v37 }
 0x5fb   : > { %v1773_v61 = vsub.f32 %v7414_v33, %v1749_v28  ;;  %5328 = vpow2.f32 %v1794_v26 }
 0x5fc   : > { %4715 = vmatmul.mubr.bf16.vlgmr.msra.gmra.mrb[16].mxu0 %v1815_v31 }
 0x5fd   : > { %v1796_v40 = vmul.f32 1.442695, %v1773_v61  ;;  %4755 = vmatpush3.bf16.msra.mxu0 %v5154_v30  ;;  %v7495_v5 = vpop.eup %5324  ;;  %v2148_v61 = vunpack.c.h.bf16 %v7397_v62 }
 0x5fe   : > { %v1751_v36 = vpop.xlane.xlu1 %1750  ;;  %4756 = vmatprep.subr.bf16.mxu0 %v5155_v3 }
 0x5ff   : > { %5330 = vpow2.f32 %v1796_v40  ;;  %v1774_v23 = vsub.f32 %v7422_v34, %v1751_v36  ;;  %v5158_v34 = vld [vmem:[#allocation22 + $0x20] sm:$0xff]   ;;  %v2145_v36 = vunpack.c.l.bf16 %v7370_v55 }
 0x601   : > { %v7497_v60 = vpop.eup %5326  ;;  %4757 = vmatpush3.bf16.msra.mxu0 %v5155_v3  ;;  %v1798_v52 = vmul.f32 1.442695, %v1774_v23  ;;  %v2147_v3 = vunpack.c.l.bf16 %v7397_v62  ;;  %v2149_v62 = vunpack.c.l.bf16 %v7406_v41 }
 0x602   : > { %v1753_v22 = vpop.xlane.xlu1 %1752  ;;  %v1816_v33 = vpack.c.bf16 %v7497_v60, %v7495_v5  ;;  %4758 = vmatprep.subr.bf16.mxu0 %v5156_v42 }
 0x603   : > { %v1775_v53 = vsub.f32 %v7430_v51, %v1753_v22  ;;  %5332 = vpow2.f32 %v1798_v52 }
 0x604   : > { %4718 = vmatprep.mubr.bf16.mxu0 %v1816_v33 }
 0x605   : > { %v1800_v32 = vmul.f32 1.442695, %v1775_v53  ;;  %4759 = vmatpush3.bf16.msra.mxu0 %v5156_v42  ;;  %v7503_v57 = vpop.eup %5328  ;;  %v2146_v42 = vunpack.c.h.bf16 %v7370_v55 }
 0x606   : > { %v1755_v54 = vpop.xlane.xlu1 %1754  ;;  %4760 = vmatprep.subr.bf16.mxu0 %v5157_v14 }
 0x607   : > { %5334 = vpow2.f32 %v1800_v32  ;;  %v1776_v25 = vsub.f32 %v7439_v43, %v1755_v54  ;;  %v5160_v43 = vld [vmem:[#allocation22 + $0x30] sm:$0xff]  }
 0x609   : > { %v7505_v38 = vpop.eup %5330  ;;  %4761 = vmatpush3.bf16.msra.mxu0 %v5157_v14  ;;  %v1802_v30 = vmul.f32 1.442695, %v1776_v25  ;;  %v2151_v25 = vunpack.c.l.bf16 %v7417_v2 }
 0x60a   : > { %v1757_v15 = vpop.xlane.xlu1 %1756  ;;  %v1817_v51 = vpack.c.bf16 %v7505_v38, %v7503_v57  ;;  %4762 = vmatprep.subr.bf16.mxu0 %v5158_v34 }
 0x60b   : > { %v1777_v9 = vsub.f32 %v7448_v48, %v1757_v15  ;;  %5336 = vpow2.f32 %v1802_v30  ;;  %v2152_v30 = vunpack.c.h.bf16 %v7417_v2  ;;  %v2156_v2 = vunpack.c.h.bf16 %v7433_v0 }
 0x60c   : > { %4719 = vmatmul.mubr.bf16.gmra.mrb[20].mxu0 %v1817_v51  ;;  %v2150_v51 = vunpack.c.h.bf16 %v7406_v41  ;;  %v2154_v41 = vunpack.c.h.bf16 %v7425_v50 }
 0x60d   : > { %v1804_v39 = vmul.f32 1.442695, %v1777_v9  ;;  %4763 = vmatpush3.bf16.msra.mxu0 %v5158_v34  ;;  %v7511_v59 = vpop.eup %5332 }
 0x60e   : > { %v1759_v35 = vpop.xlane.xlu1 %1758  ;;  %4764 = vmatprep.subr.bf16.mxu0 %v5159_v4 }
 0x60f   : > { %5338 = vpow2.f32 %v1804_v39  ;;  %v1778_v27 = vsub.f32 %v7456_v12, %v1759_v35  ;;  %v1812_v12 = vmul.f32 1.442695, %v1781_v17 }
 0x611   : > { %v7513_v13 = vpop.eup %5334  ;;  %4765 = vmatpush3.bf16.msra.mxu0 %v5159_v4  ;;  %v1806_v16 = vmul.f32 1.442695, %v1778_v27 }
 0x612   : > { %v1761_v48 = vpop.xlane.xlu1 %1760  ;;  %v1818_v6 = vpack.c.bf16 %v7513_v13, %v7511_v59  ;;  %4766 = vmatprep.subr.bf16.mxu0 %v5160_v43 }
 0x613   : > { %v1779_v1 = vsub.f32 %v7463_v56, %v1761_v48  ;;  %5340 = vpow2.f32 %v1806_v16  ;;  %v2155_v16 = vunpack.c.l.bf16 %v7433_v0  ;;  %v2160_v0 = vunpack.c.h.bf16 %v7453_v8 }
 0x614   : > { %4722 = vmatprep.mubr.bf16.mxu0 %v1818_v6  ;;  %v2153_v6 = vunpack.c.l.bf16 %v7425_v50  ;;  %v2158_v50 = vunpack.c.h.bf16 %v7442_v45 }
 0x615   : > { %v1808_v10 = vmul.f32 1.442695, %v1779_v1  ;;  %4767 = vmatpush3.bf16.msra.mxu0 %v5160_v43  ;;  %v7520_v29 = vpop.eup %5336 }
 0x616   : > { %v1763_v47 = vpop.xlane.xlu1 %1762  ;;  %4768 = vmatprep.subr.bf16.mxu0 %v5161_v19 }
 0x617   : > { %5342 = vpow2.f32 %v1808_v10  ;;  %v1780_v49 = vsub.f32 %v7468_v11, %v1763_v47 }
 0x618   : > { %5344 = vpow2.f32 %v1812_v12 }
 0x619   : > { %v7522_v58 = vpop.eup %5338  ;;  %v1810_v63 = vmul.f32 1.442695, %v1780_v49  ;;  %4769 = vmatpush3.bf16.msra.mxu0 %v5161_v19 }
 0x61a   : > { %v1819_v56 = vpack.c.bf16 %v7522_v58, %v7520_v29 }
 0x61b   : > { %5346 = vpow2.f32 %v1810_v63 }
 0x61c   : > { %4723 = vmatmul.mubr.bf16.gmra.mrb[24].mxu0 %v1819_v56 }
 0x61d   : > { %v7526_v18 = vpop.eup %5340 }
 0x621   : > { %v7528_v46 = vpop.eup %5342 }
 0x622   : > { %v1820_v26 = vpack.c.bf16 %v7528_v46, %v7526_v18  ;;  %v7532_v11 = vpop.eup %5344 }
 0x624   : > { %4726 = vmatprep.mubr.bf16.mxu0 %v1820_v26 }
 0x625   : > { %v7534_v28 = vpop.eup %5346 }
 0x626   : > { %v1821_v31 = vpack.c.bf16 %v7532_v11, %v7534_v28 }
 0x628   : > { %4727 = vmatmul.mubr.bf16.gmra.mrb[28].mxu0 %v1821_v31  ;;  %v2159_v31 = vunpack.c.l.bf16 %v7453_v8 }
 0x64b   : > { %v4740_v40 = vpop.f32.mrb[16].mxu1 }
 0x64c   : > { %v2082_v23 = vpop.f32.mrb[17].mxu1  ;;  %v2163_v22 = vmul.f32 %v4740_v40, %v2147_v3 }
 0x64d   : > { %v4741_v52 = vpop.f32.mrb[18].mxu1  ;;  %v2161_v53 = vmul.f32 %v2145_v36, %v2082_v23 }
 0x64e   : > { %v2164_v33 = vmul.f32 %v4741_v52, %v2148_v61  ;;  %v2085_v14 = vpop.f32.mrb[19].mxu1  ;;  %v2157_v61 = vunpack.c.l.bf16 %v7442_v45 }
 0x64f   : > { %v2162_v32 = vmul.f32 %v2146_v42, %v2085_v14 }
 0x650   : > { %v2178_v54 = vpack.c.bf16 %v2164_v33, %v2163_v22 }
 0x651   : > { %v2177_v34 = vpack.c.bf16 %v2162_v32, %v2161_v53 }
 0x653   : > { %v4744_v15 = vpop.f32.mrb[20].mxu1  ;;  %4770 = vmatprep.mubr.bf16.mxu0 %v2177_v34 }
 0x654   : > { %v2098_v55 = vpop.f32.mrb[21].mxu1  ;;  %4771 = vmatmul.mubr.bf16.vlgmr.msra.gmra.mrb[32].mxu0 %v2178_v54  ;;  %v2167_v9 = vmul.f32 %v4744_v15, %v2151_v25 }
 0x655   : > { %v4745_v4 = vpop.f32.mrb[22].mxu1  ;;  %v2165_v43 = vmul.f32 %v2149_v62, %v2098_v55 }
 0x656   : > { %v2168_v39 = vmul.f32 %v4745_v4, %v2152_v30  ;;  %v2101_v35 = vpop.f32.mrb[23].mxu1 }
 0x657   : > { %v2166_v44 = vmul.f32 %v2150_v51, %v2101_v35 }
 0x658   : > { %v2180_v27 = vpack.c.bf16 %v2168_v39, %v2167_v9 }
 0x659   : > { %v2179_v17 = vpack.c.bf16 %v2166_v44, %v2165_v43 }
 0x65b   : > { %v4748_v48 = vpop.f32.mrb[24].mxu1  ;;  %4774 = vmatprep.mubr.bf16.mxu0 %v2179_v17 }
 0x65c   : > { %v2114_v19 = vpop.f32.mrb[25].mxu1  ;;  %4775 = vmatmul.mubr.bf16.gmra.mrb[36].mxu0 %v2180_v27  ;;  %v2171_v10 = vmul.f32 %v4748_v48, %v2155_v16 }
 0x65d   : > { %v4749_v1 = vpop.f32.mrb[26].mxu1  ;;  %v2169_v49 = vmul.f32 %v2153_v6, %v2114_v19 }
 0x65e   : > { %v2172_v12 = vmul.f32 %v4749_v1, %v2156_v2  ;;  %v2117_v47 = vpop.f32.mrb[27].mxu1 }
 0x65f   : > { %v2170_v63 = vmul.f32 %v2154_v41, %v2117_v47 }
 0x660   : > { %v2182_v56 = vpack.c.bf16 %v2172_v12, %v2171_v10 }
 0x661   : > { %v2181_v26 = vpack.c.bf16 %v2170_v63, %v2169_v49 }
 0x663   : > { %v4752_v3 = vpop.f32.mrb[28].mxu1  ;;  %4778 = vmatprep.mubr.bf16.mxu0 %v2181_v26 }
 0x664   : > { %v2130_v40 = vpop.f32.mrb[29].mxu1  ;;  %4779 = vmatmul.mubr.bf16.gmra.mrb[40].mxu0 %v2182_v56  ;;  %v2175_v42 = vmul.f32 %v4752_v3, %v2159_v31 }
 0x665   : > { %v4753_v36 = vpop.f32.mrb[30].mxu1  ;;  %v2173_v22 = vmul.f32 %v2157_v61, %v2130_v40 }
 0x666   : > { %v2176_v23 = vmul.f32 %v4753_v36, %v2160_v0  ;;  %v2133_v52 = vpop.f32.mrb[31].mxu1 }
 0x667   : > { %v2174_v33 = vmul.f32 %v2158_v50, %v2133_v52 }
 0x668   : > { %v2184_v14 = vpack.c.bf16 %v2176_v23, %v2175_v42 }
 0x669   : > { %v2183_v53 = vpack.c.bf16 %v2174_v33, %v2173_v22 }
 0x66b   : > { %4782 = vmatprep.mubr.bf16.mxu0 %v2183_v53 }
 0x66c   : > { %4783 = vmatmul.mubr.bf16.gmra.mrb[44].mxu0 %v2184_v14 }
 0x66d   : > { %2958 = vmatprep.mubr.bf16.mxu0 %v6278_v7 }
 0x6cf   : > { %v4716_v8 = vpop.f32.mrb[16].mxu0 }
 0x6d0   : > { %5348 = vrcp.f32 %v4716_v8  ;;  %v1904_v32 = vpop.f32.mrb[17].mxu0 }
 0x6d1   : > { %5350 = vrcp.f32 %v1904_v32  ;;  %v4717_v54 = vpop.f32.mrb[18].mxu0 }
 0x6d2   : > { %5352 = vrcp.f32 %v4717_v54  ;;  %v1907_v45 = vpop.f32.mrb[19].mxu0 }
 0x6d3   : > { %5354 = vrcp.f32 %v1907_v45 }
 0x6da   : > { %v5349_v34 = vpop.eup %5348 }
 0x6db   : > { %v5351_v25 = vpop.eup %5350  ;;  %v7556_v62 = vmul.f32 %v5349_v34, %v7487_v37 }
 0x6dc   : > { %v5353_v30 = vpop.eup %5352  ;;  %v1983_v55 = vmul.f32 %v5351_v25, %v7479_v21 }
 0x6dd   : > { %v5355_v15 = vpop.eup %5354  ;;  %v7559_v51 = vmul.f32 %v5353_v30, %v7489_v20 }
 0x6de   : > { %v1984_v4 = vmul.f32 %v5355_v15, %v7481_v24 }
 0x6df   : > { %v4720_v9 = vpop.f32.mrb[20].mxu0  ;;  %v2347_v39 = vpack.c.bf16 %v7559_v51, %v7556_v62 }
 0x6e0   : > { %5356 = vrcp.f32 %v4720_v9  ;;  %v1920_v35 = vpop.f32.mrb[21].mxu0  ;;  %v2346_v43 = vpack.c.bf16 %v1984_v4, %v1983_v55 }
 0x6e1   : > { %5358 = vrcp.f32 %v1920_v35  ;;  %v4721_v44 = vpop.f32.mrb[22].mxu0 }
 0x6e2   : > { %5360 = vrcp.f32 %v4721_v44  ;;  %v1923_v27 = vpop.f32.mrb[23].mxu0  ;;  %4802 = vmatprep.mubr.bf16.mxu1 %v2346_v43 }
 0x6e3   : > { %5362 = vrcp.f32 %v1923_v27 }
 0x6ea   : > { %v5357_v37 = vpop.eup %5356 }
 0x6eb   : > { %v5359_v20 = vpop.eup %5358  ;;  %v7566_v21 = vmul.f32 %v5357_v37, %v7503_v57 }
 0x6ec   : > { %v5361_v17 = vpop.eup %5360  ;;  %v7572_v2 = vmul.f32 %v5359_v20, %v7495_v5 }
 0x6ed   : > { %v5363_v16 = vpop.eup %5362  ;;  %v7569_v24 = vmul.f32 %v5361_v17, %v7505_v38  ;;  %v7602_v17 = vld [vmem:[#allocation23] ss:$0 sm:$0xff] }
 0x6ee   : > { %v7575_v48 = vmul.f32 %v5363_v16, %v7497_v60 }
 0x6ef   : > { %v4724_v6 = vpop.f32.mrb[24].mxu0  ;;  %v2349_v41 = vpack.c.bf16 %v7569_v24, %v7566_v21 }
 0x6f0   : > { %5364 = vrcp.f32 %v4724_v6  ;;  %v1936_v19 = vpop.f32.mrb[25].mxu0  ;;  %v2348_v1 = vpack.c.bf16 %v7575_v48, %v7572_v2  ;;  %v5540_v48 = vld [vmem:[%s7025_s6] sm:$0xff] }
 0x6f1   : > { %5366 = vrcp.f32 %v1936_v19  ;;  %v4725_v57 = vpop.f32.mrb[26].mxu0 }
 0x6f2   : > { %5368 = vrcp.f32 %v4725_v57  ;;  %v1939_v38 = vpop.f32.mrb[27].mxu0 }
 0x6f3   : > { %5370 = vrcp.f32 %v1939_v38 }
 0x6fa   : > { %v5365_v10 = vpop.eup %5364 }
 0x6fb   : > { %v5367_v5 = vpop.eup %5366  ;;  %v4728_v12 = vpop.f32.mrb[28].mxu0  ;;  %v7582_v56 = vmul.f32 %v5365_v10, %v7520_v29 }
 0x6fc   : > { %v5369_v47 = vpop.eup %5368  ;;  %5372 = vrcp.f32 %v4728_v12  ;;  %v1952_v60 = vpop.f32.mrb[29].mxu0  ;;  %v1991_v0 = vmul.f32 %v5367_v5, %v7511_v59  ;;  %v5542_v12 = vld [vmem:[%s7025_s6 + $0x10] sm:$0xff] }
 0x6fd   : > { %v5371_v49 = vpop.eup %5370  ;;  %5374 = vrcp.f32 %v1952_v60  ;;  %v4729_v63 = vpop.f32.mrb[30].mxu0  ;;  %v1994_v26 = vmul.f32 %v5369_v47, %v7522_v58 }
 0x6fe   : > { %5376 = vrcp.f32 %v4729_v63  ;;  %v1955_v31 = vpop.f32.mrb[31].mxu0  ;;  %v1992_v3 = vmul.f32 %v5371_v49, %v7513_v13  ;;  %v5543_v49 = vld [vmem:[%s7025_s6 + $0x38] sm:$0xff] }
 0x6ff   : > { %5378 = vrcp.f32 %v1955_v31  ;;  %v2351_v61 = vpack.c.bf16 %v1994_v26, %v7582_v56  ;;  %v5544_v56 = vld [vmem:[%s7025_s6 + $0x18] sm:$0xff] }
 0x700   : > { %v2350_v50 = vpack.c.bf16 %v1992_v3, %v1991_v0 }
 0x706   : > { %v5373_v40 = vpop.eup %5372 }
 0x707   : > { %v5375_v36 = vpop.eup %5374  ;;  %v1997_v52 = vmul.f32 %v5373_v40, %v7534_v28  ;;  %v5545_v40 = vld [vmem:[%s7025_s6 + $0x20] sm:$0xff] }
 0x708   : > { %v5377_v42 = vpop.eup %5376  ;;  %v1995_v58 = vmul.f32 %v5375_v36, %v7526_v18 }
 0x709   : > { %v5379_v23 = vpop.eup %5378  ;;  %v1998_v29 = vmul.f32 %v5377_v42, %v7532_v11 }
 0x70a   : > { %v1996_v22 = vmul.f32 %v5379_v23, %v7528_v46 }
 0x70b   : > { %v2353_v33 = vpack.c.bf16 %v1998_v29, %v1997_v52  ;;  %v5546_v29 = vld [vmem:[%s7025_s6 + $0x48] sm:$0xff] }
 0x70c   : > { %v2352_v59 = vpack.c.bf16 %v1996_v22, %v1995_v58 }
 0x727   : > { %v4772_v14 = vpop.f32.mrb[32].mxu0 }
 0x728   : > { %v2283_v13 = vpop.f32.mrb[33].mxu0 }
 0x729   : > { %v4773_v53 = vpop.f32.mrb[34].mxu0 }
 0x72a   : > { %v2355_v8 = vpack.c.bf16 %v4773_v53, %v4772_v14  ;;  %v2286_v32 = vpop.f32.mrb[35].mxu0  ;;  %v5548_v53 = vld [vmem:[%s7025_s6 + $0x58] sm:$0xff] }
 0x72b   : > { %v2354_v54 = vpack.c.bf16 %v2286_v32, %v2283_v13 }
 0x72d   : > { %4786 = vmatprep.subr.bf16.mxu1 %v2354_v54 }
 0x72e   : > { %4787 = vmatpush3.bf16.msra.mxu1 %v2354_v54 }
 0x72f   : > { %v4776_v45 = vpop.f32.mrb[36].mxu0  ;;  %4788 = vmatprep.subr.bf16.mxu1 %v2355_v8 }
 0x730   : > { %v2299_v34 = vpop.f32.mrb[37].mxu0 }
 0x731   : > { %v4777_v28 = vpop.f32.mrb[38].mxu0 }
 0x732   : > { %v2357_v25 = vpack.c.bf16 %v4777_v28, %v4776_v45  ;;  %v2302_v11 = vpop.f32.mrb[39].mxu0  ;;  %4789 = vmatpush3.bf16.msra.mxu1 %v2355_v8  ;;  %v5549_v45 = vld [vmem:[%s7025_s6 + $0x30] sm:$0xff] }
 0x733   : > { %v2356_v18 = vpack.c.bf16 %v2302_v11, %v2299_v34 }
 0x735   : > { %4790 = vmatprep.subr.bf16.mxu1 %v2356_v18 }
 0x736   : > { %4791 = vmatpush3.bf16.msra.mxu1 %v2356_v18  ;;  %v5550_v18 = vld [vmem:[%s7025_s6 + $0x68] sm:$0xff] }
 0x737   : > { %v4780_v46 = vpop.f32.mrb[40].mxu0  ;;  %4792 = vmatprep.subr.bf16.mxu1 %v2357_v25 }
 0x738   : > { %v2315_v30 = vpop.f32.mrb[41].mxu0 }
 0x739   : > { %v4781_v15 = vpop.f32.mrb[42].mxu0 }
 0x73a   : > { %v2359_v55 = vpack.c.bf16 %v4781_v15, %v4780_v46  ;;  %v2318_v4 = vpop.f32.mrb[43].mxu0  ;;  %4793 = vmatpush3.bf16.msra.mxu1 %v2357_v25  ;;  %v5551_v15 = vld [vmem:[%s7025_s6 + $0x40] sm:$0xff] }
 0x73b   : > { %v2358_v9 = vpack.c.bf16 %v2318_v4, %v2315_v30  ;;  %v5552_v4 = vld [vmem:[%s7025_s6 + $0x78] sm:$0xff] }
 0x73d   : > { %4794 = vmatprep.subr.bf16.mxu1 %v2358_v9 }
 0x73e   : > { %4795 = vmatpush3.bf16.msra.mxu1 %v2358_v9 }
 0x73f   : > { %v4784_v35 = vpop.f32.mrb[44].mxu0  ;;  %4796 = vmatprep.subr.bf16.mxu1 %v2359_v55 }
 0x740   : > { %v2331_v43 = vpop.f32.mrb[45].mxu0 }
 0x741   : > { %v4785_v44 = vpop.f32.mrb[46].mxu0 }
 0x742   : > { %v2361_v27 = vpack.c.bf16 %v4785_v44, %v4784_v35  ;;  %v2334_v37 = vpop.f32.mrb[47].mxu0  ;;  %4797 = vmatpush3.bf16.msra.mxu1 %v2359_v55  ;;  %v5553_v35 = vld [vmem:[%s7025_s6 + $0x50] sm:$0xff] }
 0x743   : > { %v2360_v20 = vpack.c.bf16 %v2334_v37, %v2331_v43  ;;  %v5554_v37 = vld [vmem:[%s7025_s6 + $0x60] sm:$0xff] }
 0x745   : > { %4798 = vmatprep.subr.bf16.mxu1 %v2360_v20 }
 0x746   : > { %4799 = vmatpush3.bf16.msra.mxu1 %v2360_v20 }
 0x747   : > { %4800 = vmatprep.subr.bf16.mxu1 %v2361_v27 }
 0x74a   : > { %4801 = vmatpush3.bf16.msra.mxu1 %v2361_v27 }
 0x74d   : > { %4803 = vmatmul.mubr.bf16.vlgmr.msra.gmra.mrb[32].mxu1 %v2347_v39 }
 0x74e   : > { %4806 = vmatprep.mubr.bf16.mxu1 %v2348_v1 }
 0x755   : > { %4807 = vmatmul.mubr.bf16.gmra.mrb[36].mxu1 %v2349_v41  ;;  %v5541_v41 = vld [vmem:[%s7025_s6 + $0x8] sm:$0xff] }
 0x756   : > { %4810 = vmatprep.mubr.bf16.mxu1 %v2350_v50 }
 0x75d   : > { %4811 = vmatmul.mubr.bf16.gmra.mrb[40].mxu1 %v2351_v61 }
 0x75e   : > { %4814 = vmatprep.mubr.bf16.mxu1 %v2352_v59 }
 0x765   : > { %4815 = vmatmul.mubr.bf16.gmra.mrb[44].mxu1 %v2353_v33  ;;  %v5547_v33 = vld [vmem:[%s7025_s6 + $0x28] sm:$0xff] }
 0x766   : > { %3071 = vmatprep.mubr.bf16.mxu1 %v6278_v7 }
 0x820   : > { %v4804_v16 = vpop.f32.mrb[32].mxu1 }
 0x821   : > { %v2403_v62 = vpop.f32.mrb[33].mxu1  ;;  %v2412_v6 = vadd.f32 %v4804_v16, %v7602_v17  ;;  %v5555_v16 = vld [vmem:[%s7025_s6 + $0x70] sm:$0xff]  ;;  %s8331_s6 = scalar_lea.vmem [#allocation31], %s4315_s24  ;;  %s8705_s24 = sld [smem:[#allocation50_spill]] }
 0x822   : > { %v2404_v51 = vadd.f32 %v7602_v17, %v2403_v62  ;;  %v4805_v39 = vpop.f32.mrb[34].mxu1  ;;  %s4009_s20 = sshll.u32 %s8331_s6, 4  ;;  %s8378_s20 = int_to_ptr.vmem [resolvable:$true] %s4009_s20 }
 0x823   : > { %v2406_v2 = vpop.f32.mrb[35].mxu1  ;;  %v7617_v47 = vadd.f32 %v5542_v12, %v2412_v6  ;;  %v2415_v60 = vadd.f32 %v4805_v39, %v7602_v17  ;;  %v5164_v39 = vld [vmem:[#allocation25 + $0x4] ss:$16 sps:$4 sm:$0xff]   ;;  %v5173_v6 = vld [vmem:[#allocation25 + $0x2c] ss:$16 sps:$4 sm:$0xff]   ;;  %s6066_s16 = scalar_lea.vmem %s8378_s20, 2048  ;;  %p6073_p2 = scmp.lt.s32.totalorder %s8378_s20, %s6071_s4 }
 0x824   : > { %v7606_v21 = vadd.f32 %v5540_v48, %v2404_v51  ;;  %v2407_v24 = vadd.f32 %v7602_v17, %v2406_v2  ;;  %v5162_v51 = vld [vmem:[#allocation25] ss:$16 sps:$4 sm:$0xff]   ;;  %v5165_v2 = vld [vmem:[#allocation25 + $0x8] ss:$16 sps:$4 sm:$0xff]   ;;  %v5167_v48 = vld [vmem:[#allocation25 + $0xc] ss:$16 sps:$4 sm:$0xff]   ;;  %2926 = vmatprep.subr.bf16.mxu0 %v5164_v39  ;;  %p6067_p12 = scmp.ne.s32.totalorder %s8378_s20, %s6066_s16  ;;  %p6074_p9 = scmp.lt.s32.totalorder %s6072_s11, %s6066_s16 }
 0x825   : > { %8667 = vst [vmem:[#allocation58_spill] sm:$0xff] %v7617_v47  ;;  %v7626_v26 = vadd.f32 %v5544_v56, %v2415_v60  ;;  %3039 = vmatprep.subr.bf16.mxu1 %v5167_v48  ;;  %2927 = vmatpush1.bf16.msra.mxu0 %v5162_v51  ;;  %v5174_v48 = vld [vmem:[#allocation25 + $0x40] ss:$16 sps:$4 sm:$0xff]  }
 0x826   : > { %8665 = vst [vmem:[#allocation56_spill] sm:$0xff] %v7606_v21  ;;  %2484 = vadd.xlane.f32.xlu1 %v7606_v21  ;;  %v7612_v19 = vadd.f32 %v5541_v41, %v2407_v24  ;;  %v5170_v24 = vld [vmem:[#allocation25 + $0x24] ss:$16 sps:$4 sm:$0xff]   ;;  %3040 = vmatpush1.bf16.msra.mxu1 %v5165_v2  ;;  %v5171_v41 = vld [vmem:[#allocation25 + $0x28] ss:$16 sps:$4 sm:$0xff]   ;;  %p6068_p11 = pnand %p6067_p12, %p8712_p8  ;;  %p6075_p10 = por %p6074_p9, %p6073_p2 }
 0x827   : > { %8669 = vst [vmem:[#allocation60_spill] sm:$0xff] %v7626_v26  ;;  %2928 = vmatprep.subr.bf16.mxu0 %v5170_v24  ;;  %3041 = vmatprep.subr.bf16.mxu1 %v5173_v6  ;;  %v5177_v24 = vld [vmem:[#allocation25 + $0x48] ss:$16 sps:$4 sm:$0xff]   ;;  %s4455_s5 = sshll.u32 %s8705_s24, 4 }
 0x828   : > { %8666 = vst [vmem:[#allocation57_spill] sm:$0xff] %v7612_v19  ;;  %v4808_v1 = vpop.f32.mrb[36].mxu1  ;;  %s4006_s21 = sadd.s32 %s4456_s30, %s4455_s5  ;;  %p6069_p1 = pneg %p6068_p11 }
 0x829   : > { %v2419_v57 = vpop.f32.mrb[37].mxu1  ;;  %v2428_v22 = vadd.f32 %v4808_v1, %v7602_v17  ;;  %s4457_s3 = sshll.u32 %s4006_s21, 7 }
 0x82a   : > { %v4809_v38 = vpop.f32.mrb[38].mxu1  ;;  %2486 = vadd.xlane.f32.xlu1 %v7612_v19  ;;  %v2420_v31 = vadd.f32 %v7602_v17, %v2419_v57  ;;  %3042 = vmatpush1.bf16.msra.mxu1 %v5171_v41  ;;  %s8385_s18 = scalar_lea.hbm %s8711_s17, %s4457_s3  ;;  %p6076_p6 = pnand %p6075_p10, %p6069_p1 }
 0x82b   : > { %v2431_v10 = vadd.f32 %v4809_v38, %v7602_v17  ;;  %v2422_v5 = vpop.f32.mrb[39].mxu1  ;;  %v7650_v34 = vadd.f32 %v5549_v45, %v2428_v22 }
 0x82c   : > { %v7631_v36 = vadd.f32 %v5545_v40, %v2420_v31  ;;  %v2423_v42 = vadd.f32 %v7602_v17, %v2422_v5 }
 0x82d   : > { %v7621_v63 = vadd.f32 %v5543_v49, %v2431_v10  ;;  %8674 = vst [vmem:[#allocation65_spill] sm:$0xff] %v7650_v34 }
 0x82e   : > { %2488 = vadd.xlane.f32.xlu1 %v7617_v47  ;;  %8670 = vst [vmem:[#allocation61_spill] sm:$0xff] %v7631_v36  ;;  %v7642_v59 = vadd.f32 %v5547_v33, %v2423_v42 }
 0x82f   : > { %8668 = vst [vmem:[#allocation59_spill] sm:$0xff] %v7621_v63  ;;  %2498 = vadd.xlane.f32.xlu0 %v7621_v63 }
 0x830   : > { %v4812_v0 = vpop.f32.mrb[40].mxu1  ;;  %8672 = vst [vmem:[#allocation63_spill] sm:$0xff] %v7642_v59 }
 0x831   : > { %v2435_v3 = vpop.f32.mrb[41].mxu1  ;;  %v2444_v30 = vadd.f32 %v4812_v0, %v7602_v17 }
 0x832   : > { %v4813_v61 = vpop.f32.mrb[42].mxu1  ;;  %2490 = vadd.xlane.f32.xlu1 %v7626_v26  ;;  %v2436_v28 = vadd.f32 %v7602_v17, %v2435_v3 }
 0x833   : > { %v2438_v50 = vpop.f32.mrb[43].mxu1  ;;  %v2447_v52 = vadd.f32 %v4813_v61, %v7602_v17  ;;  %v7670_v43 = vadd.f32 %v5553_v35, %v2444_v30 }
 0x834   : > { %v2439_v23 = vadd.f32 %v7602_v17, %v2438_v50  ;;  %v7662_v55 = vadd.f32 %v5551_v15, %v2436_v28 }
 0x835   : > { %v7646_v8 = vadd.f32 %v5548_v53, %v2447_v52  ;;  %8678 = vst [vmem:[#allocation69_spill] sm:$0xff] %v7670_v43 }
 0x836   : > { %v7637_v58 = vadd.f32 %v5546_v29, %v2439_v23  ;;  %2492 = vadd.xlane.f32.xlu1 %v7631_v36  ;;  %8676 = vst [vmem:[#allocation67_spill] sm:$0xff] %v7662_v55 }
 0x837   : > { %8673 = vst [vmem:[#allocation64_spill] sm:$0xff] %v7646_v8 }
 0x838   : > { %8671 = vst [vmem:[#allocation62_spill] sm:$0xff] %v7637_v58  ;;  %2502 = vadd.xlane.f32.xlu0 %v7637_v58  ;;  %v4816_v14 = vpop.f32.mrb[44].mxu1 }
 0x839   : > { %v2451_v13 = vpop.f32.mrb[45].mxu1  ;;  %v2460_v27 = vadd.f32 %v4816_v14, %v7602_v17 }
 0x83a   : > { %2494 = vadd.xlane.f32.xlu1 %v7642_v59  ;;  %v4817_v32 = vpop.f32.mrb[46].mxu1  ;;  %v2452_v44 = vadd.f32 %v7602_v17, %v2451_v13 }
 0x83b   : > { %v2454_v54 = vpop.f32.mrb[47].mxu1  ;;  %v2463_v11 = vadd.f32 %v4817_v32, %v7602_v17  ;;  %v7681_v62 = vadd.f32 %v5555_v16, %v2460_v27  ;;  %v5176_v27 = vld [vmem:[#allocation25 + $0x44] ss:$16 sps:$4 sm:$0xff]  }
 0x83c   : > { %v2455_v25 = vadd.f32 %v7602_v17, %v2454_v54  ;;  %2506 = vadd.xlane.f32.xlu0 %v7646_v8  ;;  %v7677_v20 = vadd.f32 %v5554_v37, %v2452_v44  ;;  %v5168_v17 = vld [vmem:[#allocation25 + $0x20] ss:$16 sps:$4 sm:$0xff]   ;;  %v5179_v37 = vld [vmem:[#allocation25 + $0x4c] ss:$16 sps:$4 sm:$0xff]  }
 0x83d   : > { %v7666_v9 = vadd.f32 %v5552_v4, %v2463_v11  ;;  %8680 = vst [vmem:[#allocation71_spill] sm:$0xff] %v7681_v62  ;;  %2929 = vmatpush1.bf16.msra.mxu0 %v5168_v17  ;;  %3043 = vmatprep.subr.bf16.mxu1 %v5179_v37  ;;  %v5195_v37 = vld [vmem:[#allocation25 + $0xa8] ss:$16 sps:$4 sm:$0xff]  }
 0x83e   : > { %v7657_v46 = vadd.f32 %v5550_v18, %v2455_v25  ;;  %2496 = vadd.xlane.f32.xlu1 %v7650_v34  ;;  %8679 = vst [vmem:[#allocation70_spill] sm:$0xff] %v7677_v20  ;;  %2930 = vmatprep.subr.bf16.mxu0 %v5176_v27  ;;  %v5192_v27 = vld [vmem:[#allocation25 + $0xa0] ss:$16 sps:$4 sm:$0xff]  }
 0x83f   : > { %8677 = vst [vmem:[#allocation68_spill] sm:$0xff] %v7666_v9  ;;  %3044 = vmatpush1.bf16.msra.mxu1 %v5177_v24  ;;  %v5201_v24 = vld [vmem:[#allocation25 + $0xc8] ss:$16 sps:$4 sm:$0xff]  }
 0x840   : > { %8675 = vst [vmem:[#allocation66_spill] sm:$0xff] %v7657_v46  ;;  %2510 = vadd.xlane.f32.xlu0 %v7657_v46 }
 0x841   : > { %2931 = vmatpush1.bf16.msra.mxu0 %v5174_v48  ;;  %v5198_v48 = vld [vmem:[#allocation25 + $0xc0] ss:$16 sps:$4 sm:$0xff]  }
 0x842   : > { %2500 = vadd.xlane.f32.xlu1 %v7662_v55 }
 0x844   : > { %2514 = vadd.xlane.f32.xlu0 %v7666_v9 }
 0x846   : > { %2504 = vadd.xlane.f32.xlu1 %v7670_v43 }
 0x84a   : > { %2508 = vadd.xlane.f32.xlu1 %v7677_v20 }
 0x84e   : > { %2512 = vadd.xlane.f32.xlu1 %v7681_v62 }
 0x8b3   : > { %v2485_v1 = vpop.xlane.xlu1 %2484 }
 0x8b4   : > { %v2516_v57 = vmul.f32 0.0078125, %v2485_v1  ;;  %v5182_v1 = vld [vmem:[#allocation25 + $0x64] ss:$16 sps:$4 sm:$0xff]  }
 0x8b5   : > { %2932 = vmatprep.subr.bf16.mxu0 %v5182_v1 }
 0x8b6   : > { %v7685_v38 = vsub.f32 %v7606_v21, %v2516_v57  ;;  %v5185_v57 = vld [vmem:[#allocation25 + $0x6c] ss:$16 sps:$4 sm:$0xff]  }
 0x8b7   : > { %v2487_v10 = vpop.xlane.xlu1 %2486  ;;  %3045 = vmatprep.subr.bf16.mxu1 %v5185_v57  ;;  %v5206_v57 = vld [vmem:[#allocation25 + $0xe4] ss:$16 sps:$4 sm:$0xff]  }
 0x8b8   : > { %v2517_v5 = vmul.f32 0.0078125, %v2487_v10  ;;  %v2548_v12 = vmul.f32 %v7685_v38, %v7685_v38 }
 0x8ba   : > { %v7690_v60 = vsub.f32 %v7612_v19, %v2517_v5  ;;  %2564 = vadd.xlane.f32.xlu1 %v2548_v12 }
 0x8bb   : > { %v2489_v49 = vpop.xlane.xlu1 %2488 }
 0x8bc   : > { %v2518_v56 = vmul.f32 0.0078125, %v2489_v49  ;;  %v2549_v31 = vmul.f32 %v7690_v60, %v7690_v60  ;;  %v2499_v40 = vpop.xlane.xlu0 %2498 }
 0x8bd   : > { %v2523_v13 = vmul.f32 0.0078125, %v2499_v40 }
 0x8be   : > { %v7695_v0 = vsub.f32 %v7617_v47, %v2518_v56  ;;  %2566 = vadd.xlane.f32.xlu0 %v2549_v31  ;;  %v5180_v56 = vld [vmem:[#allocation25 + $0x60] ss:$16 sps:$4 sm:$0xff]   ;;  %v5183_v31 = vld [vmem:[#allocation25 + $0x68] ss:$16 sps:$4 sm:$0xff]  }
 0x8bf   : > { %v2491_v3 = vpop.xlane.xlu1 %2490  ;;  %v7713_v25 = vsub.f32 %v7621_v63, %v2523_v13  ;;  %2933 = vmatpush1.bf16.msra.mxu0 %v5180_v56  ;;  %3046 = vmatpush1.bf16.msra.mxu1 %v5183_v31  ;;  %v5212_v56 = vld [vmem:[#allocation28 + $0xc0] sm:$0xff]  }
 0x8c0   : > { %v2519_v61 = vmul.f32 0.0078125, %v2491_v3  ;;  %v2550_v50 = vmul.f32 %v7695_v0, %v7695_v0 }
 0x8c1   : > { %v2555_v39 = vmul.f32 %v7713_v25, %v7713_v25 }
 0x8c2   : > { %v7700_v42 = vsub.f32 %v7626_v26, %v2519_v61  ;;  %2568 = vadd.xlane.f32.xlu1 %v2550_v50 }
 0x8c3   : > { %v2493_v23 = vpop.xlane.xlu1 %2492 }
 0x8c4   : > { %v2520_v52 = vmul.f32 0.0078125, %v2493_v23  ;;  %v2551_v29 = vmul.f32 %v7700_v42, %v7700_v42  ;;  %v5188_v23 = vld [vmem:[#allocation25 + $0x84] ss:$16 sps:$4 sm:$0xff]  }
 0x8c5   : > { %v2503_v22 = vpop.xlane.xlu0 %2502  ;;  %2934 = vmatprep.subr.bf16.mxu0 %v5188_v23 }
 0x8c6   : > { %v7705_v33 = vsub.f32 %v7631_v36, %v2520_v52  ;;  %2570 = vadd.xlane.f32.xlu0 %v2551_v29  ;;  %v2525_v11 = vmul.f32 0.0078125, %v2503_v22  ;;  %v5191_v52 = vld [vmem:[#allocation25 + $0x8c] ss:$16 sps:$4 sm:$0xff]  }
 0x8c7   : > { %v2495_v14 = vpop.xlane.xlu1 %2494  ;;  %3047 = vmatprep.subr.bf16.mxu1 %v5191_v52 }
 0x8c8   : > { %v2521_v53 = vmul.f32 0.0078125, %v2495_v14  ;;  %v2552_v32 = vmul.f32 %v7705_v33, %v7705_v33  ;;  %v7721_v16 = vsub.f32 %v7637_v58, %v2525_v11  ;;  %v5194_v11 = vld [vmem:[#allocation25 + $0xa4] ss:$16 sps:$4 sm:$0xff]  }
 0x8c9   : > { %v2507_v54 = vpop.xlane.xlu0 %2506 }
 0x8ca   : > { %v7710_v45 = vsub.f32 %v7642_v59, %v2521_v53  ;;  %2572 = vadd.xlane.f32.xlu1 %v2552_v32  ;;  %v2527_v4 = vmul.f32 0.0078125, %v2507_v54  ;;  %v2557_v12 = vmul.f32 %v7721_v16, %v7721_v16  ;;  %v5186_v53 = vld [vmem:[#allocation25 + $0x80] ss:$16 sps:$4 sm:$0xff]   ;;  %v5189_v32 = vld [vmem:[#allocation25 + $0x88] ss:$16 sps:$4 sm:$0xff]  }
 0x8cb   : > { %v2497_v28 = vpop.xlane.xlu1 %2496  ;;  %2935 = vmatpush1.bf16.msra.mxu0 %v5186_v53  ;;  %3048 = vmatpush1.bf16.msra.mxu1 %v5189_v32 }
 0x8cc   : > { %v2522_v18 = vmul.f32 0.0078125, %v2497_v28  ;;  %v2553_v30 = vmul.f32 %v7710_v45, %v7710_v45  ;;  %v7731_v17 = vsub.f32 %v7646_v8, %v2527_v4  ;;  %2936 = vmatprep.subr.bf16.mxu0 %v5194_v11 }
 0x8cd   : > { %v2511_v35 = vpop.xlane.xlu0 %2510 }
 0x8ce   : > { %v7718_v15 = vsub.f32 %v7650_v34, %v2522_v18  ;;  %2574 = vadd.xlane.f32.xlu0 %v2553_v30  ;;  %v2529_v10 = vmul.f32 0.0078125, %v2511_v35  ;;  %v2559_v40 = vmul.f32 %v7731_v17, %v7731_v17  ;;  %v5197_v18 = vld [vmem:[#allocation25 + $0xac] ss:$16 sps:$4 sm:$0xff]  }
 0x8cf   : > { %v2501_v44 = vpop.xlane.xlu1 %2500  ;;  %3049 = vmatprep.subr.bf16.mxu1 %v5197_v18  ;;  %2937 = vmatpush1.bf16.msra.mxu0 %v5192_v27 }
 0x8d0   : > { %v2524_v51 = vmul.f32 0.0078125, %v2501_v44  ;;  %v2554_v2 = vmul.f32 %v7718_v15, %v7718_v15  ;;  %v7743_v29 = vsub.f32 %v7657_v46, %v2529_v10  ;;  %3050 = vmatpush1.bf16.msra.mxu1 %v5195_v37  ;;  %v5209_v10 = vld [vmem:[#allocation25 + $0xec] ss:$16 sps:$4 sm:$0xff]  }
 0x8d1   : > { %v2515_v3 = vpop.xlane.xlu0 %2514 }
 0x8d2   : > { %v7728_v6 = vsub.f32 %v7662_v55, %v2524_v51  ;;  %2578 = vadd.xlane.f32.xlu0 %v2555_v39  ;;  %2576 = vadd.xlane.f32.xlu1 %v2554_v2  ;;  %v2531_v22 = vmul.f32 0.0078125, %v2515_v3  ;;  %v2561_v35 = vmul.f32 %v7743_v29, %v7743_v29  ;;  %v5200_v51 = vld [vmem:[#allocation25 + $0xc4] ss:$16 sps:$4 sm:$0xff]   ;;  %v5203_v2 = vld [vmem:[#allocation25 + $0xcc] ss:$16 sps:$4 sm:$0xff]  }
 0x8d3   : > { %v2505_v41 = vpop.xlane.xlu1 %2504  ;;  %2938 = vmatprep.subr.bf16.mxu0 %v5200_v51  ;;  %3051 = vmatprep.subr.bf16.mxu1 %v5203_v2 }
 0x8d4   : > { %v2526_v5 = vmul.f32 0.0078125, %v2505_v41  ;;  %v2556_v49 = vmul.f32 %v7728_v6, %v7728_v6  ;;  %v7751_v30 = vsub.f32 %v7666_v9, %v2531_v22  ;;  %2939 = vmatpush1.bf16.msra.mxu0 %v5198_v48  ;;  %3052 = vmatpush1.bf16.msra.mxu1 %v5201_v24 }
 0x8d5   : > { %2940 = vmatprep.subr.bf16.mxu0 %v5206_v57  ;;  %3053 = vmatprep.subr.bf16.mxu1 %v5209_v10 }
 0x8d6   : > { %v7738_v61 = vsub.f32 %v7670_v43, %v2526_v5  ;;  %2582 = vadd.xlane.f32.xlu0 %v2557_v12  ;;  %2580 = vadd.xlane.f32.xlu1 %v2556_v49  ;;  %v2563_v41 = vmul.f32 %v7751_v30, %v7751_v30  ;;  %v5204_v5 = vld [vmem:[#allocation25 + $0xe0] ss:$16 sps:$4 sm:$0xff]   ;;  %v5207_v12 = vld [vmem:[#allocation25 + $0xe8] ss:$16 sps:$4 sm:$0xff]  }
 0x8d7   : > { %v2509_v50 = vpop.xlane.xlu1 %2508  ;;  %v5210_v49 = vld [vmem:[#allocation28 + $0x40] sm:$0xff]  }
 0x8d8   : > { %v2528_v14 = vmul.f32 0.0078125, %v2509_v50  ;;  %v2558_v13 = vmul.f32 %v7738_v61, %v7738_v61  ;;  %2941 = vmatpush1.bf16.msra.mxu0 %v5204_v5  ;;  %3054 = vmatpush1.bf16.msra.mxu1 %v5207_v12 }
 0x8d9   : > { %4538 = vmatprep.subr.bf16.mxu0 %v5210_v49  ;;  %4602 = vmatprep.subr.bf16.mxu1 %v5212_v56 }
 0x8da   : > { %v7748_v54 = vsub.f32 %v7677_v20, %v2528_v14  ;;  %2586 = vadd.xlane.f32.xlu0 %v2559_v40  ;;  %2584 = vadd.xlane.f32.xlu1 %v2558_v13 }
 0x8db   : > { %v2513_v28 = vpop.xlane.xlu1 %2512 }
 0x8dc   : > { %v2530_v4 = vmul.f32 0.0078125, %v2513_v28  ;;  %v2560_v44 = vmul.f32 %v7748_v54, %v7748_v54 }
 0x8de   : > { %v7758_v39 = vsub.f32 %v7681_v62, %v2530_v4  ;;  %2590 = vadd.xlane.f32.xlu0 %v2561_v35  ;;  %2588 = vadd.xlane.f32.xlu1 %v2560_v44  ;;  %v7765_v35 = vld [vmem:[#allocation17] ss:$0 sm:$0xff] }
 0x8e0   : > { %v2562_v1 = vmul.f32 %v7758_v39, %v7758_v39 }
 0x8e2   : > { %2594 = vadd.xlane.f32.xlu0 %v2563_v41  ;;  %2592 = vadd.xlane.f32.xlu1 %v2562_v1  ;;  %v7769_v41 = vld [vmem:[#allocation19] ss:$0 sm:$0xff] }
 0x947   : > { %v2565_v31 = vpop.xlane.xlu1 %2564 }
 0x948   : > { %v2596_v3 = vmul.f32 0.0078125, %v2565_v31 }
 0x94a   : > { %v2612_v50 = vadd.f32 1e-05, %v2596_v3 }
 0x94b   : > { %v2567_v40 = vpop.xlane.xlu0 %2566 }
 0x94c   : > { %5380 = vrsqrt.f32 %v2612_v50  ;;  %v2597_v23 = vmul.f32 0.0078125, %v2567_v40  ;;  %v5211_v50 = vld [vmem:[#allocation28] sm:$0xff]  }
 0x94d   : > { %v5213_v40 = vld [vmem:[#allocation28 + $0x80] sm:$0xff]  }
 0x94e   : > { %v2613_v52 = vadd.f32 1e-05, %v2597_v23 }
 0x94f   : > { %v2569_v22 = vpop.xlane.xlu1 %2568 }
 0x950   : > { %5382 = vrsqrt.f32 %v2613_v52  ;;  %v2598_v14 = vmul.f32 0.0078125, %v2569_v22 }
 0x952   : > { %v2614_v13 = vadd.f32 1e-05, %v2598_v14  ;;  %v5214_v14 = vld [vmem:[#allocation28 + $0x48] sm:$0xff]  }
 0x953   : > { %v2571_v53 = vpop.xlane.xlu0 %2570 }
 0x954   : > { %5384 = vrsqrt.f32 %v2614_v13  ;;  %v2599_v32 = vmul.f32 0.0078125, %v2571_v53  ;;  %v5216_v13 = vld [vmem:[#allocation28 + $0xc8] sm:$0xff]  }
 0x956   : > { %v5381_v28 = vpop.eup %5380  ;;  %v2615_v11 = vadd.f32 1e-05, %v2599_v32 }
 0x957   : > { %v2644_v18 = vmul.f32 %v5381_v28, %v7685_v38  ;;  %v2573_v4 = vpop.xlane.xlu1 %2572 }
 0x958   : > { %5386 = vrsqrt.f32 %v2615_v11  ;;  %v2600_v44 = vmul.f32 0.0078125, %v2573_v4 }
 0x959   : > { %v2666_v51 = vmul.f32 %v7765_v35, %v2644_v18 }
 0x95a   : > { %v5383_v27 = vpop.eup %5382  ;;  %v2616_v37 = vadd.f32 1e-05, %v2600_v44  ;;  %v5215_v44 = vld [vmem:[#allocation28 + $0x8] sm:$0xff]  }
 0x95b   : > { %v2645_v2 = vmul.f32 %v5383_v27, %v7690_v60  ;;  %v2575_v48 = vpop.xlane.xlu0 %2574  ;;  %v2688_v12 = vadd.f32 %v7769_v41, %v2666_v51  ;;  %v5217_v27 = vld [vmem:[#allocation28 + $0x88] sm:$0xff]  }
 0x95c   : > { %5388 = vrsqrt.f32 %v2616_v37  ;;  %v2601_v24 = vmul.f32 0.0078125, %v2575_v48  ;;  %v5220_v48 = vld [vmem:[#allocation28 + $0xd0] sm:$0xff]  }
 0x95d   : > { %v2667_v1 = vmul.f32 %v7765_v35, %v2645_v2 }
 0x95e   : > { %v5385_v57 = vpop.eup %5384  ;;  %v2617_v38 = vadd.f32 1e-05, %v2601_v24 }
 0x95f   : > { %v2579_v10 = vpop.xlane.xlu0 %2578  ;;  %v2577_v5 = vpop.xlane.xlu1 %2576  ;;  %v2689_v49 = vadd.f32 %v7769_v41, %v2667_v1  ;;  %v2646_v56 = vmul.f32 %v5385_v57, %v7695_v0 }
 0x960   : > { %5390 = vrsqrt.f32 %v2617_v38  ;;  %v2603_v31 = vmul.f32 0.0078125, %v2579_v10  ;;  %v2602_v60 = vmul.f32 0.0078125, %v2577_v5 }
 0x961   : > { %v2704_v3 = vpack.c.bf16 %v2689_v49, %v2688_v12  ;;  %v2668_v11 = vmul.f32 %v7765_v35, %v2646_v56  ;;  %v5219_v56 = vld [vmem:[#allocation28 + $0x10] sm:$0xff]  }
 0x962   : > { %v5387_v23 = vpop.eup %5386  ;;  %v2619_v52 = vadd.f32 1e-05, %v2603_v31  ;;  %v2618_v22 = vadd.f32 1e-05, %v2602_v60  ;;  %v5221_v31 = vld [vmem:[#allocation28 + $0x90] sm:$0xff]  }
 0x963   : > { %v2583_v53 = vpop.xlane.xlu0 %2582  ;;  %2959 = vmatmul.mubr.bf16.vlgmr.msra.gmra.mrb[48].mxu0 %v2704_v3  ;;  %3072 = vmatmul.mubr.bf16.vlgmr.msra.gmra.mrb[48].mxu1 %v2704_v3  ;;  %v2581_v32 = vpop.xlane.xlu1 %2580  ;;  %v2647_v28 = vmul.f32 %v5387_v23, %v7700_v42  ;;  %v5218_v42 = vld [vmem:[#allocation28 + $0x50] sm:$0xff]   ;;  %v2690_v57 = vadd.f32 %v7769_v41, %v2668_v11 }
 0x964   : > { %5392 = vrsqrt.f32 %v2619_v52  ;;  %v2605_v0 = vmul.f32 0.0078125, %v2583_v53  ;;  %v2604_v18 = vmul.f32 0.0078125, %v2581_v32  ;;  %2968 = vmatprep.mubr.bf16.mxu0 %v6278_v7  ;;  %3081 = vmatprep.mubr.bf16.mxu1 %v6278_v7  ;;  %v5223_v53 = vld [vmem:[#allocation28 + $0x18] sm:$0xff]  }
 0x965   : > { %5394 = vrsqrt.f32 %v2618_v22  ;;  %v2669_v4 = vmul.f32 %v7765_v35, %v2647_v28  ;;  %4539 = vmatpush3.bf16.msra.mxu0 %v5211_v50  ;;  %4603 = vmatpush3.bf16.msra.mxu1 %v5213_v40  ;;  %v5222_v50 = vld [vmem:[#allocation28 + $0x58] sm:$0xff]  }
 0x966   : > { %v5389_v37 = vpop.eup %5388  ;;  %v2621_v51 = vadd.f32 1e-05, %v2605_v0  ;;  %v2620_v2 = vadd.f32 1e-05, %v2604_v18  ;;  %4540 = vmatprep.subr.bf16.mxu0 %v5214_v14  ;;  %4604 = vmatprep.subr.bf16.mxu1 %v5216_v13  ;;  %v5224_v40 = vld [vmem:[#allocation28 + $0xd8] sm:$0xff]   ;;  %v5226_v0 = vld [vmem:[#allocation28 + $0x60] sm:$0xff]  }
 0x967   : > { %v2587_v24 = vpop.xlane.xlu0 %2586  ;;  %v2585_v1 = vpop.xlane.xlu1 %2584  ;;  %v2691_v38 = vadd.f32 %v7769_v41, %v2669_v4  ;;  %v2648_v10 = vmul.f32 %v5389_v37, %v7705_v33  ;;  %v5225_v32 = vld [vmem:[#allocation28 + $0x98] sm:$0xff]  }
 0x968   : > { %5396 = vrsqrt.f32 %v2621_v51  ;;  %v2607_v5 = vmul.f32 0.0078125, %v2587_v24  ;;  %v2606_v12 = vmul.f32 0.0078125, %v2585_v1  ;;  %v5229_v24 = vld [vmem:[#allocation28 + $0xa0] sm:$0xff]  }
 0x969   : > { %5398 = vrsqrt.f32 %v2620_v2  ;;  %v2705_v49 = vpack.c.bf16 %v2691_v38, %v2690_v57  ;;  %4541 = vmatpush3.bf16.msra.mxu0 %v5215_v44  ;;  %4605 = vmatpush3.bf16.msra.mxu1 %v5217_v27  ;;  %v2670_v3 = vmul.f32 %v7765_v35, %v2648_v10 }
 0x96a   : > { %v5391_v60 = vpop.eup %5390  ;;  %4542 = vmatprep.subr.bf16.mxu0 %v5218_v42  ;;  %4606 = vmatprep.subr.bf16.mxu1 %v5220_v48  ;;  %v2623_v23 = vadd.f32 1e-05, %v2607_v5  ;;  %v2622_v52 = vadd.f32 1e-05, %v2606_v12  ;;  %v5227_v48 = vld [vmem:[#allocation28 + $0x20] sm:$0xff]  }
 0x96b   : > { %2969 = vmatmul.mubr.bf16.gmra.mrb[52].mxu0 %v2705_v49  ;;  %3082 = vmatmul.mubr.bf16.gmra.mrb[52].mxu1 %v2705_v49  ;;  %v2649_v33 = vmul.f32 %v5391_v60, %v7710_v45  ;;  %v2591_v22 = vpop.xlane.xlu0 %2590  ;;  %v2589_v14 = vpop.xlane.xlu1 %2588  ;;  %v2692_v11 = vadd.f32 %v7769_v41, %v2670_v3  ;;  %v5228_v45 = vld [vmem:[#allocation28 + $0xe0] sm:$0xff]  }
 0x96c   : > { %2978 = vmatprep.mubr.bf16.mxu0 %v6278_v7  ;;  %3091 = vmatprep.mubr.bf16.mxu1 %v6278_v7  ;;  %5400 = vrsqrt.f32 %v2623_v23  ;;  %v2609_v4 = vmul.f32 0.0078125, %v2591_v22  ;;  %v2608_v37 = vmul.f32 0.0078125, %v2589_v14 }
 0x96d   : > { %v2671_v13 = vmul.f32 %v7765_v35, %v2649_v33  ;;  %4543 = vmatpush3.bf16.msra.mxu0 %v5219_v56  ;;  %4607 = vmatpush3.bf16.msra.mxu1 %v5221_v31  ;;  %5402 = vrsqrt.f32 %v2622_v52 }
 0x96e   : > { %v5393_v28 = vpop.eup %5392  ;;  %4544 = vmatprep.subr.bf16.mxu0 %v5222_v50  ;;  %4608 = vmatprep.subr.bf16.mxu1 %v5224_v40  ;;  %v2625_v10 = vadd.f32 1e-05, %v2609_v4 }
 0x96f   : > { %v5395_v18 = vpop.eup %5394  ;;  %v2693_v44 = vadd.f32 %v7769_v41, %v2671_v13  ;;  %v2651_v27 = vmul.f32 %v5393_v28, %v7713_v25  ;;  %v2624_v25 = vadd.f32 1e-05, %v2608_v37  ;;  %v2595_v5 = vpop.xlane.xlu0 %2594 }
 0x970   : > { %v2650_v51 = vmul.f32 %v5395_v18, %v7718_v15  ;;  %v2593_v12 = vpop.xlane.xlu1 %2592  ;;  %5404 = vrsqrt.f32 %v2625_v10  ;;  %v2611_v60 = vmul.f32 0.0078125, %v2595_v5  ;;  %v5231_v5 = vld [vmem:[#allocation28 + $0x28] sm:$0xff]  }
 0x971   : > { %v2706_v2 = vpack.c.bf16 %v2693_v44, %v2692_v11  ;;  %v2673_v42 = vmul.f32 %v7765_v35, %v2651_v27  ;;  %4545 = vmatpush3.bf16.msra.mxu0 %v5223_v53  ;;  %4609 = vmatpush3.bf16.msra.mxu1 %v5225_v32  ;;  %5406 = vrsqrt.f32 %v2624_v25  ;;  %v2610_v3 = vmul.f32 0.0078125, %v2593_v12  ;;  %v5236_v12 = vld [vmem:[#allocation28 + $0xf0] sm:$0xff]  }
 0x972   : > { %v5397_v1 = vpop.eup %5396  ;;  %v2672_v57 = vmul.f32 %v7765_v35, %v2650_v51  ;;  %4546 = vmatprep.subr.bf16.mxu0 %v5226_v0  ;;  %4610 = vmatprep.subr.bf16.mxu1 %v5228_v45  ;;  %v2627_v22 = vadd.f32 1e-05, %v2611_v60  ;;  %v5241_v60 = vld [vmem:[#allocation28 + $0xb8] sm:$0xff]  }
 0x973   : > { %v5399_v38 = vpop.eup %5398  ;;  %2979 = vmatmul.mubr.bf16.gmra.mrb[56].mxu0 %v2706_v2  ;;  %3092 = vmatmul.mubr.bf16.gmra.mrb[56].mxu1 %v2706_v2  ;;  %v2695_v15 = vadd.f32 %v7769_v41, %v2673_v42  ;;  %v2653_v31 = vmul.f32 %v5397_v1, %v7721_v16  ;;  %v2626_v14 = vadd.f32 1e-05, %v2610_v3  ;;  %v2746_v3 = vlaneseq }
 0x974   : > { %2988 = vmatprep.mubr.bf16.mxu0 %v6278_v7  ;;  %3101 = vmatprep.mubr.bf16.mxu1 %v6278_v7  ;;  %v2694_v49 = vadd.f32 %v7769_v41, %v2672_v57  ;;  %v2652_v56 = vmul.f32 %v5399_v38, %v7728_v6  ;;  %5408 = vrsqrt.f32 %v2627_v22 }
 0x975   : > { %4547 = vmatpush3.bf16.msra.mxu0 %v5227_v48  ;;  %4611 = vmatpush3.bf16.msra.mxu1 %v5229_v24  ;;  %v2675_v33 = vmul.f32 %v7765_v35, %v2653_v31  ;;  %5410 = vrsqrt.f32 %v2626_v14  ;;  %v5239_v31 = vld [vmem:[#allocation28 + $0x38] sm:$0xff]  }
 0x976   : > { %v5401_v50 = vpop.eup %5400  ;;  %v2707_v40 = vpack.c.bf16 %v2695_v15, %v2694_v49  ;;  %v2674_v23 = vmul.f32 %v7765_v35, %v2652_v56  ;;  %v5233_v15 = vld [vmem:[#allocation28 + $0xa8] sm:$0xff]   ;;  %v5235_v49 = vld [vmem:[#allocation28 + $0x30] sm:$0xff]  }
 0x977   : > { %v5403_v52 = vpop.eup %5402  ;;  %v2697_v6 = vadd.f32 %v7769_v41, %v2675_v33  ;;  %v2655_v53 = vmul.f32 %v5401_v50, %v7731_v17  ;;  %v5237_v56 = vld [vmem:[#allocation28 + $0xb0] sm:$0xff]   ;;  %v2747_v50 = vshrl.u32 %v2746_v3, 7  ;;  %v2744_v33 = vld [vmem:[#allocation26] sm:$0xf] }
 0x978   : > { %v2696_v16 = vadd.f32 %v7769_v41, %v2674_v23  ;;  %v2654_v13 = vmul.f32 %v5403_v52, %v7738_v61 }
 0x979   : > { %v2677_v0 = vmul.f32 %v7765_v35, %v2655_v53  ;;  %v2756_v23 = vsub.s32 2, %v2747_v50  ;;  %v2752_v52 = vsub.s32 1, %v2747_v50  ;;  %v2760_v22 = vsub.s32 3, %v2747_v50 }
 0x97a   : > { %v5405_v32 = vpop.eup %5404  ;;  %v2708_v28 = vpack.c.bf16 %v2697_v6, %v2696_v16  ;;  %v2676_v11 = vmul.f32 %v7765_v35, %v2654_v13 }
 0x97b   : > { %2989 = vmatmul.mubr.bf16.gmra.mrb[60].mxu0 %v2707_v40  ;;  %3102 = vmatmul.mubr.bf16.gmra.mrb[60].mxu1 %v2707_v40  ;;  %v5407_v45 = vpop.eup %5406  ;;  %v2699_v61 = vadd.f32 %v7769_v41, %v2677_v0  ;;  %v2657_v4 = vmul.f32 %v5405_v32, %v7743_v29  ;;  %v2748_v40 = vsub.s32 0, %v2747_v50  ;;  %v7832_v16 = vrot.slane %v2744_v33, %v2756_v23 }
 0x97c   : > { %2998 = vmatprep.mubr.bf16.mxu0 %v6278_v7  ;;  %3111 = vmatprep.mubr.bf16.mxu1 %v6278_v7  ;;  %v2698_v18 = vadd.f32 %v7769_v41, %v2676_v11  ;;  %v2656_v17 = vmul.f32 %v5407_v45, %v7748_v54  ;;  %v7834_v6 = vrot.slane %v2744_v33, %v2752_v52 }
 0x97d   : > { %v2679_v51 = vmul.f32 %v7765_v35, %v2657_v4  ;;  %v7830_v14 = vrot.slane %v2744_v33, %v2748_v40  ;;  %v7836_v13 = vrot.slane %v2744_v33, %v2760_v22 }
 0x97e   : > { %v5409_v44 = vpop.eup %5408  ;;  %v2709_v27 = vpack.c.bf16 %v2699_v61, %v2698_v18  ;;  %v2678_v37 = vmul.f32 %v7765_v35, %v2656_v17 }
 0x97f   : > { %v5411_v2 = vpop.eup %5410  ;;  %v2701_v48 = vadd.f32 %v7769_v41, %v2679_v51  ;;  %v2659_v29 = vmul.f32 %v5409_v44, %v7751_v30  ;;  %v5232_v30 = vld [vmem:[#allocation28 + $0xe8] sm:$0xff]  }
 0x980   : > { %v2700_v42 = vadd.f32 %v7769_v41, %v2678_v37  ;;  %v2658_v54 = vmul.f32 %v5411_v2, %v7758_v39  ;;  %v5230_v39 = vld [vmem:[#allocation28 + $0x68] sm:$0xff]   ;;  %4612 = vmatprep.subr.bf16.mxu1 %v5232_v30 }
 0x981   : > { %v2681_v57 = vmul.f32 %v7765_v35, %v2659_v29  ;;  %4548 = vmatprep.subr.bf16.mxu0 %v5230_v39  ;;  %4613 = vmatpush3.bf16.msra.mxu1 %v5233_v15 }
 0x982   : > { %v2710_v24 = vpack.c.bf16 %v2701_v48, %v2700_v42  ;;  %v2680_v1 = vmul.f32 %v7765_v35, %v2658_v54  ;;  %4549 = vmatpush3.bf16.msra.mxu0 %v5231_v5  ;;  %v5234_v35 = vld [vmem:[#allocation28 + $0x70] sm:$0xff]   ;;  %4614 = vmatprep.subr.bf16.mxu1 %v5236_v12 }
 0x983   : > { %2999 = vmatmul.mubr.bf16.gmra.mrb[64].mxu0 %v2708_v28  ;;  %3112 = vmatmul.mubr.bf16.gmra.mrb[64].mxu1 %v2708_v28  ;;  %v2703_v10 = vadd.f32 %v7769_v41, %v2681_v57 }
 0x984   : > { %3008 = vmatprep.mubr.bf16.mxu0 %v6278_v7  ;;  %3121 = vmatprep.mubr.bf16.mxu1 %v6278_v7  ;;  %v2702_v38 = vadd.f32 %v7769_v41, %v2680_v1  ;;  %v5240_v41 = vld [vmem:[#allocation28 + $0xf8] sm:$0xff]  }
 0x985   : > { %4550 = vmatprep.subr.bf16.mxu0 %v5234_v35  ;;  %4615 = vmatpush3.bf16.msra.mxu1 %v5237_v56 }
 0x986   : > { %v2711_v25 = vpack.c.bf16 %v2703_v10, %v2702_v38  ;;  %4551 = vmatpush3.bf16.msra.mxu0 %v5235_v49  ;;  %4616 = vmatprep.subr.bf16.mxu1 %v5240_v41 }
 0x989   : > { %4617 = vmatpush3.bf16.msra.mxu1 %v5241_v60 }
 0x98b   : > { %3009 = vmatmul.mubr.bf16.gmra.mrb[68].mxu0 %v2709_v27  ;;  %3122 = vmatmul.mubr.bf16.gmra.mrb[68].mxu1 %v2709_v27 }
 0x98c   : > { %3018 = vmatprep.mubr.bf16.mxu0 %v6278_v7  ;;  %3131 = vmatprep.mubr.bf16.mxu1 %v6278_v7 }
 0x993   : > { %3019 = vmatmul.mubr.bf16.gmra.mrb[72].mxu0 %v2710_v24  ;;  %3132 = vmatmul.mubr.bf16.gmra.mrb[72].mxu1 %v2710_v24 }
 0x994   : > { %3028 = vmatprep.mubr.bf16.mxu0 %v6278_v7  ;;  %3141 = vmatprep.mubr.bf16.mxu1 %v6278_v7  ;;  %v5238_v7 = vld [vmem:[#allocation28 + $0x78] sm:$0xff]  }
 0x995   : > { %4552 = vmatprep.subr.bf16.mxu0 %v5238_v7 }
 0x996   : > { %4553 = vmatpush3.bf16.msra.mxu0 %v5239_v31 }
 0x99b   : > { %3029 = vmatmul.mubr.bf16.gmra.mrb[76].mxu0 %v2711_v25  ;;  %3142 = vmatmul.mubr.bf16.gmra.mrb[76].mxu1 %v2711_v25 }
 0xa36   : > { %v2960_v53 = vpop.f32.mrb[48].mxu0  ;;  %v3073_v32 = vpop.f32.mrb[48].mxu1 }
 0xa37   : > { %v2961_v28 = vadd.f32 %v2960_v53, %v7830_v14  ;;  %v3074_v11 = vadd.f32 %v3073_v32, %v7832_v16  ;;  %v2962_v0 = vpop.f32.mrb[49].mxu0  ;;  %v3075_v45 = vpop.f32.mrb[49].mxu1 }
 0xa38   : > { %v2963_v18 = vadd.f32 %v2962_v0, %v7834_v6  ;;  %v3076_v61 = vadd.f32 %v3075_v45, %v7836_v13  ;;  %v2964_v17 = vpop.f32.mrb[50].mxu0  ;;  %v3077_v4 = vpop.f32.mrb[50].mxu1 }
 0xa39   : > { %v3216_v44 = vmul.f32 0.70710677, %v2961_v28  ;;  %v3218_v27 = vmul.f32 0.70710677, %v3074_v11  ;;  %v2965_v2 = vadd.f32 %v2964_v17, %v7830_v14  ;;  %v3078_v42 = vadd.f32 %v3077_v4, %v7832_v16  ;;  %v2966_v48 = vpop.f32.mrb[51].mxu0  ;;  %v3079_v54 = vpop.f32.mrb[51].mxu1 }
 0xa3a   : > { %v3217_v37 = vmul.f32 0.70710677, %v2963_v18  ;;  %v3219_v51 = vmul.f32 0.70710677, %v3076_v61  ;;  %v2967_v29 = vadd.f32 %v2966_v48, %v7834_v6  ;;  %v3080_v24 = vadd.f32 %v3079_v54, %v7836_v13 }
 0xa3b   : > { %5412 = verf.f32 %v3216_v44  ;;  %v3220_v1 = vmul.f32 0.70710677, %v2965_v2  ;;  %v3222_v57 = vmul.f32 0.70710677, %v3078_v42  ;;  %v3152_v50 = vmul.f32 0.5, %v2961_v28 }
 0xa3c   : > { %5414 = verf.f32 %v3218_v27  ;;  %v3221_v38 = vmul.f32 0.70710677, %v2967_v29  ;;  %v3223_v25 = vmul.f32 0.70710677, %v3080_v24  ;;  %v3154_v32 = vmul.f32 0.5, %v3074_v11 }
 0xa3d   : > { %5416 = verf.f32 %v3217_v37  ;;  %v3153_v0 = vmul.f32 0.5, %v2963_v18  ;;  %v7853_v45 = vmul.f32 0.5, %v3076_v61  ;;  %v3156_v17 = vmul.f32 0.5, %v2965_v2 }
 0xa3e   : > { %5418 = verf.f32 %v3219_v51  ;;  %v2970_v10 = vpop.f32.mrb[52].mxu0  ;;  %v3083_v30 = vpop.f32.mrb[52].mxu1  ;;  %v3158_v27 = vmul.f32 0.5, %v3078_v42  ;;  %v7855_v54 = vmul.f32 0.5, %v2967_v29 }
 0xa3f   : > { %5420 = verf.f32 %v3220_v1  ;;  %v2971_v39 = vadd.f32 %v2970_v10, %v7830_v14  ;;  %v2972_v5 = vpop.f32.mrb[53].mxu0  ;;  %v3084_v15 = vadd.f32 %v3083_v30, %v7832_v16  ;;  %v3085_v12 = vpop.f32.mrb[53].mxu1  ;;  %v7857_v1 = vmul.f32 0.5, %v3080_v24 }
 0xa40   : > { %5422 = verf.f32 %v3222_v57  ;;  %v2973_v35 = vadd.f32 %v2972_v5, %v7834_v6  ;;  %v2974_v49 = vpop.f32.mrb[54].mxu0  ;;  %v3086_v7 = vadd.f32 %v3085_v12, %v7836_v13  ;;  %v3087_v41 = vpop.f32.mrb[54].mxu1 }
 0xa41   : > { %5424 = verf.f32 %v3221_v38  ;;  %v3224_v56 = vmul.f32 0.70710677, %v2971_v39  ;;  %v2976_v31 = vpop.f32.mrb[55].mxu0  ;;  %v3226_v60 = vmul.f32 0.70710677, %v3084_v15  ;;  %v3089_v3 = vpop.f32.mrb[55].mxu1  ;;  %v2975_v33 = vadd.f32 %v2974_v49, %v7830_v14 }
 0xa42   : > { %5426 = verf.f32 %v3223_v25  ;;  %v3225_v40 = vmul.f32 0.70710677, %v2973_v35  ;;  %v3227_v23 = vmul.f32 0.70710677, %v3086_v7  ;;  %v3088_v52 = vadd.f32 %v3087_v41, %v7832_v16 }
 0xa43   : > { %5428 = verf.f32 %v3224_v56  ;;  %v2977_v22 = vadd.f32 %v2976_v31, %v7834_v6  ;;  %v3228_v28 = vmul.f32 0.70710677, %v2975_v33  ;;  %v3090_v38 = vadd.f32 %v3089_v3, %v7836_v13 }
 0xa44   : > { %5430 = verf.f32 %v3226_v60  ;;  %v3230_v57 = vmul.f32 0.70710677, %v3088_v52  ;;  %v7860_v10 = vmul.f32 0.5, %v2971_v39  ;;  %v7862_v5 = vmul.f32 0.5, %v3084_v15 }
 0xa45   : > { %v5413_v53 = vpop.eup %5412  ;;  %5432 = verf.f32 %v3225_v40  ;;  %v3229_v2 = vmul.f32 0.70710677, %v2977_v22  ;;  %v7864_v12 = vmul.f32 0.5, %v2973_v35  ;;  %v7866_v29 = vmul.f32 0.5, %v3086_v7 }
 0xa46   : > { %v5415_v4 = vpop.eup %5414  ;;  %v3344_v44 = vadd.f32 1.0, %v5413_v53  ;;  %v2980_v37 = vpop.f32.mrb[56].mxu0  ;;  %5434 = verf.f32 %v3227_v23  ;;  %v7872_v60 = vmul.f32 0.5, %v2975_v33  ;;  %v3231_v35 = vmul.f32 0.70710677, %v3090_v38 }
 0xa47   : > { %v3093_v51 = vpop.f32.mrb[56].mxu1  ;;  %v5417_v48 = vpop.eup %5416  ;;  %v3346_v61 = vadd.f32 1.0, %v5415_v4  ;;  %5436 = verf.f32 %v3228_v28  ;;  %v2981_v7 = vadd.f32 %v2980_v37, %v7830_v14  ;;  %v7887_v37 = vmul.f32 0.5, %v3088_v52 }
 0xa48   : > { %v2982_v11 = vpop.f32.mrb[57].mxu0  ;;  %v5419_v18 = vpop.eup %5418  ;;  %v7870_v41 = vmul.f32 %v3344_v44, %v3152_v50  ;;  %v3345_v39 = vadd.f32 1.0, %v5417_v48  ;;  %5438 = verf.f32 %v3230_v57  ;;  %v3094_v50 = vadd.f32 %v3093_v51, %v7832_v16 }
 0xa49   : > { %v3095_v42 = vpop.f32.mrb[57].mxu1  ;;  %v2984_v25 = vpop.f32.mrb[58].mxu0  ;;  %v7877_v53 = vmul.f32 %v3346_v61, %v3154_v32  ;;  %5440 = verf.f32 %v3229_v2  ;;  %v3347_v28 = vadd.f32 1.0, %v5419_v18  ;;  %v3232_v48 = vmul.f32 0.70710677, %v2981_v7 }
 0xa4a   : > { %v5421_v30 = vpop.eup %5420  ;;  %v3097_v24 = vpop.f32.mrb[58].mxu1  ;;  %v7889_v32 = vmul.f32 0.5, %v2977_v22  ;;  %v7895_v51 = vmul.f32 %v3345_v39, %v3153_v0  ;;  %5442 = verf.f32 %v3231_v35 }
 0xa4b   : > { %v7868_v49 = vpop.f32.mrb[59].mxu0  ;;  %v5423_v56 = vpop.eup %5422  ;;  %v3348_v31 = vadd.f32 1.0, %v5421_v30  ;;  %v2983_v30 = vadd.f32 %v2982_v11, %v7834_v6  ;;  %5444 = verf.f32 %v3232_v48  ;;  %v7908_v0 = vmul.f32 %v3347_v28, %v7853_v45 }
 0xa4c   : > { %v7874_v3 = vpop.f32.mrb[59].mxu1  ;;  %v5425_v40 = vpop.eup %5424  ;;  %v3350_v15 = vadd.f32 1.0, %v5423_v56  ;;  %v3098_v48 = vadd.f32 %v3097_v24, %v7832_v16 }
 0xa4d   : > { %v5427_v23 = vpop.eup %5426  ;;  %v7879_v4 = vmul.f32 %v3348_v31, %v3156_v17  ;;  %v7891_v17 = vmul.f32 0.5, %v3090_v38  ;;  %v3349_v18 = vadd.f32 1.0, %v5425_v40  ;;  %v3234_v38 = vmul.f32 0.70710677, %v3094_v50 }
 0xa4e   : > { %v5429_v44 = vpop.eup %5428  ;;  %v7882_v33 = vmul.f32 %v3350_v15, %v3158_v27  ;;  %v2990_v61 = vpop.f32.mrb[60].mxu0  ;;  %v3351_v15 = vadd.f32 1.0, %v5427_v23  ;;  %v3233_v27 = vmul.f32 0.70710677, %v2983_v30  ;;  %v3096_v40 = vadd.f32 %v3095_v42, %v7836_v13 }
 0xa4f   : > { %v5431_v56 = vpop.eup %5430  ;;  %v7893_v2 = vpop.f32.mrb[60].mxu1  ;;  %v3352_v22 = vadd.f32 1.0, %v5429_v44  ;;  %v7915_v23 = vmul.f32 0.5, %v2981_v7  ;;  %5446 = verf.f32 %v3234_v38  ;;  %v2985_v44 = vadd.f32 %v2984_v25, %v7830_v14 }
 0xa50   : > { %v7899_v11 = vpop.f32.mrb[61].mxu0  ;;  %v7901_v31 = vpop.f32.mrb[61].mxu1  ;;  %v3354_v39 = vadd.f32 1.0, %v5431_v56  ;;  %v3413_v45 = vmul.f32 %v3349_v18, %v7855_v54  ;;  %v7920_v56 = vmul.f32 0.5, %v3094_v50  ;;  %5448 = verf.f32 %v3233_v27 }
 0xa51   : > { %v5433_v52 = vpop.eup %5432  ;;  %v7903_v57 = vpop.f32.mrb[62].mxu0  ;;  %v3415_v42 = vmul.f32 %v3351_v15, %v7857_v1  ;;  %v7924_v8 = vmul.f32 %v3352_v22, %v7860_v10  ;;  %v3235_v43 = vmul.f32 0.70710677, %v3096_v40  ;;  %v3236_v7 = vmul.f32 0.70710677, %v2985_v44 }
 0xa52   : > { %v7905_v9 = vpop.f32.mrb[62].mxu1  ;;  %v7911_v35 = vpop.f32.mrb[63].mxu0  ;;  %v3353_v28 = vadd.f32 1.0, %v5433_v52  ;;  %v7927_v38 = vmul.f32 %v3354_v39, %v7862_v5  ;;  %v7929_v24 = vmul.f32 0.5, %v2983_v30  ;;  %v3238_v55 = vmul.f32 0.70710677, %v3098_v48 }
 0xa53   : > { %v7913_v62 = vpop.f32.mrb[63].mxu1  ;;  %v5435_v46 = vpop.eup %5434  ;;  %5450 = verf.f32 %v3235_v43  ;;  %v2987_v50 = vadd.f32 %v7868_v49, %v7834_v6  ;;  %v3100_v1 = vadd.f32 %v7874_v3, %v7836_v13  ;;  %v2991_v30 = vadd.f32 %v2990_v61, %v7830_v14 }
 0xa54   : > { %v5437_v20 = vpop.eup %5436  ;;  %v3355_v25 = vadd.f32 1.0, %v5435_v46  ;;  %v7940_v5 = vmul.f32 %v3353_v28, %v7864_v12  ;;  %v7942_v46 = vmul.f32 0.5, %v3096_v40  ;;  %5452 = verf.f32 %v3236_v7 }
 0xa55   : > { %v5439_v58 = vpop.eup %5438  ;;  %v3356_v18 = vadd.f32 1.0, %v5437_v20  ;;  %v7949_v52 = vmul.f32 0.5, %v2985_v44  ;;  %5454 = verf.f32 %v3238_v55  ;;  %v3237_v3 = vmul.f32 0.70710677, %v2987_v50 }
 0xa56   : > { %v5441_v54 = vpop.eup %5440  ;;  %v7935_v10 = vpop.f32.mrb[64].mxu0  ;;  %v3358_v49 = vadd.f32 1.0, %v5439_v58  ;;  %v7956_v39 = vmul.f32 %v3355_v25, %v7866_v29  ;;  %v3239_v28 = vmul.f32 0.70710677, %v3100_v1  ;;  %v3240_v61 = vmul.f32 0.70710677, %v2991_v30 }
 0xa57   : > { %v7937_v27 = vpop.f32.mrb[64].mxu1  ;;  %v7945_v20 = vpop.f32.mrb[65].mxu0  ;;  %v3357_v40 = vadd.f32 1.0, %v5441_v54  ;;  %v7961_v58 = vmul.f32 %v3356_v18, %v7872_v60  ;;  %5456 = verf.f32 %v3237_v3  ;;  %v3104_v55 = vadd.f32 %v7893_v2, %v7832_v16 }
 0xa58   : > { %v7947_v43 = vpop.f32.mrb[65].mxu1  ;;  %v7951_v15 = vpop.f32.mrb[66].mxu0  ;;  %v2993_v44 = vadd.f32 %v7899_v11, %v7834_v6  ;;  %5458 = verf.f32 %v3239_v28  ;;  %v3106_v29 = vadd.f32 %v7901_v31, %v7836_v13  ;;  %v3473_v25 = vpack.c.bf16 %v3413_v45, %v7895_v51 }
 0xa59   : > { %v7953_v22 = vpop.f32.mrb[66].mxu1  ;;  %v5443_v12 = vpop.eup %5442  ;;  %v3475_v54 = vpack.c.bf16 %v3415_v42, %v7908_v0  ;;  %v7974_v60 = vmul.f32 %v3358_v49, %v7887_v37  ;;  %v7976_v3 = vmul.f32 0.5, %v3098_v48  ;;  %v3242_v2 = vmul.f32 0.70710677, %v3104_v55 }
 0xa5a   : > { %v7958_v7 = vpop.f32.mrb[67].mxu0  ;;  %v5445_v63 = vpop.eup %5444  ;;  %v3359_v18 = vadd.f32 1.0, %v5443_v12  ;;  %v7979_v11 = vmul.f32 %v3357_v40, %v7889_v32  ;;  %5460 = verf.f32 %v3240_v61  ;;  %v3241_v26 = vmul.f32 0.70710677, %v2993_v44  ;;  %3799 = vmatprep.mubr.bf16.mxu0 %v3473_v25 }
 0xa5b   : > { %v7967_v34 = vpop.f32.mrb[67].mxu1  ;;  %v5447_v59 = vpop.eup %5446  ;;  %v3360_v28 = vadd.f32 1.0, %v5445_v63  ;;  %3896 = vmatprep.mubr.bf16.mxu1 %v3475_v54  ;;  %v7981_v51 = vmul.f32 0.5, %v2987_v50  ;;  %v7983_v31 = vmul.f32 0.5, %v3100_v1  ;;  %v3243_v0 = vmul.f32 0.70710677, %v3106_v29 }
 0xa5c   : > { %v5449_v36 = vpop.eup %5448  ;;  %v2995_v37 = vadd.f32 %v7903_v57, %v7830_v14  ;;  %v8681_v48 = vpack.c.bf16 %v7879_v4, %v7870_v41  ;;  %v8682_v32 = vpack.c.bf16 %v7882_v33, %v7877_v53  ;;  %v3362_v42 = vadd.f32 1.0, %v5447_v59 }
 0xa5d   : > { %5462 = verf.f32 %v3242_v2  ;;  %v3108_v50 = vadd.f32 %v7905_v9, %v7832_v16  ;;  %v2997_v57 = vadd.f32 %v7911_v35, %v7834_v6  ;;  %v5451_v4 = vpop.eup %5450  ;;  %v8006_v53 = vmul.f32 %v3359_v18, %v7891_v17 }
 0xa5e   : > { %3800 = vmatmul.mubr.bf16.vlgmr.msra.gmra.mrb[80].mxu0 %v8681_v48  ;;  %3897 = vmatmul.mubr.bf16.vlgmr.msra.gmra.mrb[80].mxu1 %v8682_v32  ;;  %v7993_v63 = vpop.f32.mrb[68].mxu0  ;;  %v7995_v45 = vpop.f32.mrb[68].mxu1  ;;  %v3361_v33 = vadd.f32 1.0, %v5449_v36  ;;  %5464 = verf.f32 %v3241_v26  ;;  %v3244_v49 = vmul.f32 0.70710677, %v2995_v37  ;;  %v8013_v9 = vmul.f32 %v3360_v28, %v7915_v23 }
 0xa5f   : > { %v8001_v1 = vpop.f32.mrb[69].mxu0  ;;  %v8003_v41 = vpop.f32.mrb[69].mxu1  ;;  %v8015_v35 = vmul.f32 0.5, %v2991_v30  ;;  %5466 = verf.f32 %v3243_v0  ;;  %v3246_v61 = vmul.f32 0.70710677, %v3108_v50  ;;  %v8019_v17 = vmul.f32 0.5, %v3104_v55 }
 0xa60   : > { %v8008_v12 = vpop.f32.mrb[70].mxu0  ;;  %v8010_v59 = vpop.f32.mrb[70].mxu1  ;;  %v8021_v36 = vmul.f32 0.5, %v2993_v44  ;;  %v3245_v26 = vmul.f32 0.70710677, %v2997_v57  ;;  %v3110_v18 = vadd.f32 %v7913_v62, %v7836_v13  ;;  %v8028_v23 = vmul.f32 %v3362_v42, %v7920_v56 }
 0xa61   : > { %v5453_v40 = vpop.eup %5452  ;;  %v8017_v25 = vpop.f32.mrb[71].mxu0  ;;  %v8030_v30 = vmul.f32 0.5, %v3106_v29  ;;  %5468 = verf.f32 %v3244_v49  ;;  %v3001_v28 = vadd.f32 %v7935_v10, %v7830_v14  ;;  %v8035_v55 = vmul.f32 %v3361_v33, %v7929_v24 }
 0xa62   : > { %v5455_v54 = vpop.eup %5454  ;;  %v8025_v2 = vpop.f32.mrb[71].mxu1  ;;  %v3363_v44 = vadd.f32 1.0, %v5451_v4  ;;  %5470 = verf.f32 %v3246_v61  ;;  %v3247_v48 = vmul.f32 0.70710677, %v3110_v18  ;;  %v3364_v62 = vadd.f32 1.0, %v5453_v40 }
 0xa63   : > { %v5457_v0 = vpop.eup %5456  ;;  %v3366_v47 = vadd.f32 1.0, %v5455_v54  ;;  %5472 = verf.f32 %v3245_v26  ;;  %v3248_v19 = vmul.f32 0.70710677, %v3001_v28  ;;  %v3114_v29 = vadd.f32 %v7937_v27, %v7832_v16 }
 0xa64   : > { %v5459_v32 = vpop.eup %5458  ;;  %v3365_v56 = vadd.f32 1.0, %v5457_v0  ;;  %5474 = verf.f32 %v3247_v48  ;;  %v3003_v10 = vadd.f32 %v7945_v20, %v7834_v6  ;;  %v8045_v49 = vmul.f32 0.5, %v2995_v37 }
 0xa65   : > { %v5461_v4 = vpop.eup %5460  ;;  %v3367_v33 = vadd.f32 1.0, %v5459_v32  ;;  %5476 = verf.f32 %v3248_v19  ;;  %v3116_v40 = vadd.f32 %v7947_v43, %v7836_v13  ;;  %v8054_v27 = vmul.f32 %v3363_v44, %v7942_v46 }
 0xa66   : > { %v8041_v42 = vpop.f32.mrb[72].mxu0  ;;  %v8043_v24 = vpop.f32.mrb[72].mxu1  ;;  %v8056_v20 = vmul.f32 0.5, %v3108_v50  ;;  %v8058_v26 = vmul.f32 0.5, %v2997_v57  ;;  %v3250_v0 = vmul.f32 0.70710677, %v3114_v29  ;;  %v8065_v32 = vmul.f32 %v3364_v62, %v7949_v52 }
 0xa67   : > { %v8049_v61 = vpop.f32.mrb[73].mxu0  ;;  %v8051_v54 = vpop.f32.mrb[73].mxu1  ;;  %v8068_v43 = vmul.f32 %v3366_v47, %v7976_v3  ;;  %v8070_v21 = vmul.f32 0.5, %v3110_v18  ;;  %v8072_v46 = vmul.f32 0.5, %v3001_v28  ;;  %v3477_v52 = vpack.c.bf16 %v7979_v11, %v7940_v5 }
 0xa68   : > { %8683 = vst [vmem:[#allocation72_spill] sm:$0xff] %v8051_v54  ;;  %v8060_v48 = vpop.f32.mrb[74].mxu0  ;;  %v8062_v37 = vpop.f32.mrb[74].mxu1  ;;  %v3249_v54 = vmul.f32 0.70710677, %v3003_v10  ;;  %v8084_v47 = vmul.f32 %v3367_v33, %v7983_v31  ;;  %5478 = verf.f32 %v3250_v0  ;;  %v3479_v18 = vpack.c.bf16 %v8006_v53, %v7956_v39 }
 0xa69   : > { %8684 = vst [vmem:[#allocation73_spill] sm:$0xff] %v8060_v48  ;;  %8685 = vst [vmem:[#allocation74_spill] sm:$0xff] %v8062_v37  ;;  %v5463_v19 = vpop.eup %5462  ;;  %v8074_v50 = vpop.f32.mrb[75].mxu0  ;;  %v8079_v48 = vmul.f32 %v3365_v56, %v7981_v51  ;;  %v3368_v37 = vadd.f32 1.0, %v5461_v4  ;;  %v3251_v3 = vmul.f32 0.70710677, %v3116_v40  ;;  %3807 = vmatprep.mubr.bf16.mxu0 %v3477_v52  ;;  %v3005_v51 = vadd.f32 %v7951_v15, %v7830_v14 }
 0xa6a   : > { %v8076_v57 = vpop.f32.mrb[75].mxu1  ;;  %v5465_v44 = vpop.eup %5464  ;;  %v3370_v28 = vadd.f32 1.0, %v5463_v19  ;;  %v3118_v56 = vadd.f32 %v7953_v22, %v7832_v16  ;;  %v8094_v4 = vmul.f32 0.5, %v3003_v10  ;;  %3904 = vmatprep.mubr.bf16.mxu1 %v3479_v18  ;;  %v3476_v31 = vpack.c.bf16 %v7961_v58, %v7924_v8 }
 0xa6b   : > { %8686 = vst [vmem:[#allocation75_spill] sm:$0xff] %v8076_v57  ;;  %v5467_v62 = vpop.eup %5466  ;;  %v8088_v57 = vmul.f32 0.5, %v3114_v29  ;;  %v3369_v11 = vadd.f32 1.0, %v5465_v44  ;;  %v3478_v39 = vpack.c.bf16 %v7974_v60, %v7927_v38  ;;  %v8101_v29 = vmul.f32 %v3368_v37, %v8015_v35 }
 0xa6c   : > { %v5469_v5 = vpop.eup %5468  ;;  %v3371_v33 = vadd.f32 1.0, %v5467_v62  ;;  %5480 = verf.f32 %v3249_v54  ;;  %v3252_v15 = vmul.f32 0.70710677, %v3005_v51  ;;  %v8105_v19 = vmul.f32 0.5, %v3116_v40  ;;  %3808 = vmatmul.mubr.bf16.gmra.mrb[84].mxu0 %v3476_v31 }
 0xa6d   : > { %v5471_v53 = vpop.eup %5470  ;;  %5482 = verf.f32 %v3251_v3  ;;  %v3254_v10 = vmul.f32 0.70710677, %v3118_v56  ;;  %3905 = vmatmul.mubr.bf16.gmra.mrb[84].mxu1 %v3478_v39  ;;  %v3007_v8 = vadd.f32 %v7958_v7, %v7834_v6  ;;  %v8114_v35 = vmul.f32 %v3370_v28, %v8019_v17 }
 0xa6e   : > { %v8103_v0 = vpop.f32.mrb[76].mxu0  ;;  %v5473_v22 = vpop.eup %5472  ;;  %5484 = verf.f32 %v3252_v15  ;;  %v3120_v40 = vadd.f32 %v7967_v34, %v7836_v13  ;;  %v3011_v54 = vadd.f32 %v7993_v63, %v7830_v14  ;;  %v8125_v52 = vmul.f32 %v3369_v11, %v8021_v36 }
 0xa6f   : > { %v8109_v38 = vpop.f32.mrb[76].mxu1  ;;  %v8111_v58 = vpop.f32.mrb[77].mxu0  ;;  %v3372_v62 = vadd.f32 1.0, %v5469_v5  ;;  %v3374_v3 = vadd.f32 1.0, %v5471_v53  ;;  %5486 = verf.f32 %v3254_v10  ;;  %v8132_v34 = vmul.f32 %v3371_v33, %v8030_v30 }
 0xa70   : > { %v5475_v60 = vpop.eup %5474  ;;  %v8120_v37 = vpop.f32.mrb[77].mxu1  ;;  %v3373_v28 = vadd.f32 1.0, %v5473_v22  ;;  %v3253_v63 = vmul.f32 0.70710677, %v3007_v8  ;;  %v3255_v31 = vmul.f32 0.70710677, %v3120_v40  ;;  %v3124_v36 = vadd.f32 %v7995_v45, %v7832_v16 }
 0xa71   : > { %v8122_v44 = vpop.f32.mrb[78].mxu0  ;;  %v5477_v7 = vpop.eup %5476  ;;  %v3375_v39 = vadd.f32 1.0, %v5475_v60  ;;  %v3256_v11 = vmul.f32 0.70710677, %v3011_v54  ;;  %v3013_v53 = vadd.f32 %v8001_v1, %v7834_v6  ;;  %v3126_v30 = vadd.f32 %v8003_v41, %v7836_v13 }
 0xa72   : > { %8687 = vst [vmem:[#allocation76_spill] sm:$0xff] %v8122_v44  ;;  %v8127_v17 = vpop.f32.mrb[78].mxu1  ;;  %v8129_v18 = vpop.f32.mrb[79].mxu0  ;;  %v3376_v15 = vadd.f32 1.0, %v5477_v7  ;;  %v8134_v44 = vmul.f32 0.5, %v3005_v51  ;;  %5488 = verf.f32 %v3253_v63  ;;  %v8145_v22 = vmul.f32 %v3372_v62, %v8045_v49 }
 0xa73   : > { %v8138_v5 = vpop.f32.mrb[79].mxu1  ;;  %v5479_v33 = vpop.eup %5478  ;;  %v8148_v51 = vmul.f32 %v3374_v3, %v8056_v20  ;;  %v3190_v10 = vmul.f32 0.5, %v3118_v56  ;;  %v3258_v60 = vmul.f32 0.70710677, %v3124_v36  ;;  %v8151_v45 = vmul.f32 %v3373_v28, %v8058_v26 }
 0xa74   : > { %v8153_v7 = vmul.f32 0.5, %v3007_v8  ;;  %5490 = verf.f32 %v3255_v31  ;;  %v3257_v63 = vmul.f32 0.70710677, %v3013_v53  ;;  %v8156_v1 = vmul.f32 %v3375_v39, %v8070_v21 }
 0xa75   : > { %v8159_v41 = vmul.f32 %v3376_v15, %v8072_v46  ;;  %v8161_v49 = vmul.f32 0.5, %v3120_v40  ;;  %v8163_v62 = vmul.f32 0.5, %v3011_v54  ;;  %v3378_v56 = vadd.f32 1.0, %v5479_v33 }
 0xa76   : > { %v5481_v20 = vpop.eup %5480  ;;  %5492 = verf.f32 %v3256_v11  ;;  %v3259_v3 = vmul.f32 0.70710677, %v3126_v30  ;;  %v3481_v26 = vpack.c.bf16 %v8079_v48, %v8035_v55  ;;  %v3483_v21 = vpack.c.bf16 %v8084_v47, %v8054_v27 }
 0xa77   : > { %v5483_v8 = vpop.eup %5482  ;;  %5494 = verf.f32 %v3258_v60  ;;  %v3015_v46 = vadd.f32 %v8008_v12, %v7830_v14  ;;  %v3128_v40 = vadd.f32 %v8010_v59, %v7832_v16  ;;  %v3480_v28 = vpack.c.bf16 %v8065_v32, %v8013_v9 }
 0xa78   : > { %v5485_v54 = vpop.eup %5484  ;;  %5496 = verf.f32 %v3257_v63  ;;  %3815 = vmatprep.mubr.bf16.mxu0 %v3481_v26  ;;  %v3482_v55 = vpack.c.bf16 %v8068_v43, %v8028_v23  ;;  %v3017_v48 = vadd.f32 %v8017_v25, %v7834_v6  ;;  %v3377_v27 = vadd.f32 1.0, %v5481_v20  ;;  %3912 = vmatprep.mubr.bf16.mxu1 %v3483_v21 }
 0xa79   : > { %v5487_v31 = vpop.eup %5486  ;;  %v8179_v47 = vmul.f32 0.5, %v3124_v36  ;;  %5498 = verf.f32 %v3259_v3  ;;  %v3260_v12 = vmul.f32 0.70710677, %v3015_v46  ;;  %v3379_v59 = vadd.f32 1.0, %v5483_v8  ;;  %3816 = vmatmul.mubr.bf16.gmra.mrb[88].mxu0 %v3480_v28 }
 0xa7a   : > { %v8181_v39 = vmul.f32 0.5, %v3013_v53  ;;  %v3262_v15 = vmul.f32 0.70710677, %v3128_v40  ;;  %3913 = vmatmul.mubr.bf16.gmra.mrb[88].mxu1 %v3482_v55  ;;  %v3261_v9 = vmul.f32 0.70710677, %v3017_v48  ;;  %v8184_v32 = vmul.f32 %v3378_v56, %v8088_v57 }
 0xa7b   : > { %5500 = verf.f32 %v3260_v12  ;;  %v3130_v25 = vadd.f32 %v8025_v2, %v7836_v13  ;;  %v3021_v23 = vadd.f32 %v8041_v42, %v7830_v14  ;;  %v3380_v36 = vadd.f32 1.0, %v5485_v54 }
 0xa7c   : > { %v5489_v43 = vpop.eup %5488  ;;  %v3382_v11 = vadd.f32 1.0, %v5487_v31  ;;  %5502 = verf.f32 %v3262_v15  ;;  %v3134_v53 = vadd.f32 %v8043_v24, %v7832_v16  ;;  %v8192_v33 = vmul.f32 0.5, %v3126_v30  ;;  %v8688_v31 = vld [vmem:[#allocation72_spill] sm:$0xff]  ;;  %v8689_v15 = vld [vmem:[#allocation73_spill] sm:$0xff] }
 0xa7d   : > { %5504 = verf.f32 %v3261_v9  ;;  %v3263_v60 = vmul.f32 0.70710677, %v3130_v25  ;;  %v3023_v57 = vadd.f32 %v8049_v61, %v7834_v6  ;;  %v8197_v2 = vmul.f32 %v3377_v27, %v8094_v4 }
 0xa7e   : > { %v5491_v63 = vpop.eup %5490  ;;  %v8200_v42 = vmul.f32 %v3379_v59, %v8105_v19  ;;  %v8202_v20 = vmul.f32 0.5, %v3015_v46  ;;  %v3264_v56 = vmul.f32 0.70710677, %v3021_v23  ;;  %v3381_v3 = vadd.f32 1.0, %v5489_v43  ;;  %v8690_v43 = vld [vmem:[#allocation74_spill] sm:$0xff] }
 0xa7f   : > { %v8204_v26 = vmul.f32 0.5, %v3128_v40  ;;  %5506 = verf.f32 %v3263_v60  ;;  %v3266_v24 = vmul.f32 0.70710677, %v3134_v53  ;;  %v8207_v8 = vmul.f32 %v3380_v36, %v8134_v44 }
 0xa80   : > { %v5493_v30 = vpop.eup %5492  ;;  %v8209_v61 = vmul.f32 %v3382_v11, %v3190_v10  ;;  %v8211_v21 = vmul.f32 0.5, %v3017_v48  ;;  %5508 = verf.f32 %v3264_v56  ;;  %v3383_v19 = vadd.f32 1.0, %v5491_v63 }
 0xa81   : > { %v5495_v4 = vpop.eup %5494  ;;  %v8213_v54 = vmul.f32 0.5, %v3130_v25  ;;  %v8215_v46 = vmul.f32 0.5, %v3021_v23  ;;  %v3265_v28 = vmul.f32 0.70710677, %v3023_v57  ;;  %v8217_v55 = vmul.f32 0.5, %v3134_v53 }
 0xa82   : > { %v5497_v40 = vpop.eup %5496  ;;  %v3136_v27 = vadd.f32 %v8688_v31, %v7836_v13  ;;  %v3485_v44 = vpack.c.bf16 %v8151_v45, %v8125_v52  ;;  %v3487_v10 = vpack.c.bf16 %v8156_v1, %v8132_v34  ;;  %v8226_v12 = vmul.f32 %v3381_v3, %v8153_v7 }
 0xa83   : > { %v5499_v48 = vpop.eup %5498  ;;  %v3384_v59 = vadd.f32 1.0, %v5493_v30  ;;  %5510 = verf.f32 %v3266_v24  ;;  %v3025_v9 = vadd.f32 %v8689_v15, %v7830_v14  ;;  %v3386_v25 = vadd.f32 1.0, %v5495_v4 }
 0xa84   : > { %v3267_v23 = vmul.f32 0.70710677, %v3136_v27  ;;  %3823 = vmatprep.mubr.bf16.mxu0 %v3485_v44  ;;  %3920 = vmatprep.mubr.bf16.mxu1 %v3487_v10  ;;  %v3138_v36 = vadd.f32 %v8690_v43, %v7832_v16  ;;  %v3484_v52 = vpack.c.bf16 %v8145_v22, %v8101_v29  ;;  %v3385_v45 = vadd.f32 1.0, %v5497_v40  ;;  %v8691_v22 = vld [vmem:[#allocation75_spill] sm:$0xff] }
 0xa85   : > { %v5501_v34 = vpop.eup %5500  ;;  %5512 = verf.f32 %v3265_v28  ;;  %v3268_v7 = vmul.f32 0.70710677, %v3025_v9  ;;  %v3486_v1 = vpack.c.bf16 %v8148_v51, %v8114_v35  ;;  %v3447_v53 = vmul.f32 %v3383_v19, %v8161_v49 }
 0xa86   : > { %v5503_v11 = vpop.eup %5502  ;;  %v3387_v60 = vadd.f32 1.0, %v5499_v48  ;;  %5514 = verf.f32 %v3267_v23  ;;  %v3270_v63 = vmul.f32 0.70710677, %v3138_v36  ;;  %3824 = vmatmul.mubr.bf16.gmra.mrb[92].mxu0 %v3484_v52  ;;  %v8237_v3 = vmul.f32 0.5, %v3023_v57 }
 0xa87   : > { %v5505_v56 = vpop.eup %5504  ;;  %5516 = verf.f32 %v3268_v7  ;;  %3921 = vmatmul.mubr.bf16.gmra.mrb[92].mxu1 %v3486_v1  ;;  %v3027_v29 = vadd.f32 %v8074_v50, %v7834_v6  ;;  %v3140_v24 = vadd.f32 %v8691_v22, %v7836_v13  ;;  %v8244_v35 = vmul.f32 %v3384_v59, %v8163_v62 }
 0xa88   : > { %v8247_v51 = vmul.f32 %v3386_v25, %v8179_v47  ;;  %5518 = verf.f32 %v3270_v63  ;;  %v8251_v49 = vadd.f32 %v8103_v0, %v7830_v14  ;;  %v8254_v30 = vmul.f32 %v3385_v45, %v8181_v39 }
 0xa89   : > { %v5507_v57 = vpop.eup %5506  ;;  %v3388_v4 = vadd.f32 1.0, %v5501_v34  ;;  %v3390_v50 = vadd.f32 1.0, %v5503_v11  ;;  %v3269_v19 = vmul.f32 0.70710677, %v3027_v29  ;;  %v8257_v40 = vmul.f32 %v3387_v60, %v8192_v33 }
 0xa8a   : > { %v5509_v28 = vpop.eup %5508  ;;  %v3389_v62 = vadd.f32 1.0, %v5505_v56  ;;  %v8259_v31 = vmul.f32 0.5, %v3136_v27  ;;  %v3271_v47 = vmul.f32 0.70710677, %v3140_v24  ;;  %v3391_v44 = vadd.f32 1.0, %v5507_v57 }
 0xa8b   : > { %v3204_v10 = vmul.f32 0.5, %v3025_v9  ;;  %5520 = verf.f32 %v3269_v19  ;;  %v8263_v0 = vadd.f32 %v8109_v38, %v7832_v16  ;;  %v3206_v39 = vmul.f32 0.5, %v3138_v36 }
 0xa8c   : > { %5522 = verf.f32 %v3271_v47  ;;  %v3272_v48 = vmul.f32 0.70710677, %v8251_v49  ;;  %v8268_v59 = vadd.f32 %v8111_v58, %v7834_v6  ;;  %v8271_v27 = vmul.f32 %v3388_v4, %v8202_v20 }
 0xa8d   : > { %v5511_v33 = vpop.eup %5510  ;;  %v8274_v15 = vmul.f32 %v3390_v50, %v8204_v26  ;;  %v3392_v9 = vadd.f32 1.0, %v5509_v28  ;;  %v3274_v25 = vmul.f32 0.70710677, %v8263_v0  ;;  %v3453_v38 = vmul.f32 %v3389_v62, %v8211_v21  ;;  %v8692_v21 = vld [vmem:[#allocation76_spill] sm:$0xff] }
 0xa8e   : > { %v3205_v23 = vmul.f32 0.5, %v3027_v29  ;;  %v3207_v43 = vmul.f32 0.5, %v3140_v24  ;;  %v3273_v36 = vmul.f32 0.70710677, %v8268_v59  ;;  %v3455_v58 = vmul.f32 %v3391_v44, %v8213_v54 }
 0xa8f   : > { %v5513_v52 = vpop.eup %5512  ;;  %v8282_v34 = vadd.f32 %v8120_v37, %v7836_v13  ;;  %v3489_v20 = vpack.c.bf16 %v8226_v12, %v8197_v2  ;;  %v3491_v26 = vpack.c.bf16 %v3447_v53, %v8200_v42  ;;  %v3394_v7 = vadd.f32 1.0, %v5511_v33 }
 0xa90   : > { %v5515_v45 = vpop.eup %5514  ;;  %5524 = verf.f32 %v3272_v48  ;;  %v3035_v1 = vadd.f32 %v8692_v21, %v7830_v14  ;;  %v8291_v11 = vadd.f32 %v8127_v17, %v7832_v16  ;;  %v8294_v60 = vmul.f32 %v3392_v9, %v8215_v46 }
 0xa91   : > { %v5517_v54 = vpop.eup %5516  ;;  %5526 = verf.f32 %v3274_v25  ;;  %v3275_v37 = vmul.f32 0.70710677, %v8282_v34  ;;  %3831 = vmatprep.mubr.bf16.mxu0 %v3489_v20  ;;  %3928 = vmatprep.mubr.bf16.mxu1 %v3491_v26  ;;  %v3488_v2 = vpack.c.bf16 %v8207_v8, %v8159_v41  ;;  %v3393_v12 = vadd.f32 1.0, %v5513_v52 }
 0xa92   : > { %v5519_v42 = vpop.eup %5518  ;;  %v3396_v53 = vadd.f32 1.0, %v5517_v54  ;;  %5528 = verf.f32 %v3273_v36  ;;  %v3276_v14 = vmul.f32 0.70710677, %v3035_v1  ;;  %v3395_v63 = vadd.f32 1.0, %v5515_v45 }
 0xa93   : > { %v3398_v16 = vadd.f32 1.0, %v5519_v42  ;;  %5530 = verf.f32 %v3275_v37  ;;  %v3278_v17 = vmul.f32 0.70710677, %v8291_v11  ;;  %3832 = vmatmul.mubr.bf16.gmra.mrb[96].mxu0 %v3488_v2  ;;  %v3490_v56 = vpack.c.bf16 %v8209_v61, %v8184_v32 }
 0xa94   : > { %v3460_v46 = vmul.f32 %v3396_v53, %v3204_v10  ;;  %5532 = verf.f32 %v3276_v14  ;;  %v3037_v29 = vadd.f32 %v8129_v18, %v7834_v6  ;;  %v3150_v22 = vadd.f32 %v8138_v5, %v7836_v13 }
 0xa95   : > { %v5521_v41 = vpop.eup %5520  ;;  %v8304_v8 = vmul.f32 %v3398_v16, %v3206_v39  ;;  %5534 = verf.f32 %v3278_v17  ;;  %v3493_v24 = vpack.c.bf16 %v3453_v38, %v8254_v30  ;;  %v3458_v4 = vmul.f32 %v3394_v7, %v8217_v55  ;;  %3929 = vmatmul.mubr.bf16.gmra.mrb[96].mxu1 %v3490_v56  ;;  %v8324_v17 = vld [vmem:[#allocation29] ss:$0 sm:$0xff] }
 0xa96   : > { %v5523_v57 = vpop.eup %5522  ;;  %v3397_v50 = vadd.f32 1.0, %v5521_v41  ;;  %v3277_v19 = vmul.f32 0.70710677, %v3037_v29  ;;  %v3495_v32 = vpack.c.bf16 %v3455_v58, %v8257_v40  ;;  %v3457_v61 = vmul.f32 %v3393_v12, %v8237_v3 }
 0xa97   : > { %v3399_v6 = vadd.f32 1.0, %v5523_v57  ;;  %v3279_v18 = vmul.f32 0.70710677, %v3150_v22  ;;  %3839 = vmatprep.mubr.bf16.mxu0 %v3493_v24  ;;  %v3492_v28 = vpack.c.bf16 %v8271_v27, %v8244_v35  ;;  %v3459_v13 = vmul.f32 %v3395_v63, %v8259_v31 }
 0xa98   : > { %v3461_v5 = vmul.f32 %v3397_v50, %v3205_v23  ;;  %5536 = verf.f32 %v3277_v19  ;;  %3936 = vmatprep.mubr.bf16.mxu1 %v3495_v32  ;;  %v3494_v55 = vpack.c.bf16 %v8274_v15, %v8247_v51  ;;  %v3496_v40 = vpack.c.bf16 %v3460_v46, %v8294_v60 }
 0xa99   : > { %v3463_v30 = vmul.f32 %v3399_v6, %v3207_v43  ;;  %5538 = verf.f32 %v3279_v18  ;;  %v3498_v3 = vpack.c.bf16 %v8304_v8, %v3458_v4  ;;  %v3208_v51 = vmul.f32 0.5, %v8251_v49 }
 0xa9a   : > { %v5525_v62 = vpop.eup %5524  ;;  %v3497_v47 = vpack.c.bf16 %v3461_v5, %v3457_v61  ;;  %v3212_v15 = vmul.f32 0.5, %v3035_v1  ;;  %v3210_v25 = vmul.f32 0.5, %v8263_v0  ;;  %v3214_v38 = vmul.f32 0.5, %v8291_v11  ;;  %v8693_v61 = vld [vmem:[#allocation56_spill] sm:$0xff] }
 0xa9b   : > { %v5527_v44 = vpop.eup %5526  ;;  %3840 = vmatmul.mubr.bf16.gmra.mrb[100].mxu0 %v3492_v28  ;;  %v3499_v10 = vpack.c.bf16 %v3463_v30, %v3459_v13  ;;  %v3400_v39 = vadd.f32 1.0, %v5525_v62  ;;  %v3209_v21 = vmul.f32 0.5, %v8268_v59  ;;  %v3213_v54 = vmul.f32 0.5, %v3037_v29  ;;  %v8694_v28 = vld [vmem:[#allocation57_spill] sm:$0xff] }
 0xa9c   : > { %v5529_v35 = vpop.eup %5528  ;;  %3847 = vmatprep.mubr.bf16.mxu0 %v3497_v47  ;;  %v3402_v33 = vadd.f32 1.0, %v5527_v44  ;;  %v3211_v60 = vmul.f32 0.5, %v8282_v34  ;;  %v3215_v0 = vmul.f32 0.5, %v3150_v22 }
 0xa9d   : > { %v5531_v31 = vpop.eup %5530  ;;  %3937 = vmatmul.mubr.bf16.gmra.mrb[100].mxu1 %v3494_v55  ;;  %v3464_v43 = vmul.f32 %v3400_v39, %v3208_v51  ;;  %v3401_v36 = vadd.f32 1.0, %v5529_v35  ;;  %v8695_v51 = vld [vmem:[#allocation58_spill] sm:$0xff] }
 0xa9e   : > { %v5533_v48 = vpop.eup %5532  ;;  %3944 = vmatprep.mubr.bf16.mxu1 %v3499_v10  ;;  %v3466_v20 = vmul.f32 %v3402_v33, %v3210_v25  ;;  %v3403_v26 = vadd.f32 1.0, %v5531_v31  ;;  %v8696_v25 = vld [vmem:[#allocation60_spill] sm:$0xff] }
 0xa9f   : > { %v5535_v27 = vpop.eup %5534  ;;  %v3404_v9 = vadd.f32 1.0, %v5533_v48  ;;  %v3465_v2 = vmul.f32 %v3401_v36, %v3209_v21 }
 0xaa0   : > { %v3406_v23 = vadd.f32 1.0, %v5535_v27  ;;  %v3467_v12 = vmul.f32 %v3403_v26, %v3211_v60 }
 0xaa1   : > { %v3468_v52 = vmul.f32 %v3404_v9, %v3212_v15 }
 0xaa2   : > { %v5537_v58 = vpop.eup %5536  ;;  %v3470_v45 = vmul.f32 %v3406_v23, %v3214_v38 }
 0xaa3   : > { %v5539_v7 = vpop.eup %5538  ;;  %v3405_v49 = vadd.f32 1.0, %v5537_v58  ;;  %3848 = vmatmul.mubr.bf16.gmra.mrb[104].mxu0 %v3496_v40  ;;  %v3500_v1 = vpack.c.bf16 %v3468_v52, %v3464_v43 }
 0xaa4   : > { %v3407_v37 = vadd.f32 1.0, %v5539_v7  ;;  %v3502_v11 = vpack.c.bf16 %v3470_v45, %v3466_v20 }
 0xaa5   : > { %v3469_v42 = vmul.f32 %v3405_v49, %v3213_v54  ;;  %3945 = vmatmul.mubr.bf16.gmra.mrb[104].mxu1 %v3498_v3 }
 0xaa6   : > { %v3471_v53 = vmul.f32 %v3407_v37, %v3215_v0  ;;  %v8697_v37 = vld [vmem:[#allocation61_spill] sm:$0xff] }
 0xaa7   : > { %v3501_v14 = vpack.c.bf16 %v3469_v42, %v3465_v2  ;;  %v8698_v42 = vld [vmem:[#allocation63_spill] sm:$0xff] }
 0xaa8   : > { %v3503_v63 = vpack.c.bf16 %v3471_v53, %v3467_v12 }
 0xaa9   : > { %3855 = vmatprep.mubr.bf16.mxu0 %v3501_v14 }
 0xaaa   : > { %3952 = vmatprep.mubr.bf16.mxu1 %v3503_v63 }
 0xaab   : > { %3856 = vmatmul.mubr.bf16.gmra.mrb[108].mxu0 %v3500_v1 }
 0xaad   : > { %3953 = vmatmul.mubr.bf16.gmra.mrb[108].mxu1 %v3502_v11 }
 0xb31   : > { %v4554_v59 = vpop.f32.mrb[80].mxu0  ;;  %v4618_v16 = vpop.f32.mrb[80].mxu1 }
 0xb32   : > { %v4555_v34 = vpop.f32.mrb[81].mxu0  ;;  %v4619_v46 = vpop.f32.mrb[81].mxu1 }
 0xb33   : > { %v4556_v56 = vadd.f32 %v4555_v34, %v4554_v59  ;;  %v4620_v29 = vadd.f32 %v4619_v46, %v4618_v16  ;;  %v4557_v41 = vpop.f32.mrb[82].mxu0  ;;  %v4621_v8 = vpop.f32.mrb[82].mxu1 }
 0xb34   : > { %v4558_v22 = vpop.f32.mrb[83].mxu0  ;;  %v4622_v24 = vpop.f32.mrb[83].mxu1 }
 0xb35   : > { %v3802_v57 = vadd.f32 %v4556_v56, %v8324_v17  ;;  %v4559_v4 = vadd.f32 %v4558_v22, %v4557_v41  ;;  %v4623_v50 = vadd.f32 %v4622_v24, %v4621_v8 }
 0xb37   : > { %v3899_v19 = vadd.f32 %v4620_v29, %v3802_v57  ;;  %v3805_v32 = vadd.f32 %v4559_v4, %v8324_v17 }
 0xb39   : > { %v3961_v6 = vadd.f32 %v3899_v19, %v8693_v61  ;;  %v3902_v18 = vadd.f32 %v4623_v50, %v3805_v32  ;;  %v8699_v50 = vld [vmem:[#allocation65_spill] sm:$0xff]  ;;  %v8700_v61 = vld [vmem:[#allocation59_spill] sm:$0xff] }
 0xb3b   : > { %3977 = vst [vmem:[%s8331_s6] sm:$0xff] %v3961_v6  ;;  %v3962_v13 = vadd.f32 %v3902_v18, %v8694_v28 }
 0xb3d   : > { %3978 = vst [vmem:[%s8331_s6 + $0x8] sm:$0xff] %v3962_v13 }
 0xb3f   : > { %v4560_v5 = vpop.f32.mrb[84].mxu0 }
 0xb40   : > { %v4624_v55 = vpop.f32.mrb[84].mxu1  ;;  %v4561_v30 = vpop.f32.mrb[85].mxu0 }
 0xb41   : > { %v4625_v40 = vpop.f32.mrb[85].mxu1  ;;  %v4562_v3 = vadd.f32 %v4561_v30, %v4560_v5  ;;  %v4563_v47 = vpop.f32.mrb[86].mxu0 }
 0xb42   : > { %v4626_v62 = vadd.f32 %v4625_v40, %v4624_v55  ;;  %v4627_v44 = vpop.f32.mrb[86].mxu1  ;;  %v4564_v10 = vpop.f32.mrb[87].mxu0 }
 0xb43   : > { %v4628_v35 = vpop.f32.mrb[87].mxu1  ;;  %v3810_v31 = vadd.f32 %v4562_v3, %v8324_v17  ;;  %v4565_v39 = vadd.f32 %v4564_v10, %v4563_v47 }
 0xb44   : > { %v4629_v48 = vadd.f32 %v4628_v35, %v4627_v44 }
 0xb45   : > { %v3907_v33 = vadd.f32 %v4626_v62, %v3810_v31  ;;  %v3813_v27 = vadd.f32 %v4565_v39, %v8324_v17 }
 0xb47   : > { %v3963_v15 = vadd.f32 %v3907_v33, %v8695_v51  ;;  %v3910_v9 = vadd.f32 %v4629_v48, %v3813_v27  ;;  %v8701_v33 = vld [vmem:[#allocation67_spill] sm:$0xff] }
 0xb49   : > { %3979 = vst [vmem:[%s8331_s6 + $0x10] sm:$0xff] %v3963_v15  ;;  %v3964_v38 = vadd.f32 %v3910_v9, %v8696_v25 }
 0xb4b   : > { %3980 = vst [vmem:[%s8331_s6 + $0x18] sm:$0xff] %v3964_v38  ;;  %v8702_v38 = vld [vmem:[#allocation62_spill] sm:$0xff] }
 0xb4c   : > { %v4566_v23 = vpop.f32.mrb[88].mxu0 }
 0xb4d   : > { %v4630_v43 = vpop.f32.mrb[88].mxu1  ;;  %v4567_v36 = vpop.f32.mrb[89].mxu0 }
 0xb4e   : > { %v4631_v52 = vpop.f32.mrb[89].mxu1  ;;  %v4568_v58 = vadd.f32 %v4567_v36, %v4566_v23  ;;  %v4569_v26 = vpop.f32.mrb[90].mxu0 }
 0xb4f   : > { %v4632_v20 = vadd.f32 %v4631_v52, %v4630_v43  ;;  %v4633_v45 = vpop.f32.mrb[90].mxu1  ;;  %v4570_v7 = vpop.f32.mrb[91].mxu0 }
 0xb50   : > { %v4634_v21 = vpop.f32.mrb[91].mxu1  ;;  %v3818_v54 = vadd.f32 %v4568_v58, %v8324_v17  ;;  %v4571_v49 = vadd.f32 %v4570_v7, %v4569_v26 }
 0xb51   : > { %v4635_v1 = vadd.f32 %v4634_v21, %v4633_v45 }
 0xb52   : > { %v3915_v60 = vadd.f32 %v4632_v20, %v3818_v54  ;;  %v3821_v0 = vadd.f32 %v4571_v49, %v8324_v17 }
 0xb54   : > { %v3965_v11 = vadd.f32 %v3915_v60, %v8697_v37  ;;  %v3918_v2 = vadd.f32 %v4635_v1, %v3821_v0  ;;  %v8703_v60 = vld [vmem:[#allocation69_spill] sm:$0xff] }
 0xb56   : > { %3981 = vst [vmem:[%s8331_s6 + $0x20] sm:$0xff] %v3965_v11  ;;  %v3966_v12 = vadd.f32 %v3918_v2, %v8698_v42 }
 0xb58   : > { %3982 = vst [vmem:[%s8331_s6 + $0x28] sm:$0xff] %v3966_v12  ;;  %v8704_v12 = vld [vmem:[#allocation64_spill] sm:$0xff] }
 0xb59   : > { %v4572_v53 = vpop.f32.mrb[92].mxu0 }
 0xb5a   : > { %v4636_v14 = vpop.f32.mrb[92].mxu1  ;;  %v4573_v63 = vpop.f32.mrb[93].mxu0 }
 0xb5b   : > { %v4574_v59 = vadd.f32 %v4573_v63, %v4572_v53  ;;  %v4637_v16 = vpop.f32.mrb[93].mxu1  ;;  %v4575_v34 = vpop.f32.mrb[94].mxu0 }
 0xb5c   : > { %v4638_v46 = vadd.f32 %v4637_v16, %v4636_v14  ;;  %v4639_v56 = vpop.f32.mrb[94].mxu1  ;;  %v4576_v29 = vpop.f32.mrb[95].mxu0 }
 0xb5d   : > { %v3826_v41 = vadd.f32 %v4574_v59, %v8324_v17  ;;  %v4577_v8 = vadd.f32 %v4576_v29, %v4575_v34  ;;  %v4640_v22 = vpop.f32.mrb[95].mxu1 }
 0xb5e   : > { %v4641_v24 = vadd.f32 %v4640_v22, %v4639_v56 }
 0xb5f   : > { %v3923_v57 = vadd.f32 %v4638_v46, %v3826_v41  ;;  %v3829_v4 = vadd.f32 %v4577_v8, %v8324_v17 }
 0xb61   : > { %v3967_v19 = vadd.f32 %v3923_v57, %v8699_v50  ;;  %v3926_v32 = vadd.f32 %v4641_v24, %v3829_v4  ;;  %v8707_v57 = vld [vmem:[#allocation70_spill] sm:$0xff] }
 0xb63   : > { %3983 = vst [vmem:[%s8331_s6 + $0x30] sm:$0xff] %v3967_v19  ;;  %v3968_v6 = vadd.f32 %v3926_v32, %v8700_v61 }
 0xb65   : > { %3984 = vst [vmem:[%s8331_s6 + $0x38] sm:$0xff] %v3968_v6  ;;  %v8708_v6 = vld [vmem:[#allocation66_spill] sm:$0xff] }
 0xb66   : > { %v4578_v18 = vpop.f32.mrb[96].mxu0 }
 0xb67   : > { %v4579_v28 = vpop.f32.mrb[97].mxu0 }
 0xb68   : > { %v4580_v13 = vadd.f32 %v4579_v28, %v4578_v18  ;;  %v4581_v5 = vpop.f32.mrb[98].mxu0  ;;  %v4642_v55 = vpop.f32.mrb[96].mxu1 }
 0xb69   : > { %v4582_v30 = vpop.f32.mrb[99].mxu0  ;;  %v4643_v3 = vpop.f32.mrb[97].mxu1 }
 0xb6a   : > { %v3834_v40 = vadd.f32 %v4580_v13, %v8324_v17  ;;  %v4583_v62 = vadd.f32 %v4582_v30, %v4581_v5  ;;  %v4644_v47 = vadd.f32 %v4643_v3, %v4642_v55  ;;  %v4645_v44 = vpop.f32.mrb[98].mxu1 }
 0xb6b   : > { %v4646_v35 = vpop.f32.mrb[99].mxu1 }
 0xb6c   : > { %v3837_v10 = vadd.f32 %v4583_v62, %v8324_v17  ;;  %v3931_v31 = vadd.f32 %v4644_v47, %v3834_v40  ;;  %v4647_v39 = vadd.f32 %v4646_v35, %v4645_v44  ;;  %v8709_v35 = vld [vmem:[#allocation71_spill] sm:$0xff] }
 0xb6e   : > { %v4584_v48 = vpop.f32.mrb[100].mxu0  ;;  %v3969_v27 = vadd.f32 %v3931_v31, %v8701_v33  ;;  %v3934_v51 = vadd.f32 %v4647_v39, %v3837_v10 }
 0xb6f   : > { %v4585_v15 = vpop.f32.mrb[101].mxu0 }
 0xb70   : > { %v4586_v9 = vadd.f32 %v4585_v15, %v4584_v48  ;;  %v4587_v25 = vpop.f32.mrb[102].mxu0  ;;  %3985 = vst [vmem:[%s8331_s6 + $0x40] sm:$0xff] %v3969_v27  ;;  %v3970_v23 = vadd.f32 %v3934_v51, %v8702_v38  ;;  %v4648_v43 = vpop.f32.mrb[100].mxu1  ;;  %v8710_v48 = vld [vmem:[#allocation68_spill] sm:$0xff] }
 0xb71   : > { %v4588_v36 = vpop.f32.mrb[103].mxu0  ;;  %v4649_v58 = vpop.f32.mrb[101].mxu1 }
 0xb72   : > { %v3842_v52 = vadd.f32 %v4586_v9, %v8324_v17  ;;  %v4589_v20 = vadd.f32 %v4588_v36, %v4587_v25  ;;  %3986 = vst [vmem:[%s8331_s6 + $0x48] sm:$0xff] %v3970_v23  ;;  %v4650_v26 = vadd.f32 %v4649_v58, %v4648_v43  ;;  %v4651_v45 = vpop.f32.mrb[102].mxu1 }
 0xb73   : > { %v4652_v21 = vpop.f32.mrb[103].mxu1 }
 0xb74   : > { %v3845_v7 = vadd.f32 %v4589_v20, %v8324_v17  ;;  %v3939_v54 = vadd.f32 %v4650_v26, %v3842_v52  ;;  %v4653_v49 = vadd.f32 %v4652_v21, %v4651_v45 }
 0xb76   : > { %v4590_v1 = vpop.f32.mrb[104].mxu0  ;;  %v3971_v0 = vadd.f32 %v3939_v54, %v8703_v60  ;;  %v3942_v37 = vadd.f32 %v4653_v49, %v3845_v7 }
 0xb77   : > { %v4591_v11 = vpop.f32.mrb[105].mxu0 }
 0xb78   : > { %v4592_v2 = vadd.f32 %v4591_v11, %v4590_v1  ;;  %v4593_v42 = vpop.f32.mrb[106].mxu0  ;;  %3987 = vst [vmem:[%s8331_s6 + $0x50] sm:$0xff] %v3971_v0  ;;  %v3972_v53 = vadd.f32 %v3942_v37, %v8704_v12  ;;  %v4654_v14 = vpop.f32.mrb[104].mxu1 }
 0xb79   : > { %v4594_v63 = vpop.f32.mrb[107].mxu0  ;;  %v4655_v16 = vpop.f32.mrb[105].mxu1 }
 0xb7a   : > { %v3850_v59 = vadd.f32 %v4592_v2, %v8324_v17  ;;  %v4595_v34 = vadd.f32 %v4594_v63, %v4593_v42  ;;  %3988 = vst [vmem:[%s8331_s6 + $0x58] sm:$0xff] %v3972_v53  ;;  %v4656_v46 = vadd.f32 %v4655_v16, %v4654_v14  ;;  %v4657_v56 = vpop.f32.mrb[106].mxu1 }
 0xb7b   : > { %v4658_v41 = vpop.f32.mrb[107].mxu1 }
 0xb7c   : > { %v3853_v29 = vadd.f32 %v4595_v34, %v8324_v17  ;;  %v3947_v8 = vadd.f32 %v4656_v46, %v3850_v59  ;;  %v4659_v22 = vadd.f32 %v4658_v41, %v4657_v56 }
 0xb7e   : > { %v4596_v24 = vpop.f32.mrb[108].mxu0  ;;  %v3973_v4 = vadd.f32 %v3947_v8, %v8707_v57  ;;  %v3950_v50 = vadd.f32 %v4659_v22, %v3853_v29 }
 0xb7f   : > { %v4597_v19 = vpop.f32.mrb[109].mxu0 }
 0xb80   : > { %v4598_v32 = vadd.f32 %v4597_v19, %v4596_v24  ;;  %v4599_v61 = vpop.f32.mrb[110].mxu0  ;;  %3989 = vst [vmem:[%s8331_s6 + $0x60] sm:$0xff] %v3973_v4  ;;  %v3974_v18 = vadd.f32 %v3950_v50, %v8708_v6  ;;  %v4660_v28 = vpop.f32.mrb[108].mxu1 }
 0xb81   : > { %v4600_v13 = vpop.f32.mrb[111].mxu0  ;;  %v4661_v55 = vpop.f32.mrb[109].mxu1 }
 0xb82   : > { %v3858_v5 = vadd.f32 %v4598_v32, %v8324_v17  ;;  %v4601_v30 = vadd.f32 %v4600_v13, %v4599_v61  ;;  %3990 = vst [vmem:[%s8331_s6 + $0x68] sm:$0xff] %v3974_v18  ;;  %v4662_v40 = vadd.f32 %v4661_v55, %v4660_v28  ;;  %v4663_v3 = vpop.f32.mrb[110].mxu1 }
 0xb83   : > { %v4664_v47 = vpop.f32.mrb[111].mxu1 }
 0xb84   : > { %v3861_v62 = vadd.f32 %v4601_v30, %v8324_v17  ;;  %v3955_v44 = vadd.f32 %v4662_v40, %v3858_v5  ;;  %v4665_v10 = vadd.f32 %v4664_v47, %v4663_v3 }
 0xb86   : > { %v3975_v31 = vadd.f32 %v3955_v44, %v8709_v35  ;;  %v3958_v39 = vadd.f32 %v4665_v10, %v3861_v62 }
 0xb88   : > { %3991 = vst [vmem:[%s8331_s6 + $0x70] sm:$0xff] %v3975_v31  ;;  %v3976_v33 = vadd.f32 %v3958_v39, %v8710_v48 }
 0xb8a   : > { %3992 = vst [vmem:[%s8331_s6 + $0x78] sm:$0xff] %v3976_v33 }
 0xb8b   : > { %6079 = shalt.err (!%p6076_p6)
}
 0xb8c   : > { %s6080_s2 = scalar_lea.hbm %s8385_s18, 2048  ;;  %s6084_s24 = scalar_lea.hbm %s8711_s17, 8192 }
 0xb8d   : > { %p6081_p7 = scmp.ne.s32.totalorder %s8385_s18, %s6080_s2  ;;  %p6085_p4 = scmp.lt.u32.totalorder %s8385_s18, %s8711_s17 }
 0xb8e   : > { %p6086_p13 = scmp.lt.u32.totalorder %s6084_s24, %s6080_s2  ;;  %p6088_p12 = scmp.lt.u32.totalorder %s6080_s2, %s8385_s18 }
 0xb8f   : > { %p6082_p0 = pnand %p6081_p7, %p8712_p8 }
 0xb90   : > { %p6087_p3 = por %p6086_p13, %p6085_p4 }
 0xb91   : > { %p6083_p5 = pneg %p6082_p0 }
 0xb92   : > { %p6089_p11 = por %p6088_p12, %p6087_p3 }
 0xb94   : > { %p6090_p1 = pnand %p6089_p11, %p6083_p5 }
 0xb96   : > { %6093 = shalt.err (!%p6090_p1)
}
 0xb97   : > { %s6280_s30 = smov 128   ;;  %s6281_s21 = smov 8  }
 0xb98   : > { %4884 = dma.vmem_to_hbm [thread:$0]  (%p8712_p8), %s8378_s20, 2048, %s8385_s18, %s3994_s13, %s6280_s30, %s6280_s30, %s6281_s21  }
 0xb99 PF: > { %s8713_s3 = sld [smem:[#allocation47_spill]]  ;;  %p4977_p2 = scmp.ge.s32.totalorder %s6252_s28, 2 }
 0xb9a   : > { %p8714_p9 = scmp.ne.s32.totalorder %s8623_s0, 0 }
 0xb9c   : > { %p4943_p10 = pnand %p4977_p2, %p8714_p9 }
 0xb9f   : > { %s4024_s14 = sand.u32 1, %s8713_s3  }
 0xba0   : > { %s4025_s10 = scalar_lea.sflag [#allocation4], %s4024_s14 }
 0xba1   : > { %6195 = dma.done.wait (!%p4943_p10), %s4025_s10, 2048  }
 0xba2   : > { %6197 = vsyncadd (!%p4943_p10), %s4025_s10, 4294965248  ;;  %s46_s28 = sadd.s32 1, %s6252_s28   ;;  %s8716_s0 = sld [smem:[#allocation45_spill]] }
 0xba3   : > { %p8417_p6 = scmp.ge.s32.totalorder %s46_s28, 6   ;;  %s8717_s30 = sld [smem:[#allocation46_spill]] }
 0xba4   : > { %s8718_s2 = sld [smem:[#allocation48_spill]]  ;;  %s8719_s23 = sld [smem:[#allocation49_spill]] }
 0xba5   : > { %s8720_s25 = sld [smem:[#allocation52_spill]]  ;;  %s8721_s26 = sld [smem:[#allocation54_spill]] }
 0xba6   : > { %s8722_s19 = sld [smem:[#allocation55_spill]]  ;;  %s8723_s20 = smov %s6960_s12 }
 0xba7   : > { %s8724_s21 = smov %s6216_s1  ;;  %s8725_s1 = smov %s6220_s22 }
 0xba8   : > { %s8726_s22 = smov %s6901_s8  ;;  %s8727_s24 = smov %s8737_s7 }
 0xba9   : > { %s8728_s3 = smov %s6248_s27  ;;  %45 = sbr.rel (!%p8417_p6) target bundleno = 41 (0x29), region = 225 }
 0xbac   : > { %s8729_s27 = smov %s8722_s19 }
 0xbb0   :  { %4030 = vsyncpa [#allocation3], 1 }
 0xbb1   :  { %4032 = vsyncpa [#allocation3 + $0x1], 1 }
 0xbb2   :  { %4033 = vsyncpa [#allocation6], 1 }
 0xbb3   :  { %4035 = vsyncpa [#allocation6 + $0x1], 1 }
 0xbb4   :  { %4036 = vsyncpa [#allocation9], 1 }
 0xbb5   :  { %4037 = vsyncpa [#allocation12], 1 }
 0xbb6   :  { %4038 = vsyncpa [#allocation15], 1 }
 0xbb7   :  { %4039 = vsyncpa [#allocation18], 1 }
 0xbb8   :  { %4040 = vsyncpa [#allocation21], 1 }
 0xbb9   :  { %4041 = vsyncpa [#allocation24], 1 }
 0xbba   :  { %4042 = vsyncpa [#allocation27], 1 }
 0xbbb   :  { %4043 = vsyncpa [#allocation30], 1 }
 0xbbc   :  { %4044 = vsyncpa [#allocation4], 1 }
 0xbbd   :  { %4046 = vsyncpa [#allocation4 + $0x1], 1 }

</bundles_post_ra>
